<compile_context>
chip_gen: v5e
topology: v5e:2x2
jax: 0.10.0
libtpu: 0.0.40
codegen_flags: <defaults>
</compile_context>

<pallas_src>
import functools
import math

import jax
import jax.numpy as jnp
from jax import lax
from jax.experimental import pallas as pl
from jax.experimental.pallas import tpu as pltpu

V_RANGE = 6.0
NEG_INF = -1e30


def _vmem():
    return pl.BlockSpec(memory_space=pltpu.MemorySpace.VMEM)


# ---------------------------------------------------------------------------
# The single fused kernel: setup + whole k_max decode loop.
# ---------------------------------------------------------------------------

def _fused_decoder_kernel(h_ref, ctx_ref, rec_ref, vt_ref, last_ref, el_ref, g_ref,
                          wk_add_ref, wk_mul_ref, whid_ref, bhid_ref,
                          wm1_ref, bm1_ref, wm2_ref, bm2_ref,
                          wq_ref, wgru_ref, bgru_ref, iq0_ref, geo_ref,
                          act_ref, ll_ref):
    bs, gs, E = h_ref.shape
    k_max = g_ref.shape[0]
    E2 = 2 * E
    f32 = jnp.float32
    i32 = jnp.int32

    # ------------------ one-time setup (formerly a separate pallas_call) ----
    h = h_ref[...]                                                    # (bs, gs, E)
    h2d = h.reshape(bs * gs, E)
    # K projections already paired for 64-lane attention slabs: [K1|K2] and [K3|K4]
    khA = jnp.dot(h2d, wk_add_ref[...],
                  preferred_element_type=f32).reshape(bs, gs, E2)
    khM = jnp.dot(h2d, wk_mul_ref[...],
                  preferred_element_type=f32).reshape(bs, gs, E2)

    h_mean = jnp.mean(h, axis=1)                                      # (bs, E)
    q0 = (jnp.dot(h_mean, whid_ref[...], preferred_element_type=f32)
          + bhid_ref[...])                                            # (bs, E)

    hid = jnp.maximum(
        jnp.dot(ctx_ref[...], wm1_ref[...], preferred_element_type=f32)
        + bm1_ref[...], 0.0)
    V12 = (jnp.dot(hid, wm2_ref[...], preferred_element_type=f32)
           + bm2_ref[...])[:, None, :]                                # (bs,1,2E) [V1|V2]

    rec = rec_ref[...]                                                # (bs, gs) i32
    vt = vt_ref[...]
    last_a = last_ref[...]                                            # (bs, 1)  i32

    # geo_weight * edge_len.gather(2, rec)  (loop-invariant, one-hot gather)
    col3 = lax.broadcasted_iota(i32, (bs, gs, gs), 2)
    curr_dist = jnp.sum(jnp.where(col3 == rec[:, :, None], el_ref[...], 0.0),
                        axis=-1)                                      # (bs, gs)
    gdist = curr_dist * geo_ref[...]                                  # (1,1) broadcast

    wq = wq_ref[...]
    wgru = wgru_ref[...]
    bgru = bgru_ref[...]

    col_g = lax.broadcasted_iota(i32, (bs, gs), 1)
    col_k = lax.broadcasted_iota(i32, (bs, k_max), 1)
    col_k1 = lax.broadcasted_iota(i32, (bs, k_max + 1), 1)

    # ------------------ initial carried state --------------------------------
    q12_0 = jnp.concatenate([q0, q0], axis=1)                         # (bs,2E) [q1|q2]
    iq0 = jnp.broadcast_to(iq0_ref[...], (bs, E))
    iq12_0 = jnp.concatenate([iq0, iq0], axis=1)
    carry0 = (q12_0, iq12_0,
              jnp.zeros((bs, gs), i32),            # mask
              jnp.zeros((bs, gs), i32),            # visited_time_tag
              jnp.ones((bs, 1), i32),              # stopped
              jnp.full((bs, 1), -1, i32),          # next_of_last_action
              jnp.zeros((bs, 1), f32),             # ll
              jnp.zeros((bs, k_max), i32),         # action_index
              jnp.zeros((bs, k_max + 1), i32),     # k_action_left
              jnp.zeros((bs, k_max), i32))         # k_action_right

    def step(i, carry):
        q12, iq12, mask, vtt, stopped, nola, ll, ai, kal, kar = carry

        fi = jnp.where(i == 0, jnp.int32(1), jnp.int32(0))
        first_g = jnp.broadcast_to(fi, (bs, gs)) > 0
        first_1 = jnp.broadcast_to(fi, (bs, 1)) > 0
        notfirst_1 = jnp.logical_not(first_1)

        # ---- BOTH GRU cells, one matmul on [iq1|iq2|q1|q2] (block-diag W) ----
        xh = jnp.concatenate([iq12, q12], axis=1)                     # (bs, 4E)
        gg = jnp.dot(xh, wgru, preferred_element_type=f32) + bgru     # (bs, 12E)
        r = jax.nn.sigmoid(gg[:, 0:E2] + gg[:, 3 * E2:4 * E2])
        z = jax.nn.sigmoid(gg[:, E2:2 * E2] + gg[:, 4 * E2:5 * E2])
        n = jnp.tanh(gg[:, 2 * E2:3 * E2] + r * gg[:, 5 * E2:6 * E2])
        q12n = (1.0 - z) * n + z * q12                                # (bs,2E) [q1|q2]

        # ---- all 4 query projections in one matmul: [p1|p2|p3|p4] ----------
        p = jnp.dot(q12n, wq, preferred_element_type=f32)             # (bs, 4E)
        p_add = p[:, :E2][:, None, :]                                 # [p1|p2]
        p_mul = p[:, E2:][:, None, :]                                 # [p3|p4]

        # ---- attention score on a 2E=64-lane slab ---------------------------
        t = jnp.tanh(khA + p_add + khM * p_mul)                       # (bs,gs,2E)
        mulam = jnp.sum(V12 * t, axis=-1)                             # (bs,gs) = mu+lam
        logits = jnp.tanh(mulam + gdist) * V_RANGE
        logits = jnp.where(mask > 0, NEG_INF, logits)
        logits = jnp.where(jnp.logical_and(first_g, col_g == last_a),
                           NEG_INF, logits)

        # ---- softmax stats + Gumbel-max categorical sample ------------------
        m = jnp.max(logits, axis=-1, keepdims=True)
        s = jnp.sum(jnp.exp(logits - m), axis=-1, keepdims=True)
        value_max = pl.reciprocal(s, approx=True)                     # max softmax prob

        def row_argmax(x):
            xm = jnp.max(x, axis=-1, keepdims=True)
            return jnp.min(jnp.where(x == xm, col_g, gs), axis=-1, keepdims=True)

        g_i = g_ref[i]                                                # (bs,gs) gumbel
        action = row_argmax(logits + g_i)
        action_max = row_argmax(logits)
        action = jnp.where((1.0 - value_max) < 1e-5, action_max, action)

        sp = stopped > 0                                              # prev stopped
        ai0 = ai[:, 0:1]
        # simpleMDP: reuse step-0 action for already-stopped rows (i > 0)
        action = jnp.where(jnp.logical_and(notfirst_1, sp), ai0, action)
        onehot_a = col_g == action

        # ---- training log-likelihood ----------------------------------------
        logit_at_a = jnp.sum(jnp.where(onehot_a, logits, 0.0), axis=-1,
                             keepdims=True)
        loss_now = logit_at_a - m - jnp.log(s)
        ll = ll + jnp.where(jnp.logical_and(notfirst_1, sp), 0.0, loss_now)

        # ---- gathers via one-hot ---------------------------------------------
        rec_at_a = jnp.sum(jnp.where(onehot_a, rec, 0), axis=-1, keepdims=True)

        # ---- bookkeeping scatters (python negative-index wrap) ---------------
        im1_r = jnp.where(i == 0, k_max - 1, i - 1)    # wrap for k_max columns
        im1_l = jnp.where(i == 0, k_max, i - 1)        # wrap for k_max+1 columns
        sp_k = jnp.broadcast_to(stopped, (bs, k_max)) > 0
        sp_k1 = jnp.broadcast_to(stopped, (bs, k_max + 1)) > 0

        ai = jnp.where(col_k == i, action, ai)
        kal = jnp.where(jnp.logical_and(col_k1 == i, sp_k1), action, kal)
        kar = jnp.where(jnp.logical_and(col_k == im1_r, jnp.logical_not(sp_k)),
                        action, kar)
        kal = jnp.where(col_k1 == i + 1, rec_at_a, kal)

        # ---- next GRU inputs --------------------------------------------------
        oh_a = onehot_a.astype(f32)[:, :, None]
        iq1n = jnp.sum(oh_a * h, axis=1)                              # h[b, action]
        nola_mod = jnp.where(nola < 0, nola + gs, nola)               # nola % gs
        oh_n = (col_g == nola_mod).astype(f32)[:, :, None]
        iq2g = jnp.sum(oh_n * h, axis=1)                              # h[b, nola % gs]
        sp_e = jnp.broadcast_to(stopped, (bs, E)) > 0
        iq2n = jnp.where(sp_e, iq1n, iq2g)
        iq12n = jnp.concatenate([iq1n, iq2n], axis=1)                 # (bs, 2E)

        # ---- stopped update ----------------------------------------------------
        eq = action == nola
        stopped_b = jnp.where(notfirst_1, jnp.logical_or(sp, eq), eq)  # (bs,1) bool
        stopped_n = stopped_b.astype(i32)

        kal_prev = jnp.sum(jnp.where(col_k1 == im1_l, kal, 0), axis=-1,
                           keepdims=True)
        kar_prev = jnp.sum(jnp.where(col_k == im1_r, kar, 0), axis=-1,
                           keepdims=True)
        st_k1 = jnp.broadcast_to(stopped_n, (bs, k_max + 1)) > 0
        st_k = jnp.broadcast_to(stopped_n, (bs, k_max)) > 0
        st_g = jnp.broadcast_to(stopped_n, (bs, gs)) > 0
        kal = jnp.where(jnp.logical_and(col_k1 == i, st_k1), kal_prev, kal)
        kar = jnp.where(jnp.logical_and(col_k == i, st_k), kar_prev, kar)

        # ---- visited_time_tag (computed at i==0, frozen afterwards) -----------
        vt_at_a = jnp.sum(jnp.where(onehot_a, vt, 0), axis=-1, keepdims=True)
        diff = vt - vt_at_a
        vtt = jnp.where(first_g, jnp.where(diff < 0, diff + gs, diff), vtt)

        # ---- mask rebuild -------------------------------------------------------
        vtt_at_a = jnp.sum(jnp.where(onehot_a, vtt, 0), axis=-1, keepdims=True)
        new_mask = vtt <= vtt_at_a
        new_mask = jnp.logical_or(new_mask,
                                  jnp.logical_and(first_g, vtt > gs - 2))
        new_mask = jnp.logical_and(new_mask,
                                   jnp.logical_not(jnp.logical_and(onehot_a, st_g)))
        ai0n = ai[:, 0:1]
        allow = jnp.logical_and(jnp.logical_not(stopped_b), rec_at_a == ai0n)
        allow_g = jnp.broadcast_to(allow.astype(i32), (bs, gs)) > 0
        new_mask = jnp.logical_and(
            new_mask, jnp.logical_not(jnp.logical_and(col_g == ai0n, allow_g)))
        mask = new_mask.astype(i32)

        nola = jnp.where(stopped_b, jnp.int32(-1), rec_at_a)

        return (q12n, iq12n, mask, vtt, stopped_n, nola, ll, ai, kal, kar)

    carry = lax.fori_loop(0, k_max, step, carry0, unroll=True)
    (_, _, _, _, stopped, _, ll, ai, kal, kar) = carry

    # ---- post-loop fixup: k_action_right[~stopped, -1] = k_action_left[~stopped, -1]
    not_stopped_k = jnp.broadcast_to(stopped, (bs, k_max)) == 0
    kar = jnp.where(jnp.logical_and(not_stopped_k, col_k == k_max - 1),
                    kal[:, k_max:k_max + 1], kar)

    act_ref[...] = jnp.concatenate([ai, kal[:, :k_max], kar], axis=1)
    ll_ref[...] = ll


# ---------------------------------------------------------------------------
# Parameter init (mirrors PyTorch shapes / uniform init) + one-time packing
# ---------------------------------------------------------------------------

def init_params(seed, E):
    names_shapes = [
        ('WK1', (E, E)), ('WK2', (E, E)), ('WK3', (E, E)), ('WK4', (E, E)),
        ('WQ1', (E, E)), ('WQ2', (E, E)), ('WQ3', (E, E)), ('WQ4', (E, E)),
        ('Wm1', (8, 9)), ('bm1', (8,)), ('Wm2', (2 * E, 8)), ('bm2', (2 * E,)),
        ('Whid', (E, E)), ('bhid', (E,)), ('init_query', (E,)),
        ('gru1_wih', (3 * E, E)), ('gru1_whh', (3 * E, E)),
        ('gru1_bih', (3 * E,)), ('gru1_bhh', (3 * E,)),
        ('gru2_wih', (3 * E, E)), ('gru2_whh', (3 * E, E)),
        ('gru2_bih', (3 * E,)), ('gru2_bhh', (3 * E,)),
    ]
    key = jax.random.PRNGKey(seed)
    keys = jax.random.split(key, len(names_shapes))
    params = {}
    for (name, shape), k in zip(names_shapes, keys):
        stdv = 1.0 / math.sqrt(shape[-1])
        params[name] = jax.random.uniform(k, shape, jnp.float32, -stdv, stdv)
    params['geo_weight'] = jnp.array(1.0, jnp.float32)
    return params


def prepare_params(params, E):
    """One-time transposes / block-diagonal packing (paid once, not per forward)."""
    pp = {}
    zE = jnp.zeros((E, E), jnp.float32)

    # K projections paired for 64-lane attention slabs: [K1|K2] and [K3|K4]
    pp['wk_add'] = jnp.concatenate([params['WK1'].T, params['WK2'].T], axis=1)
    pp['wk_mul'] = jnp.concatenate([params['WK3'].T, params['WK4'].T], axis=1)

    pp['whidT'] = params['Whid'].T
    pp['bhid'] = params['bhid'][None, :]
    pp['wm1T'] = params['Wm1'].T
    pp['bm1'] = params['bm1'][None, :]
    pp['wm2T'] = params['Wm2'].T
    pp['bm2'] = params['bm2'][None, :]

    # Query projections: [q1|q2] @ wq_all = [p1|p2|p3|p4]
    wq_top = jnp.concatenate([params['WQ1'].T, zE, params['WQ3'].T, zE], axis=1)
    wq_bot = jnp.concatenate([zE, params['WQ2'].T, zE, params['WQ4'].T], axis=1)
    pp['wq_all'] = jnp.concatenate([wq_top, wq_bot], axis=0)          # (2E, 4E)

    # Both GRU cells: [iq1|iq2|q1|q2] @ w_gru = [r_x|z_x|n_x|r_h|z_h|n_h]
    # with each 2E block laid out [gru1 | gru2].  PyTorch GRUCell weight_ih/hh
    # are (3E, E) with gate rows [r; z; n].
    wih1, wih2 = params['gru1_wih'].T, params['gru2_wih'].T           # (E, 3E)
    whh1, whh2 = params['gru1_whh'].T, params['gru2_whh'].T

    def gate_block(w1, w2, g):                                        # (2E, 2E) blockdiag
        a = w1[:, g * E:(g + 1) * E]
        b = w2[:, g * E:(g + 1) * E]
        top = jnp.concatenate([a, zE], axis=1)
        bot = jnp.concatenate([zE, b], axis=1)
        return jnp.concatenate([top, bot], axis=0)

    x_r, x_z, x_n = (gate_block(wih1, wih2, g) for g in range(3))
    h_r, h_z, h_n = (gate_block(whh1, whh2, g) for g in range(3))
    z26 = jnp.zeros((2 * E, 6 * E), jnp.float32)
    w_top = jnp.concatenate([x_r, x_z, x_n, z26], axis=1)             # (2E, 12E)
    w_bot = jnp.concatenate([z26, h_r, h_z, h_n], axis=1)
    pp['w_gru'] = jnp.concatenate([w_top, w_bot], axis=0)             # (4E, 12E)

    bih1, bih2 = params['gru1_bih'], params['gru2_bih']
    bhh1, bhh2 = params['gru1_bhh'], params['gru2_bhh']
    pp['b_gru'] = jnp.concatenate([
        bih1[0:E], bih2[0:E], bih1[E:2 * E], bih2[E:2 * E],
        bih1[2 * E:3 * E], bih2[2 * E:3 * E],
        bhh1[0:E], bhh2[0:E], bhh1[E:2 * E], bhh2[E:2 * E],
        bhh1[2 * E:3 * E], bhh2[2 * E:3 * E]])[None, :]               # (1, 12E)

    pp['init_query'] = params['init_query'][None, :]
    pp['geo'] = params['geo_weight'].reshape(1, 1)
    return pp


# ---------------------------------------------------------------------------
# Forward pass (with_RNN=True, with_feature3=True, simpleMDP=True,
#               training=True, require_entropy=False, fixed_action=None)
# ---------------------------------------------------------------------------

@functools.partial(jax.jit, static_argnums=(1,))
def kopt_decoder_forward(pp, k_max, h, rec, context2, visited_time,
                         last_action, edge_len, sample_key):
    bs, gs, _ = h.shape
    # precomputed Gumbel noise for in-kernel categorical sampling (Gumbel-max),
    # kept fully VMEM-resident inside the single kernel invocation.
    gumbel = jax.random.gumbel(sample_key, (k_max, bs, gs), jnp.float32)

    act_all, ll = pl.pallas_call(
        _fused_decoder_kernel,
        out_shape=(jax.ShapeDtypeStruct((bs, 3 * k_max), jnp.int32),
                   jax.ShapeDtypeStruct((bs, 1), jnp.float32)),
        in_specs=[_vmem()] * 20,
        out_specs=(_vmem(), _vmem()),
    )(h, context2, rec.astype(jnp.int32), visited_time.astype(jnp.int32),
      last_action.astype(jnp.int32), edge_len, gumbel,
      pp['wk_add'], pp['wk_mul'], pp['whidT'], pp['bhid'],
      pp['wm1T'], pp['bm1'], pp['wm2T'], pp['bm2'],
      pp['wq_all'], pp['w_gru'], pp['b_gru'], pp['init_query'], pp['geo'])

    return act_all, ll[:, 0], None


# ---------------------------------------------------------------------------
# main
# ---------------------------------------------------------------------------

if __name__ == "__main__":
    bs, gs, E = 2, 16, 32
    k_max = 3

    params = init_params(seed=42, E=E)
    pp = prepare_params(params, E)

    key = jax.random.PRNGKey(0)
    k_h, k_ctx, k_edge, k_perm, k_sample = jax.random.split(key, 5)

    h = jax.random.normal(k_h, (bs, gs, E), jnp.float32)
    context2 = jax.random.normal(k_ctx, (bs, 9), jnp.float32)
    edge_len = jnp.abs(jax.random.normal(k_edge, (bs, gs, gs), jnp.float32))

    # build tour successor pointers (rec) and visit order (visited_time)
    rec = jnp.zeros((bs, gs), jnp.int32)
    visited_time = jnp.zeros((bs, gs), jnp.int32)
    for b in range(bs):
        p = jax.random.permutation(jax.random.fold_in(k_perm, b), gs).astype(jnp.int32)
        rec = rec.at[b, p].set(jnp.roll(p, -1))
        visited_time = visited_time.at[b, p].set(jnp.arange(gs, dtype=jnp.int32))

    last_action = jnp.zeros((bs, 1), jnp.int32)

    action_all, ll, ent = kopt_decoder_forward(
        pp, k_max, h, rec, context2, visited_time, last_action,
        edge_len, k_sample)

    jax.block_until_ready(action_all)
    jax.block_until_ready(ll)
    assert action_all.shape == (bs, 3 * k_max)
    assert ll.shape == (bs,)
    assert bool(jnp.all((action_all >= 0) & (action_all < gs)))
    assert bool(jnp.all(jnp.isfinite(ll)))
    print("KERNEL_OK")
</pallas_src>

<mosaic_0001>
module attributes {stable_mosaic.version = 11 : i64} {
  func.func @_fused_decoder_kernel(%arg0: memref<2x16x32xf32, #tpu.memory_space<vmem>>, %arg1: memref<2x9xf32, #tpu.memory_space<vmem>>, %arg2: memref<2x16xi32, #tpu.memory_space<vmem>>, %arg3: memref<2x16xi32, #tpu.memory_space<vmem>>, %arg4: memref<2x1xi32, #tpu.memory_space<vmem>>, %arg5: memref<2x16x16xf32, #tpu.memory_space<vmem>>, %arg6: memref<3x2x16xf32, #tpu.memory_space<vmem>>, %arg7: memref<32x64xf32, #tpu.memory_space<vmem>>, %arg8: memref<32x64xf32, #tpu.memory_space<vmem>>, %arg9: memref<32x32xf32, #tpu.memory_space<vmem>>, %arg10: memref<1x32xf32, #tpu.memory_space<vmem>>, %arg11: memref<9x8xf32, #tpu.memory_space<vmem>>, %arg12: memref<1x8xf32, #tpu.memory_space<vmem>>, %arg13: memref<8x64xf32, #tpu.memory_space<vmem>>, %arg14: memref<1x64xf32, #tpu.memory_space<vmem>>, %arg15: memref<64x128xf32, #tpu.memory_space<vmem>>, %arg16: memref<128x384xf32, #tpu.memory_space<vmem>>, %arg17: memref<1x384xf32, #tpu.memory_space<vmem>>, %arg18: memref<1x32xf32, #tpu.memory_space<vmem>>, %arg19: memref<1x1xf32, #tpu.memory_space<vmem>>, %arg20: memref<2x9xi32, #tpu.memory_space<vmem>>, %arg21: memref<2x1xf32, #tpu.memory_space<vmem>>) attributes {dimension_semantics = [], scalar_prefetch = 0 : i64, scratch_operands = 0 : i64, tpu.core_type = #tpu.core_type<tc>} {
    %c0 = arith.constant 0 : index
    %c0_0 = arith.constant 0 : index
    %c0_1 = arith.constant 0 : index
    %0 = vector.load %arg0[%c0, %c0_0, %c0_1] : memref<2x16x32xf32, #tpu.memory_space<vmem>>, vector<2x16x32xf32>
    %1 = vector.shape_cast %0 : vector<2x16x32xf32> to vector<32x32xf32>
    %c0_2 = arith.constant 0 : index
    %c0_3 = arith.constant 0 : index
    %2 = vector.load %arg7[%c0_2, %c0_3] : memref<32x64xf32, #tpu.memory_space<vmem>>, vector<32x64xf32>
    %cst = arith.constant dense<0.000000e+00> : vector<32x64xf32>
    %3 = tpu.matmul %1, %2, %cst {dimension_numbers = #tpu.dot_dimension_numbers<[1], [0], [0], [1], [0, 0, 1, 1], [], []>} : vector<32x32xf32>, vector<32x64xf32>, vector<32x64xf32> -> vector<32x64xf32>
    %4 = vector.shape_cast %3 : vector<32x64xf32> to vector<2x16x64xf32>
    %c0_4 = arith.constant 0 : index
    %c0_5 = arith.constant 0 : index
    %5 = vector.load %arg8[%c0_4, %c0_5] : memref<32x64xf32, #tpu.memory_space<vmem>>, vector<32x64xf32>
    %cst_6 = arith.constant dense<0.000000e+00> : vector<32x64xf32>
    %6 = tpu.matmul %1, %5, %cst_6 {dimension_numbers = #tpu.dot_dimension_numbers<[1], [0], [0], [1], [0, 0, 1, 1], [], []>} : vector<32x32xf32>, vector<32x64xf32>, vector<32x64xf32> -> vector<32x64xf32>
    %7 = vector.shape_cast %6 : vector<32x64xf32> to vector<2x16x64xf32>
    %cst_7 = arith.constant dense<0.000000e+00> : vector<2x32xf32>
    %8 = vector.multi_reduction <add>, %0, %cst_7 [1] : vector<2x16x32xf32> to vector<2x32xf32>
    %cst_8 = arith.constant 1.600000e+01 : f32
    %9 = vector.broadcast %cst_8 : f32 to vector<2x32xf32>
    %10 = arith.divf %8, %9 : vector<2x32xf32>
    %c0_9 = arith.constant 0 : index
    %c0_10 = arith.constant 0 : index
    %11 = vector.load %arg9[%c0_9, %c0_10] : memref<32x32xf32, #tpu.memory_space<vmem>>, vector<32x32xf32>
    %cst_11 = arith.constant dense<0.000000e+00> : vector<2x32xf32>
    %12 = tpu.matmul %10, %11, %cst_11 {dimension_numbers = #tpu.dot_dimension_numbers<[1], [0], [0], [1], [0, 0, 1, 1], [], []>} : vector<2x32xf32>, vector<32x32xf32>, vector<2x32xf32> -> vector<2x32xf32>
    %c0_12 = arith.constant 0 : index
    %c0_13 = arith.constant 0 : index
    %13 = vector.load %arg10[%c0_12, %c0_13] : memref<1x32xf32, #tpu.memory_space<vmem>>, vector<1x32xf32>
    %14 = vector.broadcast %13 : vector<1x32xf32> to vector<2x32xf32>
    %15 = arith.addf %12, %14 : vector<2x32xf32>
    %c0_14 = arith.constant 0 : index
    %c0_15 = arith.constant 0 : index
    %16 = vector.load %arg1[%c0_14, %c0_15] : memref<2x9xf32, #tpu.memory_space<vmem>>, vector<2x9xf32>
    %c0_16 = arith.constant 0 : index
    %c0_17 = arith.constant 0 : index
    %17 = vector.load %arg11[%c0_16, %c0_17] : memref<9x8xf32, #tpu.memory_space<vmem>>, vector<9x8xf32>
    %cst_18 = arith.constant dense<0.000000e+00> : vector<2x8xf32>
    %18 = tpu.matmul %16, %17, %cst_18 {dimension_numbers = #tpu.dot_dimension_numbers<[1], [0], [0], [1], [0, 0, 1, 1], [], []>} : vector<2x9xf32>, vector<9x8xf32>, vector<2x8xf32> -> vector<2x8xf32>
    %c0_19 = arith.constant 0 : index
    %c0_20 = arith.constant 0 : index
    %19 = vector.load %arg12[%c0_19, %c0_20] : memref<1x8xf32, #tpu.memory_space<vmem>>, vector<1x8xf32>
    %20 = vector.broadcast %19 : vector<1x8xf32> to vector<2x8xf32>
    %21 = arith.addf %18, %20 : vector<2x8xf32>
    %cst_21 = arith.constant 0.000000e+00 : f32
    %22 = vector.broadcast %cst_21 : f32 to vector<2x8xf32>
    %23 = arith.maximumf %21, %22 : vector<2x8xf32>
    %c0_22 = arith.constant 0 : index
    %c0_23 = arith.constant 0 : index
    %24 = vector.load %arg13[%c0_22, %c0_23] : memref<8x64xf32, #tpu.memory_space<vmem>>, vector<8x64xf32>
    %cst_24 = arith.constant dense<0.000000e+00> : vector<2x64xf32>
    %25 = tpu.matmul %23, %24, %cst_24 {dimension_numbers = #tpu.dot_dimension_numbers<[1], [0], [0], [1], [0, 0, 1, 1], [], []>} : vector<2x8xf32>, vector<8x64xf32>, vector<2x64xf32> -> vector<2x64xf32>
    %c0_25 = arith.constant 0 : index
    %c0_26 = arith.constant 0 : index
    %26 = vector.load %arg14[%c0_25, %c0_26] : memref<1x64xf32, #tpu.memory_space<vmem>>, vector<1x64xf32>
    %27 = vector.broadcast %26 : vector<1x64xf32> to vector<2x64xf32>
    %28 = arith.addf %25, %27 : vector<2x64xf32>
    %29 = vector.shape_cast %28 : vector<2x64xf32> to vector<2x1x64xf32>
    %c0_27 = arith.constant 0 : index
    %c0_28 = arith.constant 0 : index
    %30 = vector.load %arg2[%c0_27, %c0_28] : memref<2x16xi32, #tpu.memory_space<vmem>>, vector<2x16xi32>
    %c0_29 = arith.constant 0 : index
    %c0_30 = arith.constant 0 : index
    %31 = vector.load %arg3[%c0_29, %c0_30] : memref<2x16xi32, #tpu.memory_space<vmem>>, vector<2x16xi32>
    %c0_31 = arith.constant 0 : index
    %c0_32 = arith.constant 0 : index
    %32 = vector.load %arg4[%c0_31, %c0_32] : memref<2x1xi32, #tpu.memory_space<vmem>>, vector<2x1xi32>
    %33 = tpu.iota {dimensions = array<i32: 2>} : vector<2x16x16xi32>
    %34 = vector.shape_cast %30 : vector<2x16xi32> to vector<2x16x1xi32>
    %35 = vector.broadcast %34 : vector<2x16x1xi32> to vector<2x16x16xi32>
    %36 = arith.cmpi eq, %33, %35 : vector<2x16x16xi32>
    %c0_33 = arith.constant 0 : index
    %c0_34 = arith.constant 0 : index
    %c0_35 = arith.constant 0 : index
    %37 = vector.load %arg5[%c0_33, %c0_34, %c0_35] : memref<2x16x16xf32, #tpu.memory_space<vmem>>, vector<2x16x16xf32>
    %cst_36 = arith.constant 0.000000e+00 : f32
    %38 = vector.broadcast %cst_36 : f32 to vector<2x16x16xf32>
    %39 = arith.select %36, %37, %38 : vector<2x16x16xi1>, vector<2x16x16xf32>
    %cst_37 = arith.constant dense<0.000000e+00> : vector<2x16xf32>
    %40 = vector.multi_reduction <add>, %39, %cst_37 [2] : vector<2x16x16xf32> to vector<2x16xf32>
    %c0_38 = arith.constant 0 : index
    %c0_39 = arith.constant 0 : index
    %41 = vector.load %arg19[%c0_38, %c0_39] : memref<1x1xf32, #tpu.memory_space<vmem>>, vector<1x1xf32>
    %42 = vector.broadcast %41 : vector<1x1xf32> to vector<2x16xf32>
    %43 = arith.mulf %40, %42 : vector<2x16xf32>
    %c0_40 = arith.constant 0 : index
    %c0_41 = arith.constant 0 : index
    %44 = vector.load %arg15[%c0_40, %c0_41] : memref<64x128xf32, #tpu.memory_space<vmem>>, vector<64x128xf32>
    %c0_42 = arith.constant 0 : index
    %c0_43 = arith.constant 0 : index
    %45 = vector.load %arg16[%c0_42, %c0_43] : memref<128x384xf32, #tpu.memory_space<vmem>>, vector<128x384xf32>
    %c0_44 = arith.constant 0 : index
    %c0_45 = arith.constant 0 : index
    %46 = vector.load %arg17[%c0_44, %c0_45] : memref<1x384xf32, #tpu.memory_space<vmem>>, vector<1x384xf32>
    %47 = tpu.iota {dimensions = array<i32: 1>} : vector<2x16xi32>
    %48 = tpu.iota {dimensions = array<i32: 1>} : vector<2x3xi32>
    %49 = tpu.iota {dimensions = array<i32: 1>} : vector<2x4xi32>
    %50 = tpu.concatenate %15, %15 in 1 : vector<2x32xf32>, vector<2x32xf32> -> vector<2x64xf32>
    %c0_46 = arith.constant 0 : index
    %c0_47 = arith.constant 0 : index
    %51 = vector.load %arg18[%c0_46, %c0_47] : memref<1x32xf32, #tpu.memory_space<vmem>>, vector<1x32xf32>
    %52 = vector.shape_cast %51 : vector<1x32xf32> to vector<1x32xf32>
    %53 = vector.broadcast %52 : vector<1x32xf32> to vector<2x32xf32>
    %54 = tpu.concatenate %53, %53 in 1 : vector<2x32xf32>, vector<2x32xf32> -> vector<2x64xf32>
    %c0_i32 = arith.constant 0 : i32
    %55 = vector.broadcast %c0_i32 : i32 to vector<2x16xi32>
    %c0_i32_48 = arith.constant 0 : i32
    %56 = vector.broadcast %c0_i32_48 : i32 to vector<2x16xi32>
    %c1_i32 = arith.constant 1 : i32
    %57 = vector.broadcast %c1_i32 : i32 to vector<2x1xi32>
    %c-1_i32 = arith.constant -1 : i32
    %58 = vector.broadcast %c-1_i32 : i32 to vector<2x1xi32>
    %cst_49 = arith.constant 0.000000e+00 : f32
    %59 = vector.broadcast %cst_49 : f32 to vector<2x1xf32>
    %c0_i32_50 = arith.constant 0 : i32
    %60 = vector.broadcast %c0_i32_50 : i32 to vector<2x3xi32>
    %c0_i32_51 = arith.constant 0 : i32
    %61 = vector.broadcast %c0_i32_51 : i32 to vector<2x4xi32>
    %c0_i32_52 = arith.constant 0 : i32
    %62 = vector.broadcast %c0_i32_52 : i32 to vector<2x3xi32>
    %c0_i32_53 = arith.constant 0 : i32
    %c0_i32_54 = arith.constant 0 : i32
    %63 = arith.cmpi eq, %c0_i32_53, %c0_i32_54 : i32
    %c1_i32_55 = arith.constant 1 : i32
    %c0_i32_56 = arith.constant 0 : i32
    %64 = arith.select %63, %c1_i32_55, %c0_i32_56 : i32
    %65 = vector.broadcast %64 : i32 to vector<2x16xi32>
    %c0_i32_57 = arith.constant 0 : i32
    %66 = vector.broadcast %c0_i32_57 : i32 to vector<2x16xi32>
    %67 = arith.cmpi sgt, %65, %66 : vector<2x16xi32>
    %68 = vector.broadcast %64 : i32 to vector<2x1xi32>
    %c0_i32_58 = arith.constant 0 : i32
    %69 = vector.broadcast %c0_i32_58 : i32 to vector<2x1xi32>
    %70 = arith.cmpi sgt, %68, %69 : vector<2x1xi32>
    %cst_59 = arith.constant dense<true> : vector<2x1xi1>
    %71 = arith.xori %70, %cst_59 : vector<2x1xi1>
    %72 = tpu.concatenate %54, %50 in 1 : vector<2x64xf32>, vector<2x64xf32> -> vector<2x128xf32>
    %cst_60 = arith.constant dense<0.000000e+00> : vector<2x384xf32>
    %73 = tpu.matmul %72, %45, %cst_60 {dimension_numbers = #tpu.dot_dimension_numbers<[1], [0], [0], [1], [0, 0, 1, 1], [], []>} : vector<2x128xf32>, vector<128x384xf32>, vector<2x384xf32> -> vector<2x384xf32>
    %74 = vector.broadcast %46 : vector<1x384xf32> to vector<2x384xf32>
    %75 = arith.addf %73, %74 : vector<2x384xf32>
    %76 = vector.extract_strided_slice %75 {offsets = [0, 0], sizes = [2, 64], strides = [1, 1]} : vector<2x384xf32> to vector<2x64xf32>
    %77 = vector.extract_strided_slice %75 {offsets = [0, 192], sizes = [2, 64], strides = [1, 1]} : vector<2x384xf32> to vector<2x64xf32>
    %78 = arith.addf %76, %77 : vector<2x64xf32>
    %79 = arith.negf %78 : vector<2x64xf32>
    %80 = math.exp %79 : vector<2x64xf32>
    %cst_61 = arith.constant 1.000000e+00 : f32
    %81 = vector.broadcast %cst_61 : f32 to vector<2x64xf32>
    %82 = arith.addf %81, %80 : vector<2x64xf32>
    %83 = arith.divf %81, %82 : vector<2x64xf32>
    %84 = vector.extract_strided_slice %75 {offsets = [0, 64], sizes = [2, 64], strides = [1, 1]} : vector<2x384xf32> to vector<2x64xf32>
    %85 = vector.extract_strided_slice %75 {offsets = [0, 256], sizes = [2, 64], strides = [1, 1]} : vector<2x384xf32> to vector<2x64xf32>
    %86 = arith.addf %84, %85 : vector<2x64xf32>
    %87 = arith.negf %86 : vector<2x64xf32>
    %88 = math.exp %87 : vector<2x64xf32>
    %cst_62 = arith.constant 1.000000e+00 : f32
    %89 = vector.broadcast %cst_62 : f32 to vector<2x64xf32>
    %90 = arith.addf %89, %88 : vector<2x64xf32>
    %91 = arith.divf %89, %90 : vector<2x64xf32>
    %92 = vector.extract_strided_slice %75 {offsets = [0, 128], sizes = [2, 64], strides = [1, 1]} : vector<2x384xf32> to vector<2x64xf32>
    %93 = vector.extract_strided_slice %75 {offsets = [0, 320], sizes = [2, 64], strides = [1, 1]} : vector<2x384xf32> to vector<2x64xf32>
    %94 = arith.mulf %83, %93 : vector<2x64xf32>
    %95 = arith.addf %92, %94 : vector<2x64xf32>
    %96 = math.tanh %95 : vector<2x64xf32>
    %cst_63 = arith.constant 1.000000e+00 : f32
    %97 = vector.broadcast %cst_63 : f32 to vector<2x64xf32>
    %98 = arith.subf %97, %91 : vector<2x64xf32>
    %99 = arith.mulf %98, %96 : vector<2x64xf32>
    %100 = arith.mulf %91, %50 : vector<2x64xf32>
    %101 = arith.addf %99, %100 : vector<2x64xf32>
    %cst_64 = arith.constant dense<0.000000e+00> : vector<2x128xf32>
    %102 = tpu.matmul %101, %44, %cst_64 {dimension_numbers = #tpu.dot_dimension_numbers<[1], [0], [0], [1], [0, 0, 1, 1], [], []>} : vector<2x64xf32>, vector<64x128xf32>, vector<2x128xf32> -> vector<2x128xf32>
    %103 = vector.extract_strided_slice %102 {offsets = [0, 0], sizes = [2, 64], strides = [1, 1]} : vector<2x128xf32> to vector<2x64xf32>
    %104 = vector.shape_cast %103 : vector<2x64xf32> to vector<2x1x64xf32>
    %105 = vector.extract_strided_slice %102 {offsets = [0, 64], sizes = [2, 64], strides = [1, 1]} : vector<2x128xf32> to vector<2x64xf32>
    %106 = vector.shape_cast %105 : vector<2x64xf32> to vector<2x1x64xf32>
    %107 = vector.broadcast %104 : vector<2x1x64xf32> to vector<2x16x64xf32>
    %108 = arith.addf %4, %107 : vector<2x16x64xf32>
    %109 = vector.broadcast %106 : vector<2x1x64xf32> to vector<2x16x64xf32>
    %110 = arith.mulf %7, %109 : vector<2x16x64xf32>
    %111 = arith.addf %108, %110 : vector<2x16x64xf32>
    %112 = math.tanh %111 : vector<2x16x64xf32>
    %113 = vector.broadcast %29 : vector<2x1x64xf32> to vector<2x16x64xf32>
    %114 = arith.mulf %113, %112 : vector<2x16x64xf32>
    %cst_65 = arith.constant dense<0.000000e+00> : vector<2x16xf32>
    %115 = vector.multi_reduction <add>, %114, %cst_65 [2] : vector<2x16x64xf32> to vector<2x16xf32>
    %116 = arith.addf %115, %43 : vector<2x16xf32>
    %117 = math.tanh %116 : vector<2x16xf32>
    %cst_66 = arith.constant 6.000000e+00 : f32
    %118 = vector.broadcast %cst_66 : f32 to vector<2x16xf32>
    %119 = arith.mulf %117, %118 : vector<2x16xf32>
    %c0_i32_67 = arith.constant 0 : i32
    %120 = vector.broadcast %c0_i32_67 : i32 to vector<2x16xi32>
    %121 = arith.cmpi sgt, %55, %120 : vector<2x16xi32>
    %cst_68 = arith.constant -1.000000e+30 : f32
    %122 = vector.broadcast %cst_68 : f32 to vector<2x16xf32>
    %123 = arith.select %121, %122, %119 : vector<2x16xi1>, vector<2x16xf32>
    %124 = vector.broadcast %32 : vector<2x1xi32> to vector<2x16xi32>
    %125 = arith.cmpi eq, %47, %124 : vector<2x16xi32>
    %126 = arith.andi %67, %125 : vector<2x16xi1>
    %cst_69 = arith.constant -1.000000e+30 : f32
    %127 = vector.broadcast %cst_69 : f32 to vector<2x16xf32>
    %128 = arith.select %126, %127, %123 : vector<2x16xi1>, vector<2x16xf32>
    %cst_70 = arith.constant dense<0xFF800000> : vector<2xf32>
    %129 = vector.multi_reduction <maximumf>, %128, %cst_70 [1] : vector<2x16xf32> to vector<2xf32>
    %130 = vector.shape_cast %129 : vector<2xf32> to vector<2x1xf32>
    %131 = vector.broadcast %130 : vector<2x1xf32> to vector<2x16xf32>
    %132 = arith.subf %128, %131 : vector<2x16xf32>
    %133 = math.exp %132 : vector<2x16xf32>
    %cst_71 = arith.constant dense<0.000000e+00> : vector<2xf32>
    %134 = vector.multi_reduction <add>, %133, %cst_71 [1] : vector<2x16xf32> to vector<2xf32>
    %135 = vector.shape_cast %134 : vector<2xf32> to vector<2x1xf32>
    %136 = tpu.reciprocal %135 {approx = true} : vector<2x1xf32> -> vector<2x1xf32>
    %137 = arith.index_cast %c0_i32_53 : i32 to index
    %c0_72 = arith.constant 0 : index
    %c0_73 = arith.constant 0 : index
    %138 = vector.load %arg6[%137, %c0_72, %c0_73] : memref<3x2x16xf32, #tpu.memory_space<vmem>>, vector<1x2x16xf32>
    %139 = vector.shape_cast %138 : vector<1x2x16xf32> to vector<2x16xf32>
    %140 = arith.addf %128, %139 : vector<2x16xf32>
    %cst_74 = arith.constant dense<0xFF800000> : vector<2xf32>
    %141 = vector.multi_reduction <maximumf>, %140, %cst_74 [1] : vector<2x16xf32> to vector<2xf32>
    %142 = vector.shape_cast %141 : vector<2xf32> to vector<2x1xf32>
    %143 = vector.broadcast %142 : vector<2x1xf32> to vector<2x16xf32>
    %144 = arith.cmpf oeq, %140, %143 : vector<2x16xf32>
    %c16_i32 = arith.constant 16 : i32
    %145 = vector.broadcast %c16_i32 : i32 to vector<2x16xi32>
    %146 = arith.select %144, %47, %145 : vector<2x16xi1>, vector<2x16xi32>
    %cst_75 = arith.constant dense<2147483647> : vector<2xi32>
    %147 = vector.multi_reduction <minsi>, %146, %cst_75 [1] : vector<2x16xi32> to vector<2xi32>
    %148 = vector.shape_cast %147 : vector<2xi32> to vector<2x1xi32>
    %cst_76 = arith.constant dense<0xFF800000> : vector<2xf32>
    %149 = vector.multi_reduction <maximumf>, %128, %cst_76 [1] : vector<2x16xf32> to vector<2xf32>
    %150 = vector.shape_cast %149 : vector<2xf32> to vector<2x1xf32>
    %151 = vector.broadcast %150 : vector<2x1xf32> to vector<2x16xf32>
    %152 = arith.cmpf oeq, %128, %151 : vector<2x16xf32>
    %c16_i32_77 = arith.constant 16 : i32
    %153 = vector.broadcast %c16_i32_77 : i32 to vector<2x16xi32>
    %154 = arith.select %152, %47, %153 : vector<2x16xi1>, vector<2x16xi32>
    %cst_78 = arith.constant dense<2147483647> : vector<2xi32>
    %155 = vector.multi_reduction <minsi>, %154, %cst_78 [1] : vector<2x16xi32> to vector<2xi32>
    %156 = vector.shape_cast %155 : vector<2xi32> to vector<2x1xi32>
    %cst_79 = arith.constant 1.000000e+00 : f32
    %157 = vector.broadcast %cst_79 : f32 to vector<2x1xf32>
    %158 = arith.subf %157, %136 : vector<2x1xf32>
    %cst_80 = arith.constant 9.99999974E-6 : f32
    %159 = vector.broadcast %cst_80 : f32 to vector<2x1xf32>
    %160 = arith.cmpf olt, %158, %159 : vector<2x1xf32>
    %161 = arith.select %160, %156, %148 : vector<2x1xi1>, vector<2x1xi32>
    %c0_i32_81 = arith.constant 0 : i32
    %162 = vector.broadcast %c0_i32_81 : i32 to vector<2x1xi32>
    %163 = arith.cmpi sgt, %57, %162 : vector<2x1xi32>
    %164 = vector.extract_strided_slice %60 {offsets = [0, 0], sizes = [2, 1], strides = [1, 1]} : vector<2x3xi32> to vector<2x1xi32>
    %165 = arith.andi %71, %163 : vector<2x1xi1>
    %166 = arith.select %165, %164, %161 : vector<2x1xi1>, vector<2x1xi32>
    %167 = vector.broadcast %166 : vector<2x1xi32> to vector<2x16xi32>
    %168 = arith.cmpi eq, %47, %167 : vector<2x16xi32>
    %cst_82 = arith.constant 0.000000e+00 : f32
    %169 = vector.broadcast %cst_82 : f32 to vector<2x16xf32>
    %170 = arith.select %168, %128, %169 : vector<2x16xi1>, vector<2x16xf32>
    %cst_83 = arith.constant dense<0.000000e+00> : vector<2xf32>
    %171 = vector.multi_reduction <add>, %170, %cst_83 [1] : vector<2x16xf32> to vector<2xf32>
    %172 = vector.shape_cast %171 : vector<2xf32> to vector<2x1xf32>
    %173 = arith.subf %172, %130 : vector<2x1xf32>
    %174 = math.log %135 : vector<2x1xf32>
    %175 = arith.subf %173, %174 : vector<2x1xf32>
    %176 = arith.andi %71, %163 : vector<2x1xi1>
    %cst_84 = arith.constant 0.000000e+00 : f32
    %177 = vector.broadcast %cst_84 : f32 to vector<2x1xf32>
    %178 = arith.select %176, %177, %175 : vector<2x1xi1>, vector<2x1xf32>
    %179 = arith.addf %59, %178 : vector<2x1xf32>
    %c0_i32_85 = arith.constant 0 : i32
    %180 = vector.broadcast %c0_i32_85 : i32 to vector<2x16xi32>
    %181 = arith.select %168, %30, %180 : vector<2x16xi1>, vector<2x16xi32>
    %cst_86 = arith.constant dense<0> : vector<2xi32>
    %182 = vector.multi_reduction <add>, %181, %cst_86 [1] : vector<2x16xi32> to vector<2xi32>
    %183 = vector.shape_cast %182 : vector<2xi32> to vector<2x1xi32>
    %c0_i32_87 = arith.constant 0 : i32
    %184 = arith.cmpi eq, %c0_i32_53, %c0_i32_87 : i32
    %c1_i32_88 = arith.constant 1 : i32
    %185 = arith.subi %c0_i32_53, %c1_i32_88 : i32
    %c2_i32 = arith.constant 2 : i32
    %186 = arith.select %184, %c2_i32, %185 : i32
    %c0_i32_89 = arith.constant 0 : i32
    %187 = arith.cmpi eq, %c0_i32_53, %c0_i32_89 : i32
    %c1_i32_90 = arith.constant 1 : i32
    %188 = arith.subi %c0_i32_53, %c1_i32_90 : i32
    %c3_i32 = arith.constant 3 : i32
    %189 = arith.select %187, %c3_i32, %188 : i32
    %190 = vector.shape_cast %57 : vector<2x1xi32> to vector<2x1xi32>
    %191 = vector.broadcast %190 : vector<2x1xi32> to vector<2x3xi32>
    %c0_i32_91 = arith.constant 0 : i32
    %192 = vector.broadcast %c0_i32_91 : i32 to vector<2x3xi32>
    %193 = arith.cmpi sgt, %191, %192 : vector<2x3xi32>
    %194 = vector.shape_cast %57 : vector<2x1xi32> to vector<2x1xi32>
    %195 = vector.broadcast %194 : vector<2x1xi32> to vector<2x4xi32>
    %c0_i32_92 = arith.constant 0 : i32
    %196 = vector.broadcast %c0_i32_92 : i32 to vector<2x4xi32>
    %197 = arith.cmpi sgt, %195, %196 : vector<2x4xi32>
    %198 = vector.broadcast %c0_i32_53 : i32 to vector<2x3xi32>
    %199 = arith.cmpi eq, %48, %198 : vector<2x3xi32>
    %200 = vector.shape_cast %166 : vector<2x1xi32> to vector<2x1xi32>
    %201 = vector.broadcast %200 : vector<2x1xi32> to vector<2x3xi32>
    %202 = arith.select %199, %201, %60 : vector<2x3xi1>, vector<2x3xi32>
    %203 = vector.broadcast %c0_i32_53 : i32 to vector<2x4xi32>
    %204 = arith.cmpi eq, %49, %203 : vector<2x4xi32>
    %205 = arith.andi %204, %197 : vector<2x4xi1>
    %206 = vector.shape_cast %166 : vector<2x1xi32> to vector<2x1xi32>
    %207 = vector.broadcast %206 : vector<2x1xi32> to vector<2x4xi32>
    %208 = arith.select %205, %207, %61 : vector<2x4xi1>, vector<2x4xi32>
    %209 = vector.broadcast %186 : i32 to vector<2x3xi32>
    %210 = arith.cmpi eq, %48, %209 : vector<2x3xi32>
    %cst_93 = arith.constant dense<true> : vector<2x3xi1>
    %211 = arith.xori %193, %cst_93 : vector<2x3xi1>
    %212 = arith.andi %210, %211 : vector<2x3xi1>
    %213 = vector.shape_cast %166 : vector<2x1xi32> to vector<2x1xi32>
    %214 = vector.broadcast %213 : vector<2x1xi32> to vector<2x3xi32>
    %215 = arith.select %212, %214, %62 : vector<2x3xi1>, vector<2x3xi32>
    %c1_i32_94 = arith.constant 1 : i32
    %216 = arith.addi %c0_i32_53, %c1_i32_94 : i32
    %217 = vector.broadcast %216 : i32 to vector<2x4xi32>
    %218 = arith.cmpi eq, %49, %217 : vector<2x4xi32>
    %219 = vector.shape_cast %183 : vector<2x1xi32> to vector<2x1xi32>
    %220 = vector.broadcast %219 : vector<2x1xi32> to vector<2x4xi32>
    %221 = arith.select %218, %220, %208 : vector<2x4xi1>, vector<2x4xi32>
    %222 = arith.extui %168 : vector<2x16xi1> to vector<2x16xi32>
    %223 = arith.sitofp %222 : vector<2x16xi32> to vector<2x16xf32>
    %224 = vector.shape_cast %223 : vector<2x16xf32> to vector<2x16x1xf32>
    %225 = vector.broadcast %224 : vector<2x16x1xf32> to vector<2x16x32xf32>
    %226 = arith.mulf %225, %0 : vector<2x16x32xf32>
    %cst_95 = arith.constant dense<0.000000e+00> : vector<2x32xf32>
    %227 = vector.multi_reduction <add>, %226, %cst_95 [1] : vector<2x16x32xf32> to vector<2x32xf32>
    %c0_i32_96 = arith.constant 0 : i32
    %228 = vector.broadcast %c0_i32_96 : i32 to vector<2x1xi32>
    %229 = arith.cmpi slt, %58, %228 : vector<2x1xi32>
    %c16_i32_97 = arith.constant 16 : i32
    %230 = vector.broadcast %c16_i32_97 : i32 to vector<2x1xi32>
    %231 = arith.addi %58, %230 : vector<2x1xi32>
    %232 = arith.select %229, %231, %58 : vector<2x1xi1>, vector<2x1xi32>
    %233 = vector.broadcast %232 : vector<2x1xi32> to vector<2x16xi32>
    %234 = arith.cmpi eq, %47, %233 : vector<2x16xi32>
    %235 = arith.extui %234 : vector<2x16xi1> to vector<2x16xi32>
    %236 = arith.sitofp %235 : vector<2x16xi32> to vector<2x16xf32>
    %237 = vector.shape_cast %236 : vector<2x16xf32> to vector<2x16x1xf32>
    %238 = vector.broadcast %237 : vector<2x16x1xf32> to vector<2x16x32xf32>
    %239 = arith.mulf %238, %0 : vector<2x16x32xf32>
    %cst_98 = arith.constant dense<0.000000e+00> : vector<2x32xf32>
    %240 = vector.multi_reduction <add>, %239, %cst_98 [1] : vector<2x16x32xf32> to vector<2x32xf32>
    %241 = vector.shape_cast %57 : vector<2x1xi32> to vector<2x1xi32>
    %242 = vector.broadcast %241 : vector<2x1xi32> to vector<2x32xi32>
    %c0_i32_99 = arith.constant 0 : i32
    %243 = vector.broadcast %c0_i32_99 : i32 to vector<2x32xi32>
    %244 = arith.cmpi sgt, %242, %243 : vector<2x32xi32>
    %245 = arith.select %244, %227, %240 : vector<2x32xi1>, vector<2x32xf32>
    %246 = tpu.concatenate %227, %245 in 1 : vector<2x32xf32>, vector<2x32xf32> -> vector<2x64xf32>
    %247 = arith.cmpi eq, %166, %58 : vector<2x1xi32>
    %248 = arith.ori %163, %247 : vector<2x1xi1>
    %249 = arith.select %71, %248, %247 : vector<2x1xi1>, vector<2x1xi1>
    %250 = arith.extui %249 : vector<2x1xi1> to vector<2x1xi32>
    %251 = vector.broadcast %189 : i32 to vector<2x4xi32>
    %252 = arith.cmpi eq, %49, %251 : vector<2x4xi32>
    %c0_i32_100 = arith.constant 0 : i32
    %253 = vector.broadcast %c0_i32_100 : i32 to vector<2x4xi32>
    %254 = arith.select %252, %221, %253 : vector<2x4xi1>, vector<2x4xi32>
    %cst_101 = arith.constant dense<0> : vector<2xi32>
    %255 = vector.multi_reduction <add>, %254, %cst_101 [1] : vector<2x4xi32> to vector<2xi32>
    %256 = vector.shape_cast %255 : vector<2xi32> to vector<2x1xi32>
    %257 = vector.broadcast %186 : i32 to vector<2x3xi32>
    %258 = arith.cmpi eq, %48, %257 : vector<2x3xi32>
    %c0_i32_102 = arith.constant 0 : i32
    %259 = vector.broadcast %c0_i32_102 : i32 to vector<2x3xi32>
    %260 = arith.select %258, %215, %259 : vector<2x3xi1>, vector<2x3xi32>
    %cst_103 = arith.constant dense<0> : vector<2xi32>
    %261 = vector.multi_reduction <add>, %260, %cst_103 [1] : vector<2x3xi32> to vector<2xi32>
    %262 = vector.shape_cast %261 : vector<2xi32> to vector<2x1xi32>
    %263 = vector.shape_cast %250 : vector<2x1xi32> to vector<2x1xi32>
    %264 = vector.broadcast %263 : vector<2x1xi32> to vector<2x4xi32>
    %c0_i32_104 = arith.constant 0 : i32
    %265 = vector.broadcast %c0_i32_104 : i32 to vector<2x4xi32>
    %266 = arith.cmpi sgt, %264, %265 : vector<2x4xi32>
    %267 = vector.shape_cast %250 : vector<2x1xi32> to vector<2x1xi32>
    %268 = vector.broadcast %267 : vector<2x1xi32> to vector<2x3xi32>
    %c0_i32_105 = arith.constant 0 : i32
    %269 = vector.broadcast %c0_i32_105 : i32 to vector<2x3xi32>
    %270 = arith.cmpi sgt, %268, %269 : vector<2x3xi32>
    %271 = vector.shape_cast %250 : vector<2x1xi32> to vector<2x1xi32>
    %272 = vector.broadcast %271 : vector<2x1xi32> to vector<2x16xi32>
    %c0_i32_106 = arith.constant 0 : i32
    %273 = vector.broadcast %c0_i32_106 : i32 to vector<2x16xi32>
    %274 = arith.cmpi sgt, %272, %273 : vector<2x16xi32>
    %275 = vector.broadcast %c0_i32_53 : i32 to vector<2x4xi32>
    %276 = arith.cmpi eq, %49, %275 : vector<2x4xi32>
    %277 = arith.andi %276, %266 : vector<2x4xi1>
    %278 = vector.shape_cast %256 : vector<2x1xi32> to vector<2x1xi32>
    %279 = vector.broadcast %278 : vector<2x1xi32> to vector<2x4xi32>
    %280 = arith.select %277, %279, %221 : vector<2x4xi1>, vector<2x4xi32>
    %281 = vector.broadcast %c0_i32_53 : i32 to vector<2x3xi32>
    %282 = arith.cmpi eq, %48, %281 : vector<2x3xi32>
    %283 = arith.andi %282, %270 : vector<2x3xi1>
    %284 = vector.shape_cast %262 : vector<2x1xi32> to vector<2x1xi32>
    %285 = vector.broadcast %284 : vector<2x1xi32> to vector<2x3xi32>
    %286 = arith.select %283, %285, %215 : vector<2x3xi1>, vector<2x3xi32>
    %c0_i32_107 = arith.constant 0 : i32
    %287 = vector.broadcast %c0_i32_107 : i32 to vector<2x16xi32>
    %288 = arith.select %168, %31, %287 : vector<2x16xi1>, vector<2x16xi32>
    %cst_108 = arith.constant dense<0> : vector<2xi32>
    %289 = vector.multi_reduction <add>, %288, %cst_108 [1] : vector<2x16xi32> to vector<2xi32>
    %290 = vector.shape_cast %289 : vector<2xi32> to vector<2x1xi32>
    %291 = vector.broadcast %290 : vector<2x1xi32> to vector<2x16xi32>
    %292 = arith.subi %31, %291 : vector<2x16xi32>
    %c0_i32_109 = arith.constant 0 : i32
    %293 = vector.broadcast %c0_i32_109 : i32 to vector<2x16xi32>
    %294 = arith.cmpi slt, %292, %293 : vector<2x16xi32>
    %c16_i32_110 = arith.constant 16 : i32
    %295 = vector.broadcast %c16_i32_110 : i32 to vector<2x16xi32>
    %296 = arith.addi %292, %295 : vector<2x16xi32>
    %297 = arith.select %294, %296, %292 : vector<2x16xi1>, vector<2x16xi32>
    %298 = arith.select %67, %297, %56 : vector<2x16xi1>, vector<2x16xi32>
    %c0_i32_111 = arith.constant 0 : i32
    %299 = vector.broadcast %c0_i32_111 : i32 to vector<2x16xi32>
    %300 = arith.select %168, %298, %299 : vector<2x16xi1>, vector<2x16xi32>
    %cst_112 = arith.constant dense<0> : vector<2xi32>
    %301 = vector.multi_reduction <add>, %300, %cst_112 [1] : vector<2x16xi32> to vector<2xi32>
    %302 = vector.shape_cast %301 : vector<2xi32> to vector<2x1xi32>
    %303 = vector.broadcast %302 : vector<2x1xi32> to vector<2x16xi32>
    %304 = arith.cmpi sle, %298, %303 : vector<2x16xi32>
    %c14_i32 = arith.constant 14 : i32
    %305 = vector.broadcast %c14_i32 : i32 to vector<2x16xi32>
    %306 = arith.cmpi sgt, %298, %305 : vector<2x16xi32>
    %307 = arith.andi %67, %306 : vector<2x16xi1>
    %308 = arith.ori %304, %307 : vector<2x16xi1>
    %309 = arith.andi %168, %274 : vector<2x16xi1>
    %cst_113 = arith.constant dense<true> : vector<2x16xi1>
    %310 = arith.xori %309, %cst_113 : vector<2x16xi1>
    %311 = arith.andi %308, %310 : vector<2x16xi1>
    %312 = vector.extract_strided_slice %202 {offsets = [0, 0], sizes = [2, 1], strides = [1, 1]} : vector<2x3xi32> to vector<2x1xi32>
    %cst_114 = arith.constant dense<true> : vector<2x1xi1>
    %313 = arith.xori %249, %cst_114 : vector<2x1xi1>
    %314 = arith.cmpi eq, %183, %312 : vector<2x1xi32>
    %315 = arith.andi %313, %314 : vector<2x1xi1>
    %316 = arith.extui %315 : vector<2x1xi1> to vector<2x1xi32>
    %317 = vector.shape_cast %316 : vector<2x1xi32> to vector<2x1xi32>
    %318 = vector.broadcast %317 : vector<2x1xi32> to vector<2x16xi32>
    %c0_i32_115 = arith.constant 0 : i32
    %319 = vector.broadcast %c0_i32_115 : i32 to vector<2x16xi32>
    %320 = arith.cmpi sgt, %318, %319 : vector<2x16xi32>
    %321 = vector.broadcast %312 : vector<2x1xi32> to vector<2x16xi32>
    %322 = arith.cmpi eq, %47, %321 : vector<2x16xi32>
    %323 = arith.andi %322, %320 : vector<2x16xi1>
    %cst_116 = arith.constant dense<true> : vector<2x16xi1>
    %324 = arith.xori %323, %cst_116 : vector<2x16xi1>
    %325 = arith.andi %311, %324 : vector<2x16xi1>
    %326 = arith.extui %325 : vector<2x16xi1> to vector<2x16xi32>
    %c-1_i32_117 = arith.constant -1 : i32
    %327 = vector.broadcast %c-1_i32_117 : i32 to vector<2x1xi32>
    %328 = arith.select %249, %327, %183 : vector<2x1xi1>, vector<2x1xi32>
    %c1_i32_118 = arith.constant 1 : i32
    %c0_i32_119 = arith.constant 0 : i32
    %329 = arith.cmpi eq, %c1_i32_118, %c0_i32_119 : i32
    %c1_i32_120 = arith.constant 1 : i32
    %c0_i32_121 = arith.constant 0 : i32
    %330 = arith.select %329, %c1_i32_120, %c0_i32_121 : i32
    %331 = vector.broadcast %330 : i32 to vector<2x16xi32>
    %c0_i32_122 = arith.constant 0 : i32
    %332 = vector.broadcast %c0_i32_122 : i32 to vector<2x16xi32>
    %333 = arith.cmpi sgt, %331, %332 : vector<2x16xi32>
    %334 = vector.broadcast %330 : i32 to vector<2x1xi32>
    %c0_i32_123 = arith.constant 0 : i32
    %335 = vector.broadcast %c0_i32_123 : i32 to vector<2x1xi32>
    %336 = arith.cmpi sgt, %334, %335 : vector<2x1xi32>
    %cst_124 = arith.constant dense<true> : vector<2x1xi1>
    %337 = arith.xori %336, %cst_124 : vector<2x1xi1>
    %338 = tpu.concatenate %246, %101 in 1 : vector<2x64xf32>, vector<2x64xf32> -> vector<2x128xf32>
    %cst_125 = arith.constant dense<0.000000e+00> : vector<2x384xf32>
    %339 = tpu.matmul %338, %45, %cst_125 {dimension_numbers = #tpu.dot_dimension_numbers<[1], [0], [0], [1], [0, 0, 1, 1], [], []>} : vector<2x128xf32>, vector<128x384xf32>, vector<2x384xf32> -> vector<2x384xf32>
    %340 = vector.broadcast %46 : vector<1x384xf32> to vector<2x384xf32>
    %341 = arith.addf %339, %340 : vector<2x384xf32>
    %342 = vector.extract_strided_slice %341 {offsets = [0, 0], sizes = [2, 64], strides = [1, 1]} : vector<2x384xf32> to vector<2x64xf32>
    %343 = vector.extract_strided_slice %341 {offsets = [0, 192], sizes = [2, 64], strides = [1, 1]} : vector<2x384xf32> to vector<2x64xf32>
    %344 = arith.addf %342, %343 : vector<2x64xf32>
    %345 = arith.negf %344 : vector<2x64xf32>
    %346 = math.exp %345 : vector<2x64xf32>
    %cst_126 = arith.constant 1.000000e+00 : f32
    %347 = vector.broadcast %cst_126 : f32 to vector<2x64xf32>
    %348 = arith.addf %347, %346 : vector<2x64xf32>
    %349 = arith.divf %347, %348 : vector<2x64xf32>
    %350 = vector.extract_strided_slice %341 {offsets = [0, 64], sizes = [2, 64], strides = [1, 1]} : vector<2x384xf32> to vector<2x64xf32>
    %351 = vector.extract_strided_slice %341 {offsets = [0, 256], sizes = [2, 64], strides = [1, 1]} : vector<2x384xf32> to vector<2x64xf32>
    %352 = arith.addf %350, %351 : vector<2x64xf32>
    %353 = arith.negf %352 : vector<2x64xf32>
    %354 = math.exp %353 : vector<2x64xf32>
    %cst_127 = arith.constant 1.000000e+00 : f32
    %355 = vector.broadcast %cst_127 : f32 to vector<2x64xf32>
    %356 = arith.addf %355, %354 : vector<2x64xf32>
    %357 = arith.divf %355, %356 : vector<2x64xf32>
    %358 = vector.extract_strided_slice %341 {offsets = [0, 128], sizes = [2, 64], strides = [1, 1]} : vector<2x384xf32> to vector<2x64xf32>
    %359 = vector.extract_strided_slice %341 {offsets = [0, 320], sizes = [2, 64], strides = [1, 1]} : vector<2x384xf32> to vector<2x64xf32>
    %360 = arith.mulf %349, %359 : vector<2x64xf32>
    %361 = arith.addf %358, %360 : vector<2x64xf32>
    %362 = math.tanh %361 : vector<2x64xf32>
    %cst_128 = arith.constant 1.000000e+00 : f32
    %363 = vector.broadcast %cst_128 : f32 to vector<2x64xf32>
    %364 = arith.subf %363, %357 : vector<2x64xf32>
    %365 = arith.mulf %364, %362 : vector<2x64xf32>
    %366 = arith.mulf %357, %101 : vector<2x64xf32>
    %367 = arith.addf %365, %366 : vector<2x64xf32>
    %cst_129 = arith.constant dense<0.000000e+00> : vector<2x128xf32>
    %368 = tpu.matmul %367, %44, %cst_129 {dimension_numbers = #tpu.dot_dimension_numbers<[1], [0], [0], [1], [0, 0, 1, 1], [], []>} : vector<2x64xf32>, vector<64x128xf32>, vector<2x128xf32> -> vector<2x128xf32>
    %369 = vector.extract_strided_slice %368 {offsets = [0, 0], sizes = [2, 64], strides = [1, 1]} : vector<2x128xf32> to vector<2x64xf32>
    %370 = vector.shape_cast %369 : vector<2x64xf32> to vector<2x1x64xf32>
    %371 = vector.extract_strided_slice %368 {offsets = [0, 64], sizes = [2, 64], strides = [1, 1]} : vector<2x128xf32> to vector<2x64xf32>
    %372 = vector.shape_cast %371 : vector<2x64xf32> to vector<2x1x64xf32>
    %373 = vector.broadcast %370 : vector<2x1x64xf32> to vector<2x16x64xf32>
    %374 = arith.addf %4, %373 : vector<2x16x64xf32>
    %375 = vector.broadcast %372 : vector<2x1x64xf32> to vector<2x16x64xf32>
    %376 = arith.mulf %7, %375 : vector<2x16x64xf32>
    %377 = arith.addf %374, %376 : vector<2x16x64xf32>
    %378 = math.tanh %377 : vector<2x16x64xf32>
    %379 = vector.broadcast %29 : vector<2x1x64xf32> to vector<2x16x64xf32>
    %380 = arith.mulf %379, %378 : vector<2x16x64xf32>
    %cst_130 = arith.constant dense<0.000000e+00> : vector<2x16xf32>
    %381 = vector.multi_reduction <add>, %380, %cst_130 [2] : vector<2x16x64xf32> to vector<2x16xf32>
    %382 = arith.addf %381, %43 : vector<2x16xf32>
    %383 = math.tanh %382 : vector<2x16xf32>
    %cst_131 = arith.constant 6.000000e+00 : f32
    %384 = vector.broadcast %cst_131 : f32 to vector<2x16xf32>
    %385 = arith.mulf %383, %384 : vector<2x16xf32>
    %c0_i32_132 = arith.constant 0 : i32
    %386 = vector.broadcast %c0_i32_132 : i32 to vector<2x16xi32>
    %387 = arith.cmpi sgt, %326, %386 : vector<2x16xi32>
    %cst_133 = arith.constant -1.000000e+30 : f32
    %388 = vector.broadcast %cst_133 : f32 to vector<2x16xf32>
    %389 = arith.select %387, %388, %385 : vector<2x16xi1>, vector<2x16xf32>
    %390 = vector.broadcast %32 : vector<2x1xi32> to vector<2x16xi32>
    %391 = arith.cmpi eq, %47, %390 : vector<2x16xi32>
    %392 = arith.andi %333, %391 : vector<2x16xi1>
    %cst_134 = arith.constant -1.000000e+30 : f32
    %393 = vector.broadcast %cst_134 : f32 to vector<2x16xf32>
    %394 = arith.select %392, %393, %389 : vector<2x16xi1>, vector<2x16xf32>
    %cst_135 = arith.constant dense<0xFF800000> : vector<2xf32>
    %395 = vector.multi_reduction <maximumf>, %394, %cst_135 [1] : vector<2x16xf32> to vector<2xf32>
    %396 = vector.shape_cast %395 : vector<2xf32> to vector<2x1xf32>
    %397 = vector.broadcast %396 : vector<2x1xf32> to vector<2x16xf32>
    %398 = arith.subf %394, %397 : vector<2x16xf32>
    %399 = math.exp %398 : vector<2x16xf32>
    %cst_136 = arith.constant dense<0.000000e+00> : vector<2xf32>
    %400 = vector.multi_reduction <add>, %399, %cst_136 [1] : vector<2x16xf32> to vector<2xf32>
    %401 = vector.shape_cast %400 : vector<2xf32> to vector<2x1xf32>
    %402 = tpu.reciprocal %401 {approx = true} : vector<2x1xf32> -> vector<2x1xf32>
    %403 = arith.index_cast %c1_i32_118 : i32 to index
    %c0_137 = arith.constant 0 : index
    %c0_138 = arith.constant 0 : index
    %404 = vector.load %arg6[%403, %c0_137, %c0_138] : memref<3x2x16xf32, #tpu.memory_space<vmem>>, vector<1x2x16xf32>
    %405 = vector.shape_cast %404 : vector<1x2x16xf32> to vector<2x16xf32>
    %406 = arith.addf %394, %405 : vector<2x16xf32>
    %cst_139 = arith.constant dense<0xFF800000> : vector<2xf32>
    %407 = vector.multi_reduction <maximumf>, %406, %cst_139 [1] : vector<2x16xf32> to vector<2xf32>
    %408 = vector.shape_cast %407 : vector<2xf32> to vector<2x1xf32>
    %409 = vector.broadcast %408 : vector<2x1xf32> to vector<2x16xf32>
    %410 = arith.cmpf oeq, %406, %409 : vector<2x16xf32>
    %c16_i32_140 = arith.constant 16 : i32
    %411 = vector.broadcast %c16_i32_140 : i32 to vector<2x16xi32>
    %412 = arith.select %410, %47, %411 : vector<2x16xi1>, vector<2x16xi32>
    %cst_141 = arith.constant dense<2147483647> : vector<2xi32>
    %413 = vector.multi_reduction <minsi>, %412, %cst_141 [1] : vector<2x16xi32> to vector<2xi32>
    %414 = vector.shape_cast %413 : vector<2xi32> to vector<2x1xi32>
    %cst_142 = arith.constant dense<0xFF800000> : vector<2xf32>
    %415 = vector.multi_reduction <maximumf>, %394, %cst_142 [1] : vector<2x16xf32> to vector<2xf32>
    %416 = vector.shape_cast %415 : vector<2xf32> to vector<2x1xf32>
    %417 = vector.broadcast %416 : vector<2x1xf32> to vector<2x16xf32>
    %418 = arith.cmpf oeq, %394, %417 : vector<2x16xf32>
    %c16_i32_143 = arith.constant 16 : i32
    %419 = vector.broadcast %c16_i32_143 : i32 to vector<2x16xi32>
    %420 = arith.select %418, %47, %419 : vector<2x16xi1>, vector<2x16xi32>
    %cst_144 = arith.constant dense<2147483647> : vector<2xi32>
    %421 = vector.multi_reduction <minsi>, %420, %cst_144 [1] : vector<2x16xi32> to vector<2xi32>
    %422 = vector.shape_cast %421 : vector<2xi32> to vector<2x1xi32>
    %cst_145 = arith.constant 1.000000e+00 : f32
    %423 = vector.broadcast %cst_145 : f32 to vector<2x1xf32>
    %424 = arith.subf %423, %402 : vector<2x1xf32>
    %cst_146 = arith.constant 9.99999974E-6 : f32
    %425 = vector.broadcast %cst_146 : f32 to vector<2x1xf32>
    %426 = arith.cmpf olt, %424, %425 : vector<2x1xf32>
    %427 = arith.select %426, %422, %414 : vector<2x1xi1>, vector<2x1xi32>
    %c0_i32_147 = arith.constant 0 : i32
    %428 = vector.broadcast %c0_i32_147 : i32 to vector<2x1xi32>
    %429 = arith.cmpi sgt, %250, %428 : vector<2x1xi32>
    %430 = vector.extract_strided_slice %202 {offsets = [0, 0], sizes = [2, 1], strides = [1, 1]} : vector<2x3xi32> to vector<2x1xi32>
    %431 = arith.andi %337, %429 : vector<2x1xi1>
    %432 = arith.select %431, %430, %427 : vector<2x1xi1>, vector<2x1xi32>
    %433 = vector.broadcast %432 : vector<2x1xi32> to vector<2x16xi32>
    %434 = arith.cmpi eq, %47, %433 : vector<2x16xi32>
    %cst_148 = arith.constant 0.000000e+00 : f32
    %435 = vector.broadcast %cst_148 : f32 to vector<2x16xf32>
    %436 = arith.select %434, %394, %435 : vector<2x16xi1>, vector<2x16xf32>
    %cst_149 = arith.constant dense<0.000000e+00> : vector<2xf32>
    %437 = vector.multi_reduction <add>, %436, %cst_149 [1] : vector<2x16xf32> to vector<2xf32>
    %438 = vector.shape_cast %437 : vector<2xf32> to vector<2x1xf32>
    %439 = arith.subf %438, %396 : vector<2x1xf32>
    %440 = math.log %401 : vector<2x1xf32>
    %441 = arith.subf %439, %440 : vector<2x1xf32>
    %442 = arith.andi %337, %429 : vector<2x1xi1>
    %cst_150 = arith.constant 0.000000e+00 : f32
    %443 = vector.broadcast %cst_150 : f32 to vector<2x1xf32>
    %444 = arith.select %442, %443, %441 : vector<2x1xi1>, vector<2x1xf32>
    %445 = arith.addf %179, %444 : vector<2x1xf32>
    %c0_i32_151 = arith.constant 0 : i32
    %446 = vector.broadcast %c0_i32_151 : i32 to vector<2x16xi32>
    %447 = arith.select %434, %30, %446 : vector<2x16xi1>, vector<2x16xi32>
    %cst_152 = arith.constant dense<0> : vector<2xi32>
    %448 = vector.multi_reduction <add>, %447, %cst_152 [1] : vector<2x16xi32> to vector<2xi32>
    %449 = vector.shape_cast %448 : vector<2xi32> to vector<2x1xi32>
    %c0_i32_153 = arith.constant 0 : i32
    %450 = arith.cmpi eq, %c1_i32_118, %c0_i32_153 : i32
    %c1_i32_154 = arith.constant 1 : i32
    %451 = arith.subi %c1_i32_118, %c1_i32_154 : i32
    %c2_i32_155 = arith.constant 2 : i32
    %452 = arith.select %450, %c2_i32_155, %451 : i32
    %c0_i32_156 = arith.constant 0 : i32
    %453 = arith.cmpi eq, %c1_i32_118, %c0_i32_156 : i32
    %c1_i32_157 = arith.constant 1 : i32
    %454 = arith.subi %c1_i32_118, %c1_i32_157 : i32
    %c3_i32_158 = arith.constant 3 : i32
    %455 = arith.select %453, %c3_i32_158, %454 : i32
    %456 = vector.shape_cast %250 : vector<2x1xi32> to vector<2x1xi32>
    %457 = vector.broadcast %456 : vector<2x1xi32> to vector<2x3xi32>
    %c0_i32_159 = arith.constant 0 : i32
    %458 = vector.broadcast %c0_i32_159 : i32 to vector<2x3xi32>
    %459 = arith.cmpi sgt, %457, %458 : vector<2x3xi32>
    %460 = vector.shape_cast %250 : vector<2x1xi32> to vector<2x1xi32>
    %461 = vector.broadcast %460 : vector<2x1xi32> to vector<2x4xi32>
    %c0_i32_160 = arith.constant 0 : i32
    %462 = vector.broadcast %c0_i32_160 : i32 to vector<2x4xi32>
    %463 = arith.cmpi sgt, %461, %462 : vector<2x4xi32>
    %464 = vector.broadcast %c1_i32_118 : i32 to vector<2x3xi32>
    %465 = arith.cmpi eq, %48, %464 : vector<2x3xi32>
    %466 = vector.shape_cast %432 : vector<2x1xi32> to vector<2x1xi32>
    %467 = vector.broadcast %466 : vector<2x1xi32> to vector<2x3xi32>
    %468 = arith.select %465, %467, %202 : vector<2x3xi1>, vector<2x3xi32>
    %469 = vector.broadcast %c1_i32_118 : i32 to vector<2x4xi32>
    %470 = arith.cmpi eq, %49, %469 : vector<2x4xi32>
    %471 = arith.andi %470, %463 : vector<2x4xi1>
    %472 = vector.shape_cast %432 : vector<2x1xi32> to vector<2x1xi32>
    %473 = vector.broadcast %472 : vector<2x1xi32> to vector<2x4xi32>
    %474 = arith.select %471, %473, %280 : vector<2x4xi1>, vector<2x4xi32>
    %475 = vector.broadcast %452 : i32 to vector<2x3xi32>
    %476 = arith.cmpi eq, %48, %475 : vector<2x3xi32>
    %cst_161 = arith.constant dense<true> : vector<2x3xi1>
    %477 = arith.xori %459, %cst_161 : vector<2x3xi1>
    %478 = arith.andi %476, %477 : vector<2x3xi1>
    %479 = vector.shape_cast %432 : vector<2x1xi32> to vector<2x1xi32>
    %480 = vector.broadcast %479 : vector<2x1xi32> to vector<2x3xi32>
    %481 = arith.select %478, %480, %286 : vector<2x3xi1>, vector<2x3xi32>
    %c1_i32_162 = arith.constant 1 : i32
    %482 = arith.addi %c1_i32_118, %c1_i32_162 : i32
    %483 = vector.broadcast %482 : i32 to vector<2x4xi32>
    %484 = arith.cmpi eq, %49, %483 : vector<2x4xi32>
    %485 = vector.shape_cast %449 : vector<2x1xi32> to vector<2x1xi32>
    %486 = vector.broadcast %485 : vector<2x1xi32> to vector<2x4xi32>
    %487 = arith.select %484, %486, %474 : vector<2x4xi1>, vector<2x4xi32>
    %488 = arith.extui %434 : vector<2x16xi1> to vector<2x16xi32>
    %489 = arith.sitofp %488 : vector<2x16xi32> to vector<2x16xf32>
    %490 = vector.shape_cast %489 : vector<2x16xf32> to vector<2x16x1xf32>
    %491 = vector.broadcast %490 : vector<2x16x1xf32> to vector<2x16x32xf32>
    %492 = arith.mulf %491, %0 : vector<2x16x32xf32>
    %cst_163 = arith.constant dense<0.000000e+00> : vector<2x32xf32>
    %493 = vector.multi_reduction <add>, %492, %cst_163 [1] : vector<2x16x32xf32> to vector<2x32xf32>
    %c0_i32_164 = arith.constant 0 : i32
    %494 = vector.broadcast %c0_i32_164 : i32 to vector<2x1xi32>
    %495 = arith.cmpi slt, %328, %494 : vector<2x1xi32>
    %c16_i32_165 = arith.constant 16 : i32
    %496 = vector.broadcast %c16_i32_165 : i32 to vector<2x1xi32>
    %497 = arith.addi %328, %496 : vector<2x1xi32>
    %498 = arith.select %495, %497, %328 : vector<2x1xi1>, vector<2x1xi32>
    %499 = vector.broadcast %498 : vector<2x1xi32> to vector<2x16xi32>
    %500 = arith.cmpi eq, %47, %499 : vector<2x16xi32>
    %501 = arith.extui %500 : vector<2x16xi1> to vector<2x16xi32>
    %502 = arith.sitofp %501 : vector<2x16xi32> to vector<2x16xf32>
    %503 = vector.shape_cast %502 : vector<2x16xf32> to vector<2x16x1xf32>
    %504 = vector.broadcast %503 : vector<2x16x1xf32> to vector<2x16x32xf32>
    %505 = arith.mulf %504, %0 : vector<2x16x32xf32>
    %cst_166 = arith.constant dense<0.000000e+00> : vector<2x32xf32>
    %506 = vector.multi_reduction <add>, %505, %cst_166 [1] : vector<2x16x32xf32> to vector<2x32xf32>
    %507 = vector.shape_cast %250 : vector<2x1xi32> to vector<2x1xi32>
    %508 = vector.broadcast %507 : vector<2x1xi32> to vector<2x32xi32>
    %c0_i32_167 = arith.constant 0 : i32
    %509 = vector.broadcast %c0_i32_167 : i32 to vector<2x32xi32>
    %510 = arith.cmpi sgt, %508, %509 : vector<2x32xi32>
    %511 = arith.select %510, %493, %506 : vector<2x32xi1>, vector<2x32xf32>
    %512 = tpu.concatenate %493, %511 in 1 : vector<2x32xf32>, vector<2x32xf32> -> vector<2x64xf32>
    %513 = arith.cmpi eq, %432, %328 : vector<2x1xi32>
    %514 = arith.ori %429, %513 : vector<2x1xi1>
    %515 = arith.select %337, %514, %513 : vector<2x1xi1>, vector<2x1xi1>
    %516 = arith.extui %515 : vector<2x1xi1> to vector<2x1xi32>
    %517 = vector.broadcast %455 : i32 to vector<2x4xi32>
    %518 = arith.cmpi eq, %49, %517 : vector<2x4xi32>
    %c0_i32_168 = arith.constant 0 : i32
    %519 = vector.broadcast %c0_i32_168 : i32 to vector<2x4xi32>
    %520 = arith.select %518, %487, %519 : vector<2x4xi1>, vector<2x4xi32>
    %cst_169 = arith.constant dense<0> : vector<2xi32>
    %521 = vector.multi_reduction <add>, %520, %cst_169 [1] : vector<2x4xi32> to vector<2xi32>
    %522 = vector.shape_cast %521 : vector<2xi32> to vector<2x1xi32>
    %523 = vector.broadcast %452 : i32 to vector<2x3xi32>
    %524 = arith.cmpi eq, %48, %523 : vector<2x3xi32>
    %c0_i32_170 = arith.constant 0 : i32
    %525 = vector.broadcast %c0_i32_170 : i32 to vector<2x3xi32>
    %526 = arith.select %524, %481, %525 : vector<2x3xi1>, vector<2x3xi32>
    %cst_171 = arith.constant dense<0> : vector<2xi32>
    %527 = vector.multi_reduction <add>, %526, %cst_171 [1] : vector<2x3xi32> to vector<2xi32>
    %528 = vector.shape_cast %527 : vector<2xi32> to vector<2x1xi32>
    %529 = vector.shape_cast %516 : vector<2x1xi32> to vector<2x1xi32>
    %530 = vector.broadcast %529 : vector<2x1xi32> to vector<2x4xi32>
    %c0_i32_172 = arith.constant 0 : i32
    %531 = vector.broadcast %c0_i32_172 : i32 to vector<2x4xi32>
    %532 = arith.cmpi sgt, %530, %531 : vector<2x4xi32>
    %533 = vector.shape_cast %516 : vector<2x1xi32> to vector<2x1xi32>
    %534 = vector.broadcast %533 : vector<2x1xi32> to vector<2x3xi32>
    %c0_i32_173 = arith.constant 0 : i32
    %535 = vector.broadcast %c0_i32_173 : i32 to vector<2x3xi32>
    %536 = arith.cmpi sgt, %534, %535 : vector<2x3xi32>
    %537 = vector.shape_cast %516 : vector<2x1xi32> to vector<2x1xi32>
    %538 = vector.broadcast %537 : vector<2x1xi32> to vector<2x16xi32>
    %c0_i32_174 = arith.constant 0 : i32
    %539 = vector.broadcast %c0_i32_174 : i32 to vector<2x16xi32>
    %540 = arith.cmpi sgt, %538, %539 : vector<2x16xi32>
    %541 = vector.broadcast %c1_i32_118 : i32 to vector<2x4xi32>
    %542 = arith.cmpi eq, %49, %541 : vector<2x4xi32>
    %543 = arith.andi %542, %532 : vector<2x4xi1>
    %544 = vector.shape_cast %522 : vector<2x1xi32> to vector<2x1xi32>
    %545 = vector.broadcast %544 : vector<2x1xi32> to vector<2x4xi32>
    %546 = arith.select %543, %545, %487 : vector<2x4xi1>, vector<2x4xi32>
    %547 = vector.broadcast %c1_i32_118 : i32 to vector<2x3xi32>
    %548 = arith.cmpi eq, %48, %547 : vector<2x3xi32>
    %549 = arith.andi %548, %536 : vector<2x3xi1>
    %550 = vector.shape_cast %528 : vector<2x1xi32> to vector<2x1xi32>
    %551 = vector.broadcast %550 : vector<2x1xi32> to vector<2x3xi32>
    %552 = arith.select %549, %551, %481 : vector<2x3xi1>, vector<2x3xi32>
    %c0_i32_175 = arith.constant 0 : i32
    %553 = vector.broadcast %c0_i32_175 : i32 to vector<2x16xi32>
    %554 = arith.select %434, %31, %553 : vector<2x16xi1>, vector<2x16xi32>
    %cst_176 = arith.constant dense<0> : vector<2xi32>
    %555 = vector.multi_reduction <add>, %554, %cst_176 [1] : vector<2x16xi32> to vector<2xi32>
    %556 = vector.shape_cast %555 : vector<2xi32> to vector<2x1xi32>
    %557 = vector.broadcast %556 : vector<2x1xi32> to vector<2x16xi32>
    %558 = arith.subi %31, %557 : vector<2x16xi32>
    %c0_i32_177 = arith.constant 0 : i32
    %559 = vector.broadcast %c0_i32_177 : i32 to vector<2x16xi32>
    %560 = arith.cmpi slt, %558, %559 : vector<2x16xi32>
    %c16_i32_178 = arith.constant 16 : i32
    %561 = vector.broadcast %c16_i32_178 : i32 to vector<2x16xi32>
    %562 = arith.addi %558, %561 : vector<2x16xi32>
    %563 = arith.select %560, %562, %558 : vector<2x16xi1>, vector<2x16xi32>
    %564 = arith.select %333, %563, %298 : vector<2x16xi1>, vector<2x16xi32>
    %c0_i32_179 = arith.constant 0 : i32
    %565 = vector.broadcast %c0_i32_179 : i32 to vector<2x16xi32>
    %566 = arith.select %434, %564, %565 : vector<2x16xi1>, vector<2x16xi32>
    %cst_180 = arith.constant dense<0> : vector<2xi32>
    %567 = vector.multi_reduction <add>, %566, %cst_180 [1] : vector<2x16xi32> to vector<2xi32>
    %568 = vector.shape_cast %567 : vector<2xi32> to vector<2x1xi32>
    %569 = vector.broadcast %568 : vector<2x1xi32> to vector<2x16xi32>
    %570 = arith.cmpi sle, %564, %569 : vector<2x16xi32>
    %c14_i32_181 = arith.constant 14 : i32
    %571 = vector.broadcast %c14_i32_181 : i32 to vector<2x16xi32>
    %572 = arith.cmpi sgt, %564, %571 : vector<2x16xi32>
    %573 = arith.andi %333, %572 : vector<2x16xi1>
    %574 = arith.ori %570, %573 : vector<2x16xi1>
    %575 = arith.andi %434, %540 : vector<2x16xi1>
    %cst_182 = arith.constant dense<true> : vector<2x16xi1>
    %576 = arith.xori %575, %cst_182 : vector<2x16xi1>
    %577 = arith.andi %574, %576 : vector<2x16xi1>
    %578 = vector.extract_strided_slice %468 {offsets = [0, 0], sizes = [2, 1], strides = [1, 1]} : vector<2x3xi32> to vector<2x1xi32>
    %cst_183 = arith.constant dense<true> : vector<2x1xi1>
    %579 = arith.xori %515, %cst_183 : vector<2x1xi1>
    %580 = arith.cmpi eq, %449, %578 : vector<2x1xi32>
    %581 = arith.andi %579, %580 : vector<2x1xi1>
    %582 = arith.extui %581 : vector<2x1xi1> to vector<2x1xi32>
    %583 = vector.shape_cast %582 : vector<2x1xi32> to vector<2x1xi32>
    %584 = vector.broadcast %583 : vector<2x1xi32> to vector<2x16xi32>
    %c0_i32_184 = arith.constant 0 : i32
    %585 = vector.broadcast %c0_i32_184 : i32 to vector<2x16xi32>
    %586 = arith.cmpi sgt, %584, %585 : vector<2x16xi32>
    %587 = vector.broadcast %578 : vector<2x1xi32> to vector<2x16xi32>
    %588 = arith.cmpi eq, %47, %587 : vector<2x16xi32>
    %589 = arith.andi %588, %586 : vector<2x16xi1>
    %cst_185 = arith.constant dense<true> : vector<2x16xi1>
    %590 = arith.xori %589, %cst_185 : vector<2x16xi1>
    %591 = arith.andi %577, %590 : vector<2x16xi1>
    %592 = arith.extui %591 : vector<2x16xi1> to vector<2x16xi32>
    %c-1_i32_186 = arith.constant -1 : i32
    %593 = vector.broadcast %c-1_i32_186 : i32 to vector<2x1xi32>
    %594 = arith.select %515, %593, %449 : vector<2x1xi1>, vector<2x1xi32>
    %c2_i32_187 = arith.constant 2 : i32
    %c0_i32_188 = arith.constant 0 : i32
    %595 = arith.cmpi eq, %c2_i32_187, %c0_i32_188 : i32
    %c1_i32_189 = arith.constant 1 : i32
    %c0_i32_190 = arith.constant 0 : i32
    %596 = arith.select %595, %c1_i32_189, %c0_i32_190 : i32
    %597 = vector.broadcast %596 : i32 to vector<2x16xi32>
    %c0_i32_191 = arith.constant 0 : i32
    %598 = vector.broadcast %c0_i32_191 : i32 to vector<2x16xi32>
    %599 = arith.cmpi sgt, %597, %598 : vector<2x16xi32>
    %600 = vector.broadcast %596 : i32 to vector<2x1xi32>
    %c0_i32_192 = arith.constant 0 : i32
    %601 = vector.broadcast %c0_i32_192 : i32 to vector<2x1xi32>
    %602 = arith.cmpi sgt, %600, %601 : vector<2x1xi32>
    %cst_193 = arith.constant dense<true> : vector<2x1xi1>
    %603 = arith.xori %602, %cst_193 : vector<2x1xi1>
    %604 = tpu.concatenate %512, %367 in 1 : vector<2x64xf32>, vector<2x64xf32> -> vector<2x128xf32>
    %cst_194 = arith.constant dense<0.000000e+00> : vector<2x384xf32>
    %605 = tpu.matmul %604, %45, %cst_194 {dimension_numbers = #tpu.dot_dimension_numbers<[1], [0], [0], [1], [0, 0, 1, 1], [], []>} : vector<2x128xf32>, vector<128x384xf32>, vector<2x384xf32> -> vector<2x384xf32>
    %606 = vector.broadcast %46 : vector<1x384xf32> to vector<2x384xf32>
    %607 = arith.addf %605, %606 : vector<2x384xf32>
    %608 = vector.extract_strided_slice %607 {offsets = [0, 0], sizes = [2, 64], strides = [1, 1]} : vector<2x384xf32> to vector<2x64xf32>
    %609 = vector.extract_strided_slice %607 {offsets = [0, 192], sizes = [2, 64], strides = [1, 1]} : vector<2x384xf32> to vector<2x64xf32>
    %610 = arith.addf %608, %609 : vector<2x64xf32>
    %611 = arith.negf %610 : vector<2x64xf32>
    %612 = math.exp %611 : vector<2x64xf32>
    %cst_195 = arith.constant 1.000000e+00 : f32
    %613 = vector.broadcast %cst_195 : f32 to vector<2x64xf32>
    %614 = arith.addf %613, %612 : vector<2x64xf32>
    %615 = arith.divf %613, %614 : vector<2x64xf32>
    %616 = vector.extract_strided_slice %607 {offsets = [0, 64], sizes = [2, 64], strides = [1, 1]} : vector<2x384xf32> to vector<2x64xf32>
    %617 = vector.extract_strided_slice %607 {offsets = [0, 256], sizes = [2, 64], strides = [1, 1]} : vector<2x384xf32> to vector<2x64xf32>
    %618 = arith.addf %616, %617 : vector<2x64xf32>
    %619 = arith.negf %618 : vector<2x64xf32>
    %620 = math.exp %619 : vector<2x64xf32>
    %cst_196 = arith.constant 1.000000e+00 : f32
    %621 = vector.broadcast %cst_196 : f32 to vector<2x64xf32>
    %622 = arith.addf %621, %620 : vector<2x64xf32>
    %623 = arith.divf %621, %622 : vector<2x64xf32>
    %624 = vector.extract_strided_slice %607 {offsets = [0, 128], sizes = [2, 64], strides = [1, 1]} : vector<2x384xf32> to vector<2x64xf32>
    %625 = vector.extract_strided_slice %607 {offsets = [0, 320], sizes = [2, 64], strides = [1, 1]} : vector<2x384xf32> to vector<2x64xf32>
    %626 = arith.mulf %615, %625 : vector<2x64xf32>
    %627 = arith.addf %624, %626 : vector<2x64xf32>
    %628 = math.tanh %627 : vector<2x64xf32>
    %cst_197 = arith.constant 1.000000e+00 : f32
    %629 = vector.broadcast %cst_197 : f32 to vector<2x64xf32>
    %630 = arith.subf %629, %623 : vector<2x64xf32>
    %631 = arith.mulf %630, %628 : vector<2x64xf32>
    %632 = arith.mulf %623, %367 : vector<2x64xf32>
    %633 = arith.addf %631, %632 : vector<2x64xf32>
    %cst_198 = arith.constant dense<0.000000e+00> : vector<2x128xf32>
    %634 = tpu.matmul %633, %44, %cst_198 {dimension_numbers = #tpu.dot_dimension_numbers<[1], [0], [0], [1], [0, 0, 1, 1], [], []>} : vector<2x64xf32>, vector<64x128xf32>, vector<2x128xf32> -> vector<2x128xf32>
    %635 = vector.extract_strided_slice %634 {offsets = [0, 0], sizes = [2, 64], strides = [1, 1]} : vector<2x128xf32> to vector<2x64xf32>
    %636 = vector.shape_cast %635 : vector<2x64xf32> to vector<2x1x64xf32>
    %637 = vector.extract_strided_slice %634 {offsets = [0, 64], sizes = [2, 64], strides = [1, 1]} : vector<2x128xf32> to vector<2x64xf32>
    %638 = vector.shape_cast %637 : vector<2x64xf32> to vector<2x1x64xf32>
    %639 = vector.broadcast %636 : vector<2x1x64xf32> to vector<2x16x64xf32>
    %640 = arith.addf %4, %639 : vector<2x16x64xf32>
    %641 = vector.broadcast %638 : vector<2x1x64xf32> to vector<2x16x64xf32>
    %642 = arith.mulf %7, %641 : vector<2x16x64xf32>
    %643 = arith.addf %640, %642 : vector<2x16x64xf32>
    %644 = math.tanh %643 : vector<2x16x64xf32>
    %645 = vector.broadcast %29 : vector<2x1x64xf32> to vector<2x16x64xf32>
    %646 = arith.mulf %645, %644 : vector<2x16x64xf32>
    %cst_199 = arith.constant dense<0.000000e+00> : vector<2x16xf32>
    %647 = vector.multi_reduction <add>, %646, %cst_199 [2] : vector<2x16x64xf32> to vector<2x16xf32>
    %648 = arith.addf %647, %43 : vector<2x16xf32>
    %649 = math.tanh %648 : vector<2x16xf32>
    %cst_200 = arith.constant 6.000000e+00 : f32
    %650 = vector.broadcast %cst_200 : f32 to vector<2x16xf32>
    %651 = arith.mulf %649, %650 : vector<2x16xf32>
    %c0_i32_201 = arith.constant 0 : i32
    %652 = vector.broadcast %c0_i32_201 : i32 to vector<2x16xi32>
    %653 = arith.cmpi sgt, %592, %652 : vector<2x16xi32>
    %cst_202 = arith.constant -1.000000e+30 : f32
    %654 = vector.broadcast %cst_202 : f32 to vector<2x16xf32>
    %655 = arith.select %653, %654, %651 : vector<2x16xi1>, vector<2x16xf32>
    %656 = vector.broadcast %32 : vector<2x1xi32> to vector<2x16xi32>
    %657 = arith.cmpi eq, %47, %656 : vector<2x16xi32>
    %658 = arith.andi %599, %657 : vector<2x16xi1>
    %cst_203 = arith.constant -1.000000e+30 : f32
    %659 = vector.broadcast %cst_203 : f32 to vector<2x16xf32>
    %660 = arith.select %658, %659, %655 : vector<2x16xi1>, vector<2x16xf32>
    %cst_204 = arith.constant dense<0xFF800000> : vector<2xf32>
    %661 = vector.multi_reduction <maximumf>, %660, %cst_204 [1] : vector<2x16xf32> to vector<2xf32>
    %662 = vector.shape_cast %661 : vector<2xf32> to vector<2x1xf32>
    %663 = vector.broadcast %662 : vector<2x1xf32> to vector<2x16xf32>
    %664 = arith.subf %660, %663 : vector<2x16xf32>
    %665 = math.exp %664 : vector<2x16xf32>
    %cst_205 = arith.constant dense<0.000000e+00> : vector<2xf32>
    %666 = vector.multi_reduction <add>, %665, %cst_205 [1] : vector<2x16xf32> to vector<2xf32>
    %667 = vector.shape_cast %666 : vector<2xf32> to vector<2x1xf32>
    %668 = tpu.reciprocal %667 {approx = true} : vector<2x1xf32> -> vector<2x1xf32>
    %669 = arith.index_cast %c2_i32_187 : i32 to index
    %c0_206 = arith.constant 0 : index
    %c0_207 = arith.constant 0 : index
    %670 = vector.load %arg6[%669, %c0_206, %c0_207] : memref<3x2x16xf32, #tpu.memory_space<vmem>>, vector<1x2x16xf32>
    %671 = vector.shape_cast %670 : vector<1x2x16xf32> to vector<2x16xf32>
    %672 = arith.addf %660, %671 : vector<2x16xf32>
    %cst_208 = arith.constant dense<0xFF800000> : vector<2xf32>
    %673 = vector.multi_reduction <maximumf>, %672, %cst_208 [1] : vector<2x16xf32> to vector<2xf32>
    %674 = vector.shape_cast %673 : vector<2xf32> to vector<2x1xf32>
    %675 = vector.broadcast %674 : vector<2x1xf32> to vector<2x16xf32>
    %676 = arith.cmpf oeq, %672, %675 : vector<2x16xf32>
    %c16_i32_209 = arith.constant 16 : i32
    %677 = vector.broadcast %c16_i32_209 : i32 to vector<2x16xi32>
    %678 = arith.select %676, %47, %677 : vector<2x16xi1>, vector<2x16xi32>
    %cst_210 = arith.constant dense<2147483647> : vector<2xi32>
    %679 = vector.multi_reduction <minsi>, %678, %cst_210 [1] : vector<2x16xi32> to vector<2xi32>
    %680 = vector.shape_cast %679 : vector<2xi32> to vector<2x1xi32>
    %cst_211 = arith.constant dense<0xFF800000> : vector<2xf32>
    %681 = vector.multi_reduction <maximumf>, %660, %cst_211 [1] : vector<2x16xf32> to vector<2xf32>
    %682 = vector.shape_cast %681 : vector<2xf32> to vector<2x1xf32>
    %683 = vector.broadcast %682 : vector<2x1xf32> to vector<2x16xf32>
    %684 = arith.cmpf oeq, %660, %683 : vector<2x16xf32>
    %c16_i32_212 = arith.constant 16 : i32
    %685 = vector.broadcast %c16_i32_212 : i32 to vector<2x16xi32>
    %686 = arith.select %684, %47, %685 : vector<2x16xi1>, vector<2x16xi32>
    %cst_213 = arith.constant dense<2147483647> : vector<2xi32>
    %687 = vector.multi_reduction <minsi>, %686, %cst_213 [1] : vector<2x16xi32> to vector<2xi32>
    %688 = vector.shape_cast %687 : vector<2xi32> to vector<2x1xi32>
    %cst_214 = arith.constant 1.000000e+00 : f32
    %689 = vector.broadcast %cst_214 : f32 to vector<2x1xf32>
    %690 = arith.subf %689, %668 : vector<2x1xf32>
    %cst_215 = arith.constant 9.99999974E-6 : f32
    %691 = vector.broadcast %cst_215 : f32 to vector<2x1xf32>
    %692 = arith.cmpf olt, %690, %691 : vector<2x1xf32>
    %693 = arith.select %692, %688, %680 : vector<2x1xi1>, vector<2x1xi32>
    %c0_i32_216 = arith.constant 0 : i32
    %694 = vector.broadcast %c0_i32_216 : i32 to vector<2x1xi32>
    %695 = arith.cmpi sgt, %516, %694 : vector<2x1xi32>
    %696 = vector.extract_strided_slice %468 {offsets = [0, 0], sizes = [2, 1], strides = [1, 1]} : vector<2x3xi32> to vector<2x1xi32>
    %697 = arith.andi %603, %695 : vector<2x1xi1>
    %698 = arith.select %697, %696, %693 : vector<2x1xi1>, vector<2x1xi32>
    %699 = vector.broadcast %698 : vector<2x1xi32> to vector<2x16xi32>
    %700 = arith.cmpi eq, %47, %699 : vector<2x16xi32>
    %cst_217 = arith.constant 0.000000e+00 : f32
    %701 = vector.broadcast %cst_217 : f32 to vector<2x16xf32>
    %702 = arith.select %700, %660, %701 : vector<2x16xi1>, vector<2x16xf32>
    %cst_218 = arith.constant dense<0.000000e+00> : vector<2xf32>
    %703 = vector.multi_reduction <add>, %702, %cst_218 [1] : vector<2x16xf32> to vector<2xf32>
    %704 = vector.shape_cast %703 : vector<2xf32> to vector<2x1xf32>
    %705 = arith.subf %704, %662 : vector<2x1xf32>
    %706 = math.log %667 : vector<2x1xf32>
    %707 = arith.subf %705, %706 : vector<2x1xf32>
    %708 = arith.andi %603, %695 : vector<2x1xi1>
    %cst_219 = arith.constant 0.000000e+00 : f32
    %709 = vector.broadcast %cst_219 : f32 to vector<2x1xf32>
    %710 = arith.select %708, %709, %707 : vector<2x1xi1>, vector<2x1xf32>
    %711 = arith.addf %445, %710 : vector<2x1xf32>
    %c0_i32_220 = arith.constant 0 : i32
    %712 = vector.broadcast %c0_i32_220 : i32 to vector<2x16xi32>
    %713 = arith.select %700, %30, %712 : vector<2x16xi1>, vector<2x16xi32>
    %cst_221 = arith.constant dense<0> : vector<2xi32>
    %714 = vector.multi_reduction <add>, %713, %cst_221 [1] : vector<2x16xi32> to vector<2xi32>
    %715 = vector.shape_cast %714 : vector<2xi32> to vector<2x1xi32>
    %c0_i32_222 = arith.constant 0 : i32
    %716 = arith.cmpi eq, %c2_i32_187, %c0_i32_222 : i32
    %c1_i32_223 = arith.constant 1 : i32
    %717 = arith.subi %c2_i32_187, %c1_i32_223 : i32
    %c2_i32_224 = arith.constant 2 : i32
    %718 = arith.select %716, %c2_i32_224, %717 : i32
    %c0_i32_225 = arith.constant 0 : i32
    %719 = arith.cmpi eq, %c2_i32_187, %c0_i32_225 : i32
    %c1_i32_226 = arith.constant 1 : i32
    %720 = arith.subi %c2_i32_187, %c1_i32_226 : i32
    %c3_i32_227 = arith.constant 3 : i32
    %721 = arith.select %719, %c3_i32_227, %720 : i32
    %722 = vector.shape_cast %516 : vector<2x1xi32> to vector<2x1xi32>
    %723 = vector.broadcast %722 : vector<2x1xi32> to vector<2x3xi32>
    %c0_i32_228 = arith.constant 0 : i32
    %724 = vector.broadcast %c0_i32_228 : i32 to vector<2x3xi32>
    %725 = arith.cmpi sgt, %723, %724 : vector<2x3xi32>
    %726 = vector.shape_cast %516 : vector<2x1xi32> to vector<2x1xi32>
    %727 = vector.broadcast %726 : vector<2x1xi32> to vector<2x4xi32>
    %c0_i32_229 = arith.constant 0 : i32
    %728 = vector.broadcast %c0_i32_229 : i32 to vector<2x4xi32>
    %729 = arith.cmpi sgt, %727, %728 : vector<2x4xi32>
    %730 = vector.broadcast %c2_i32_187 : i32 to vector<2x3xi32>
    %731 = arith.cmpi eq, %48, %730 : vector<2x3xi32>
    %732 = vector.shape_cast %698 : vector<2x1xi32> to vector<2x1xi32>
    %733 = vector.broadcast %732 : vector<2x1xi32> to vector<2x3xi32>
    %734 = arith.select %731, %733, %468 : vector<2x3xi1>, vector<2x3xi32>
    %735 = vector.broadcast %c2_i32_187 : i32 to vector<2x4xi32>
    %736 = arith.cmpi eq, %49, %735 : vector<2x4xi32>
    %737 = arith.andi %736, %729 : vector<2x4xi1>
    %738 = vector.shape_cast %698 : vector<2x1xi32> to vector<2x1xi32>
    %739 = vector.broadcast %738 : vector<2x1xi32> to vector<2x4xi32>
    %740 = arith.select %737, %739, %546 : vector<2x4xi1>, vector<2x4xi32>
    %741 = vector.broadcast %718 : i32 to vector<2x3xi32>
    %742 = arith.cmpi eq, %48, %741 : vector<2x3xi32>
    %cst_230 = arith.constant dense<true> : vector<2x3xi1>
    %743 = arith.xori %725, %cst_230 : vector<2x3xi1>
    %744 = arith.andi %742, %743 : vector<2x3xi1>
    %745 = vector.shape_cast %698 : vector<2x1xi32> to vector<2x1xi32>
    %746 = vector.broadcast %745 : vector<2x1xi32> to vector<2x3xi32>
    %747 = arith.select %744, %746, %552 : vector<2x3xi1>, vector<2x3xi32>
    %c1_i32_231 = arith.constant 1 : i32
    %748 = arith.addi %c2_i32_187, %c1_i32_231 : i32
    %749 = vector.broadcast %748 : i32 to vector<2x4xi32>
    %750 = arith.cmpi eq, %49, %749 : vector<2x4xi32>
    %751 = vector.shape_cast %715 : vector<2x1xi32> to vector<2x1xi32>
    %752 = vector.broadcast %751 : vector<2x1xi32> to vector<2x4xi32>
    %753 = arith.select %750, %752, %740 : vector<2x4xi1>, vector<2x4xi32>
    %754 = arith.extui %700 : vector<2x16xi1> to vector<2x16xi32>
    %755 = arith.sitofp %754 : vector<2x16xi32> to vector<2x16xf32>
    %756 = vector.shape_cast %755 : vector<2x16xf32> to vector<2x16x1xf32>
    %757 = vector.broadcast %756 : vector<2x16x1xf32> to vector<2x16x32xf32>
    %758 = arith.mulf %757, %0 : vector<2x16x32xf32>
    %cst_232 = arith.constant dense<0.000000e+00> : vector<2x32xf32>
    %759 = vector.multi_reduction <add>, %758, %cst_232 [1] : vector<2x16x32xf32> to vector<2x32xf32>
    %c0_i32_233 = arith.constant 0 : i32
    %760 = vector.broadcast %c0_i32_233 : i32 to vector<2x1xi32>
    %761 = arith.cmpi slt, %594, %760 : vector<2x1xi32>
    %c16_i32_234 = arith.constant 16 : i32
    %762 = vector.broadcast %c16_i32_234 : i32 to vector<2x1xi32>
    %763 = arith.addi %594, %762 : vector<2x1xi32>
    %764 = arith.select %761, %763, %594 : vector<2x1xi1>, vector<2x1xi32>
    %765 = vector.broadcast %764 : vector<2x1xi32> to vector<2x16xi32>
    %766 = arith.cmpi eq, %47, %765 : vector<2x16xi32>
    %767 = arith.extui %766 : vector<2x16xi1> to vector<2x16xi32>
    %768 = arith.sitofp %767 : vector<2x16xi32> to vector<2x16xf32>
    %769 = vector.shape_cast %768 : vector<2x16xf32> to vector<2x16x1xf32>
    %770 = vector.broadcast %769 : vector<2x16x1xf32> to vector<2x16x32xf32>
    %771 = arith.mulf %770, %0 : vector<2x16x32xf32>
    %cst_235 = arith.constant dense<0.000000e+00> : vector<2x32xf32>
    %772 = vector.multi_reduction <add>, %771, %cst_235 [1] : vector<2x16x32xf32> to vector<2x32xf32>
    %773 = vector.shape_cast %516 : vector<2x1xi32> to vector<2x1xi32>
    %774 = vector.broadcast %773 : vector<2x1xi32> to vector<2x32xi32>
    %c0_i32_236 = arith.constant 0 : i32
    %775 = vector.broadcast %c0_i32_236 : i32 to vector<2x32xi32>
    %776 = arith.cmpi sgt, %774, %775 : vector<2x32xi32>
    %777 = arith.select %776, %759, %772 : vector<2x32xi1>, vector<2x32xf32>
    %778 = tpu.concatenate %759, %777 in 1 : vector<2x32xf32>, vector<2x32xf32> -> vector<2x64xf32>
    %779 = arith.cmpi eq, %698, %594 : vector<2x1xi32>
    %780 = arith.ori %695, %779 : vector<2x1xi1>
    %781 = arith.select %603, %780, %779 : vector<2x1xi1>, vector<2x1xi1>
    %782 = arith.extui %781 : vector<2x1xi1> to vector<2x1xi32>
    %783 = vector.broadcast %721 : i32 to vector<2x4xi32>
    %784 = arith.cmpi eq, %49, %783 : vector<2x4xi32>
    %c0_i32_237 = arith.constant 0 : i32
    %785 = vector.broadcast %c0_i32_237 : i32 to vector<2x4xi32>
    %786 = arith.select %784, %753, %785 : vector<2x4xi1>, vector<2x4xi32>
    %cst_238 = arith.constant dense<0> : vector<2xi32>
    %787 = vector.multi_reduction <add>, %786, %cst_238 [1] : vector<2x4xi32> to vector<2xi32>
    %788 = vector.shape_cast %787 : vector<2xi32> to vector<2x1xi32>
    %789 = vector.broadcast %718 : i32 to vector<2x3xi32>
    %790 = arith.cmpi eq, %48, %789 : vector<2x3xi32>
    %c0_i32_239 = arith.constant 0 : i32
    %791 = vector.broadcast %c0_i32_239 : i32 to vector<2x3xi32>
    %792 = arith.select %790, %747, %791 : vector<2x3xi1>, vector<2x3xi32>
    %cst_240 = arith.constant dense<0> : vector<2xi32>
    %793 = vector.multi_reduction <add>, %792, %cst_240 [1] : vector<2x3xi32> to vector<2xi32>
    %794 = vector.shape_cast %793 : vector<2xi32> to vector<2x1xi32>
    %795 = vector.shape_cast %782 : vector<2x1xi32> to vector<2x1xi32>
    %796 = vector.broadcast %795 : vector<2x1xi32> to vector<2x4xi32>
    %c0_i32_241 = arith.constant 0 : i32
    %797 = vector.broadcast %c0_i32_241 : i32 to vector<2x4xi32>
    %798 = arith.cmpi sgt, %796, %797 : vector<2x4xi32>
    %799 = vector.shape_cast %782 : vector<2x1xi32> to vector<2x1xi32>
    %800 = vector.broadcast %799 : vector<2x1xi32> to vector<2x3xi32>
    %c0_i32_242 = arith.constant 0 : i32
    %801 = vector.broadcast %c0_i32_242 : i32 to vector<2x3xi32>
    %802 = arith.cmpi sgt, %800, %801 : vector<2x3xi32>
    %803 = vector.shape_cast %782 : vector<2x1xi32> to vector<2x1xi32>
    %804 = vector.broadcast %803 : vector<2x1xi32> to vector<2x16xi32>
    %c0_i32_243 = arith.constant 0 : i32
    %805 = vector.broadcast %c0_i32_243 : i32 to vector<2x16xi32>
    %806 = arith.cmpi sgt, %804, %805 : vector<2x16xi32>
    %807 = vector.broadcast %c2_i32_187 : i32 to vector<2x4xi32>
    %808 = arith.cmpi eq, %49, %807 : vector<2x4xi32>
    %809 = arith.andi %808, %798 : vector<2x4xi1>
    %810 = vector.shape_cast %788 : vector<2x1xi32> to vector<2x1xi32>
    %811 = vector.broadcast %810 : vector<2x1xi32> to vector<2x4xi32>
    %812 = arith.select %809, %811, %753 : vector<2x4xi1>, vector<2x4xi32>
    %813 = vector.broadcast %c2_i32_187 : i32 to vector<2x3xi32>
    %814 = arith.cmpi eq, %48, %813 : vector<2x3xi32>
    %815 = arith.andi %814, %802 : vector<2x3xi1>
    %816 = vector.shape_cast %794 : vector<2x1xi32> to vector<2x1xi32>
    %817 = vector.broadcast %816 : vector<2x1xi32> to vector<2x3xi32>
    %818 = arith.select %815, %817, %747 : vector<2x3xi1>, vector<2x3xi32>
    %c0_i32_244 = arith.constant 0 : i32
    %819 = vector.broadcast %c0_i32_244 : i32 to vector<2x16xi32>
    %820 = arith.select %700, %31, %819 : vector<2x16xi1>, vector<2x16xi32>
    %cst_245 = arith.constant dense<0> : vector<2xi32>
    %821 = vector.multi_reduction <add>, %820, %cst_245 [1] : vector<2x16xi32> to vector<2xi32>
    %822 = vector.shape_cast %821 : vector<2xi32> to vector<2x1xi32>
    %823 = vector.broadcast %822 : vector<2x1xi32> to vector<2x16xi32>
    %824 = arith.subi %31, %823 : vector<2x16xi32>
    %c0_i32_246 = arith.constant 0 : i32
    %825 = vector.broadcast %c0_i32_246 : i32 to vector<2x16xi32>
    %826 = arith.cmpi slt, %824, %825 : vector<2x16xi32>
    %c16_i32_247 = arith.constant 16 : i32
    %827 = vector.broadcast %c16_i32_247 : i32 to vector<2x16xi32>
    %828 = arith.addi %824, %827 : vector<2x16xi32>
    %829 = arith.select %826, %828, %824 : vector<2x16xi1>, vector<2x16xi32>
    %830 = arith.select %599, %829, %564 : vector<2x16xi1>, vector<2x16xi32>
    %c0_i32_248 = arith.constant 0 : i32
    %831 = vector.broadcast %c0_i32_248 : i32 to vector<2x16xi32>
    %832 = arith.select %700, %830, %831 : vector<2x16xi1>, vector<2x16xi32>
    %cst_249 = arith.constant dense<0> : vector<2xi32>
    %833 = vector.multi_reduction <add>, %832, %cst_249 [1] : vector<2x16xi32> to vector<2xi32>
    %834 = vector.shape_cast %833 : vector<2xi32> to vector<2x1xi32>
    %835 = vector.broadcast %834 : vector<2x1xi32> to vector<2x16xi32>
    %836 = arith.cmpi sle, %830, %835 : vector<2x16xi32>
    %c14_i32_250 = arith.constant 14 : i32
    %837 = vector.broadcast %c14_i32_250 : i32 to vector<2x16xi32>
    %838 = arith.cmpi sgt, %830, %837 : vector<2x16xi32>
    %839 = arith.andi %599, %838 : vector<2x16xi1>
    %840 = arith.ori %836, %839 : vector<2x16xi1>
    %841 = arith.andi %700, %806 : vector<2x16xi1>
    %cst_251 = arith.constant dense<true> : vector<2x16xi1>
    %842 = arith.xori %841, %cst_251 : vector<2x16xi1>
    %843 = arith.andi %840, %842 : vector<2x16xi1>
    %844 = vector.extract_strided_slice %734 {offsets = [0, 0], sizes = [2, 1], strides = [1, 1]} : vector<2x3xi32> to vector<2x1xi32>
    %cst_252 = arith.constant dense<true> : vector<2x1xi1>
    %845 = arith.xori %781, %cst_252 : vector<2x1xi1>
    %846 = arith.cmpi eq, %715, %844 : vector<2x1xi32>
    %847 = arith.andi %845, %846 : vector<2x1xi1>
    %848 = arith.extui %847 : vector<2x1xi1> to vector<2x1xi32>
    %849 = vector.shape_cast %848 : vector<2x1xi32> to vector<2x1xi32>
    %850 = vector.broadcast %849 : vector<2x1xi32> to vector<2x16xi32>
    %c0_i32_253 = arith.constant 0 : i32
    %851 = vector.broadcast %c0_i32_253 : i32 to vector<2x16xi32>
    %852 = arith.cmpi sgt, %850, %851 : vector<2x16xi32>
    %853 = vector.broadcast %844 : vector<2x1xi32> to vector<2x16xi32>
    %854 = arith.cmpi eq, %47, %853 : vector<2x16xi32>
    %855 = arith.andi %854, %852 : vector<2x16xi1>
    %cst_254 = arith.constant dense<true> : vector<2x16xi1>
    %856 = arith.xori %855, %cst_254 : vector<2x16xi1>
    %857 = arith.andi %843, %856 : vector<2x16xi1>
    %858 = arith.extui %857 : vector<2x16xi1> to vector<2x16xi32>
    %c-1_i32_255 = arith.constant -1 : i32
    %859 = vector.broadcast %c-1_i32_255 : i32 to vector<2x1xi32>
    %860 = arith.select %781, %859, %715 : vector<2x1xi1>, vector<2x1xi32>
    %c3_i32_256 = arith.constant 3 : i32
    %861 = vector.shape_cast %782 : vector<2x1xi32> to vector<2x1xi32>
    %862 = vector.broadcast %861 : vector<2x1xi32> to vector<2x3xi32>
    %c0_i32_257 = arith.constant 0 : i32
    %863 = vector.broadcast %c0_i32_257 : i32 to vector<2x3xi32>
    %864 = arith.cmpi eq, %862, %863 : vector<2x3xi32>
    %c2_i32_258 = arith.constant 2 : i32
    %865 = vector.broadcast %c2_i32_258 : i32 to vector<2x3xi32>
    %866 = arith.cmpi eq, %48, %865 : vector<2x3xi32>
    %867 = arith.andi %864, %866 : vector<2x3xi1>
    %868 = vector.extract_strided_slice %812 {offsets = [0, 3], sizes = [2, 1], strides = [1, 1]} : vector<2x4xi32> to vector<2x1xi32>
    %869 = vector.shape_cast %868 : vector<2x1xi32> to vector<2x1xi32>
    %870 = vector.broadcast %869 : vector<2x1xi32> to vector<2x3xi32>
    %871 = arith.select %867, %870, %818 : vector<2x3xi1>, vector<2x3xi32>
    %872 = vector.extract_strided_slice %812 {offsets = [0, 0], sizes = [2, 3], strides = [1, 1]} : vector<2x4xi32> to vector<2x3xi32>
    %873 = tpu.concatenate %734, %872, %871 in 1 : vector<2x3xi32>, vector<2x3xi32>, vector<2x3xi32> -> vector<2x9xi32>
    %c0_259 = arith.constant 0 : index
    %c0_260 = arith.constant 0 : index
    %874 = vector.load %arg20[%c0_259, %c0_260] : memref<2x9xi32, #tpu.memory_space<vmem>>, vector<2x9xi32>
    tpu.vector_store %arg20[%c0_259, %c0_260], %873 {strides = array<i32>} : memref<2x9xi32, #tpu.memory_space<vmem>>, vector<2x9xi32>,
    %c0_261 = arith.constant 0 : index
    %c0_262 = arith.constant 0 : index
    %875 = vector.load %arg21[%c0_261, %c0_262] : memref<2x1xf32, #tpu.memory_space<vmem>>, vector<2x1xf32>
    tpu.vector_store %arg21[%c0_261, %c0_262], %711 {strides = array<i32>} : memref<2x1xf32, #tpu.memory_space<vmem>>, vector<2x1xf32>,
    return
  }
}

</mosaic_0001>

<bundles_post_ra>
// kernel: kopt_decoder_forward.1
= control target key start
LH: loop header
LB: loop body
LE: loop exit
PB: predicated region body
PF: predicated region fallthrough
CT: control target
= control target key end

     0   :  { %s3342_s0 = inlined_call_operand.vmem [shape: f32[2,16,32], index: 0, kind: input, shape index: {}]   ;;  %s3343_s1 = inlined_call_operand.vmem [shape: f32[2,9], index: 1, kind: input, shape index: {}]   ;;  %s3344_s2 = inlined_call_operand.vmem [shape: s32[2,16], index: 2, kind: input, shape index: {}]   ;;  %s3345_s3 = inlined_call_operand.vmem [shape: s32[2,16], index: 3, kind: input, shape index: {}]   ;;  %s3346_s4 = inlined_call_operand.vmem [shape: s32[2,1], index: 4, kind: input, shape index: {}]   ;;  %s3347_s5 = inlined_call_operand.hbm [shape: f32[2,16,16], index: 5, kind: input, shape index: {}]   ;;  %s3348_s6 = inlined_call_operand.vmem [shape: f32[3,2,16], index: 6, kind: input, shape index: {}]   ;;  %s3349_s7 = inlined_call_operand.hbm [shape: f32[32,64], index: 7, kind: input, shape index: {}]   ;;  %s3350_s8 = inlined_call_operand.hbm [shape: f32[32,64], index: 8, kind: input, shape index: {}]   ;;  %s3351_s9 = inlined_call_operand.hbm [shape: f32[32,32], index: 9, kind: input, shape index: {}]   ;;  %s3352_s10 = inlined_call_operand.vmem [shape: f32[1,32], index: 10, kind: input, shape index: {}]   ;;  %s3353_s11 = inlined_call_operand.vmem [shape: f32[9,8], index: 11, kind: input, shape index: {}]   ;;  %s3354_s12 = inlined_call_operand.vmem [shape: f32[1,8], index: 12, kind: input, shape index: {}]   ;;  %s3355_s13 = inlined_call_operand.vmem [shape: f32[8,64], index: 13, kind: input, shape index: {}]   ;;  %s3356_s14 = inlined_call_operand.vmem [shape: f32[1,64], index: 14, kind: input, shape index: {}]   ;;  %s3357_s15 = inlined_call_operand.hbm [shape: f32[64,128], index: 15, kind: input, shape index: {}]   ;;  %s3358_s16 = inlined_call_operand.hbm [shape: f32[128,384], index: 16, kind: input, shape index: {}]   ;;  %s3359_s17 = inlined_call_operand.vmem [shape: f32[1,384], index: 17, kind: input, shape index: {}]   ;;  %s3360_s18 = inlined_call_operand.vmem [shape: f32[1,32], index: 18, kind: input, shape index: {}]   ;;  %s3361_s19 = inlined_call_operand.<no memory space> [shape: f32[1,1], index: 19, kind: input, shape index: {}]   ;;  %s3362_s20 = inlined_call_operand.hbm [shape: s32[2,9], index: 20, kind: output, shape index: {0}]   ;;  %s3363_s21 = inlined_call_operand.vmem [shape: f32[2,1], index: 21, kind: output, shape index: {1}]  }
   0x1   :  { %3374 = sst [smem:[#allocation20_spill]] %s3342_s0  ;;  %v27_v0 = vstv %s3361_s19 }
   0x2   :  { %3375 = sst [smem:[#allocation21_spill]] %s3343_s1  ;;  %28 = vst [vmem:[#allocation2] sm:$0x1] %v27_v0 }
   0x3   :  { %3376 = sst [smem:[#allocation22_spill]] %s3344_s2 }
   0x4   :  { %3377 = sst [smem:[#allocation23_spill]] %s3345_s3 }
   0x5   :  { %3378 = sst [smem:[#allocation24_spill]] %s3346_s4 }
   0x6   :  { %3379 = sst [smem:[#allocation25_spill]] %s3347_s5 }
   0x7   :  { %29 = vsyncpa [#allocation4], 0 }
   0x8   :  { %30 = vsyncpa [#allocation7], 0 }
   0x9   :  { %31 = vsyncpa [#allocation10], 0 }
   0xa   :  { %32 = vsyncpa [#allocation13], 0 }
   0xb   :  { %33 = vsyncpa [#allocation5], 0  ;;  %s63_s3 = sshll.u32 %s3349_s7, 4  ;;  %s2224_s28 = smov [#allocation6]   ;;  %s64_s3 = int_to_ptr.hbm [resolvable:$true] %s63_s3 }
   0xc   :  { %s65_s29 = sshll.u32 %s2224_s28, 4  ;;  %s89_s30 = sshll.u32 %s3351_s9, 4  ;;  %s66_s29 = int_to_ptr.vmem [resolvable:$true] %s65_s29  ;;  %s90_s30 = int_to_ptr.hbm [resolvable:$true] %s89_s30 }
   0xd   :  { %s2225_s5 = smov 128   ;;  %s2226_s19 = smov 8  }
   0xe   :  { %71 = dma.hbm_to_vmem [thread:$0]  %s64_s3, 512, %s66_s29, [#allocation7], %s2225_s5, %s2225_s5, %s2226_s19  }
   0xf   :  { %s2227_s22 = smov [#allocation9]   ;;  %s3380_s7 = sld [smem:[#allocation25_spill]] }
  0x10   :  { %s91_s23 = sshll.u32 %s2227_s22, 4  ;;  %s76_s26 = sshll.u32 %s3350_s8, 4  ;;  %s92_s23 = int_to_ptr.vmem [resolvable:$true] %s91_s23  ;;  %s77_s26 = int_to_ptr.hbm [resolvable:$true] %s76_s26 }
  0x11   :  { %97 = dma.hbm_to_vmem [thread:$0]  %s90_s30, 512, %s92_s23, [#allocation10], %s2225_s5, %s2225_s5, %s2226_s19  }
  0x12   :  { %s2228_s27 = smov [#allocation3]   ;;  %s2229_s3 = smov [#allocation8]  }
  0x13   :  { %s50_s28 = sshll.u32 %s2228_s27, 4  ;;  %s78_s29 = sshll.u32 %s2229_s3, 4  ;;  %s51_s28 = int_to_ptr.vmem [resolvable:$true] %s50_s28  ;;  %s79_s29 = int_to_ptr.vmem [resolvable:$true] %s78_s29 }
  0x14   :  { %s112_s22 = sshll.u32 %s3357_s15, 4  ;;  %s125_s23 = sshll.u32 %s3358_s16, 4  ;;  %s113_s22 = int_to_ptr.hbm [resolvable:$true] %s112_s22  ;;  %s126_s23 = int_to_ptr.hbm [resolvable:$true] %s125_s23 }
  0x15   :  { %s48_s2 = sshll.u32 %s3380_s7, 4  ;;  %s2230_s1 = smov [#allocation11]   ;;  %s49_s2 = int_to_ptr.hbm [resolvable:$true] %s48_s2 }
  0x16   :  { %56 = dma.hbm_to_vmem [thread:$0]  %s49_s2, 512, %s51_s28, [#allocation4], %s2225_s5, %s2225_s5, %s2226_s19  }
  0x17   :  { %84 = dma.hbm_to_vmem [thread:$0]  %s77_s26, 512, %s79_s29, [#allocation7], %s2225_s5, %s2225_s5, %s2226_s19  }
  0x18   :  { %s114_s24 = sshll.u32 %s2230_s1, 4  ;;  %s2231_s7 = smov [#allocation12]   ;;  %s115_s24 = int_to_ptr.vmem [resolvable:$true] %s114_s24 }
  0x19   :  { %120 = dma.hbm_to_vmem [thread:$0]  %s113_s22, 1024, %s115_s24, [#allocation10], %s2225_s5, %s2225_s5, %s2226_s19  }
  0x1a   :  { %s127_s15 = sshll.u32 %s2231_s7, 4  ;;  %s2232_s2 = smov 384   ;;  %s128_s15 = int_to_ptr.vmem [resolvable:$true] %s127_s15 }
  0x1b   :  { %s2233_s9 = smov 24  }
  0x1c   :  { %133 = dma.hbm_to_vmem [thread:$0]  %s126_s23, 6144, %s128_s15, [#allocation13], %s2232_s2, %s2232_s2, %s2233_s9  }
  0x1d   :  { %2214 = dma.done.wait [#allocation4], 512  }
  0x1e   :  { %2215 = vsyncadd [#allocation4], 4294966784 }
  0x1f   :  { %2216 = dma.done.wait [#allocation7], 1024  }
  0x20   :  { %2217 = vsyncadd [#allocation7], 4294966272 }
  0x21   :  { %2218 = dma.done.wait [#allocation10], 1536  }
  0x22   :  { %2219 = vsyncadd [#allocation10], 4294965760 }
  0x23   :  { %2220 = dma.done.wait [#allocation13], 6144  }
  0x24   :  { %2221 = vsyncadd [#allocation13], 4294961152  ;;  %v2234_v1 = vmov 16.0   ;;  %vm3368_vm0 = vcmask 261120   ;;  %v277_v3 = vld [vmem:[#allocation9 + $0x18] sm:$0xff]  ;;  %v276_v4 = vld [vmem:[#allocation9 + $0x10] sm:$0xff] }
  0x25   :  { %1943 = vrcp.f32 %v2234_v1  ;;  %300 = vmatpush.msra.mxu2 %v277_v3  ;;  %v275_v5 = vld [vmem:[#allocation9 + $0x8] sm:$0xff]  ;;  %s3381_s19 = sld [smem:[#allocation20_spill]]  ;;  %v274_v13 = vld [vmem:[#allocation9] sm:$0xff]  ;;  %vm284_vm2 = vcmask 1041409   ;;  %v1938_v37 = vld [vmem:[%s3352_s10] ss:$0 sm:$0xff] }
  0x26   :  { %s2235_s22 = smov 32   ;;  %v2430_v40 = vld [vmem:[%s3360_s18] ss:$0 sm:$0xff]  ;;  %v170_v43 = vld [vmem:[#allocation6 + $0x10] sm:$0xff]  ;;  %v169_v45 = vld [vmem:[#allocation6 + $0x8] sm:$0xff]  ;;  %s2236_s10 = smov 64  }
  0x27   :  { %301 = vmatpush.msra.mxu2 %v276_v4  ;;  %v171_v41 = vld [vmem:[#allocation6 + $0x18] sm:$0xff]  ;;  %v216_v44 = vld [vmem:[#allocation8 + $0x10] sm:$0xff]  ;;  %v215_v46 = vld [vmem:[#allocation8 + $0x8] sm:$0xff]  ;;  %vm3367_vm3 = vcmask 523264   ;;  %vm319_vm4 = vcmask 1040384   ;;  %s3382_s9 = sld [smem:[#allocation21_spill]] }
  0x28   :  { %v217_v42 = vld [vmem:[#allocation8 + $0x18] sm:$0xff]  ;;  %197 = vmatpush.msra.mxu0 %v171_v41  ;;  %v168_v48 = vld [vmem:[#allocation6] sm:$0xff]  ;;  %v2439_v51 = vld [vmem:[#allocation12 + $0x170] sm:$0xff]  ;;  %vm315_vm5 = vcmask 72704   ;;  %s3383_s25 = sld [smem:[#allocation22_spill]]  ;;  %vm349_vm14 = vcmask 64512  }
  0x29   :  { %302 = vmatpush.msra.mxu2 %v275_v5  ;;  %230 = vmatpush.msra.mxu1 %v217_v42  ;;  %v2434_v47 = vld [vmem:[#allocation12 + $0x178] sm:$0xff]  ;;  %v214_v49 = vld [vmem:[#allocation8] sm:$0xff]  ;;  %v2441_v52 = vld [vmem:[#allocation12 + $0x168] sm:$0xff]  ;;  %vm418_vm15 = vcmask 130048   ;;  %s3384_s29 = sld [smem:[#allocation24_spill]]  ;;  %s2242_s26 = smov 6  }
  0x2a   :  { %198 = vmatpush.msra.mxu0 %v170_v43  ;;  %v2437_v50 = vld [vmem:[#allocation12 + $0x160] sm:$0xff]  ;;  %v2444_v53 = vld [vmem:[#allocation12 + $0x148] sm:$0xff]  ;;  %v2450_v54 = vld [vmem:[#allocation12 + $0x158] sm:$0xff]  ;;  %s3385_s18 = sld [smem:[#allocation23_spill]]  ;;  %s2243_s27 = smov [#allocation14]  }
  0x2b   :  { %v1944_v2 = vpop.eup %1943  ;;  %v2393_v6 = vld [vmem:[%s3381_s19] sm:$0xff]  ;;  %v2398_v7 = vld [vmem:[%s3381_s19 + $0x8] sm:$0xff]  ;;  %v2403_v9 = vld [vmem:[%s3381_s19 + $0x10] sm:$0xff]  ;;  %303 = vmatpush.msra.mxu2 %v274_v13  ;;  %231 = vmatpush.msra.mxu1 %v216_v44  ;;  %s1828_s3 = sshll.u32 %s3362_s20, 4  ;;  %s1829_s3 = int_to_ptr.hbm [resolvable:$true] %s1828_s3 }
  0x2c   :  { %v266_v8 = vmul.f32 16.0, %v1944_v2  ;;  %v2408_v10 = vld [vmem:[%s3381_s19 + $0x18] sm:$0xff]  ;;  %v247_v11 = vsel %vm3368_vm0, %v2393_v6, 0.0  ;;  %v248_v12 = vsel %vm3368_vm0, %v2398_v7, 0.0  ;;  %v256_v15 = vsel %vm3368_vm0, %v2403_v9, 0.0  ;;  %199 = vmatpush.msra.mxu0 %v169_v45  ;;  %v2458_v57 = vld [vmem:[#allocation12 + $0x140] sm:$0xff] }
  0x2d   :  { %v249_v14 = vadd.f32 %v248_v12, %v247_v11  ;;  %v257_v16 = vsel %vm3368_vm0, %v2408_v10, 0.0  ;;  %vm270_vm1 = vweird.f32 %v1944_v2  ;;  %565 = vmatpush.msrb.mxu2 %v2434_v47  ;;  %232 = vmatpush.msra.mxu1 %v215_v46  ;;  %v2452_v55 = vld [vmem:[#allocation12 + $0x150] sm:$0xff]  ;;  %v2460_v58 = vld [vmem:[#allocation12 + $0x138] sm:$0xff]  ;;  %v2467_v60 = vld [vmem:[#allocation12 + $0x128] sm:$0xff] }
  0x2e   :  { %v267_v17 = vsub.f32 1.0, %v266_v8  ;;  %v258_v18 = vadd.f32 %v257_v16, %v256_v15  ;;  %200 = vmatpush.msra.mxu0 %v168_v48  ;;  %v2456_v56 = vld [vmem:[#allocation12 + $0x130] sm:$0xff]  ;;  %v2465_v59 = vld [vmem:[#allocation12 + $0x118] sm:$0xff]  ;;  %v2469_v61 = vld [vmem:[#allocation12 + $0x120] sm:$0xff] }
  0x2f   :  { %v250_v19 = vrot.slane %v249_v14, 4  ;;  %566 = vmatpush.msrb.mxu2 %v2437_v50  ;;  %233 = vmatpush.msra.mxu1 %v214_v49  ;;  %v2474_v62 = vld [vmem:[#allocation12 + $0x110] sm:$0xff]  ;;  %v2476_v63 = vld [vmem:[#allocation12 + $0x108] sm:$0xff]  ;;  %v2481_v0 = vld [vmem:[#allocation12 + $0x100] sm:$0xff] }
  0x30   :  { %v259_v20 = vrot.slane %v258_v18, 4  ;;  %v268_v21 = vmul.f32 %v1944_v2, %v267_v17  ;;  %1845 = vmatmul.msk.f32.vlgmr.msra.gmra.mxu0 %vm3368_vm0, %v2393_v6  ;;  %1849 = vmatmul.msk.f32.vlgmr.msra.gmra.mxu1 %vm3368_vm0, %v2393_v6  ;;  %v2487_v1 = vld [vmem:[#allocation12 + $0xf8] sm:$0xff]  ;;  %v2493_v3 = vld [vmem:[#allocation12 + $0xe8] sm:$0xff]  ;;  %v2496_v4 = vld [vmem:[#allocation12 + $0xe0] sm:$0xff] }
  0x31   :  { %v251_v22 = vadd.f32 %v250_v19, %v249_v14  ;;  %545 = vmatpush.msrb.mxu1 %v2439_v51  ;;  %525 = vmatpush.msrb.mxu0 %v2441_v52  ;;  %v2498_v5 = vld [vmem:[#allocation12 + $0xd8] sm:$0xff]  ;;  %v2502_v6 = vld [vmem:[#allocation12 + $0xd0] sm:$0xff]  ;;  %v2507_v8 = vld [vmem:[#allocation12 + $0xc0] sm:$0xff] }
  0x32   :  { %v260_v23 = vadd.f32 %v259_v20, %v258_v18  ;;  %v269_v26 = vadd.f32 %v1944_v2, %v268_v21  ;;  %567 = vmatpush.msrb.mxu2 %v2444_v53  ;;  %v2512_v11 = vld [vmem:[#allocation12 + $0xb0] sm:$0xff]  ;;  %v2514_v12 = vld [vmem:[#allocation12 + $0xa8] sm:$0xff]  ;;  %v2518_v13 = vld [vmem:[#allocation12 + $0xb8] sm:$0xff] }
  0x33   :  { %v252_v24 = vrot.slane %v251_v22, 2  ;;  %546 = vmatpush.msrb.mxu1 %v2450_v54  ;;  %526 = vmatpush.msrb.mxu0 %v2452_v55  ;;  %v2524_v14 = vld [vmem:[#allocation12 + $0x98] sm:$0xff]  ;;  %v2526_v15 = vld [vmem:[#allocation12 + $0x90] sm:$0xff]  ;;  %v2530_v16 = vld [vmem:[#allocation12 + $0xa0] sm:$0xff] }
  0x34   :  { %v261_v25 = vrot.slane %v260_v23, 2  ;;  %v271_v31 = vsel %vm270_vm1, %v1944_v2, %v269_v26  ;;  %568 = vmatpush.msrb.mxu2 %v2456_v56  ;;  %v2489_v2 = vld [vmem:[#allocation12 + $0xf0] sm:$0xff]  ;;  %v2533_v17 = vld [vmem:[#allocation12 + $0x80] sm:$0xff]  ;;  %v2535_v18 = vld [vmem:[#allocation12 + $0x78] sm:$0xff] }
  0x35   :  { %v253_v27 = vadd.f32 %v252_v24, %v251_v22  ;;  %547 = vmatpush.msrb.mxu1 %v2458_v57  ;;  %527 = vmatpush.msrb.mxu0 %v2460_v58  ;;  %v2542_v19 = vld [vmem:[#allocation12 + $0x68] sm:$0xff]  ;;  %v2544_v20 = vld [vmem:[#allocation12 + $0x60] sm:$0xff]  ;;  %v2548_v21 = vld [vmem:[#allocation12 + $0x70] sm:$0xff] }
  0x36   :  { %v262_v28 = vadd.f32 %v261_v25, %v260_v23  ;;  %569 = vmatpush.msrb.mxu2 %v2465_v59  ;;  %v2555_v24 = vld [vmem:[#allocation12 + $0x50] sm:$0xff]  ;;  %v2557_v25 = vld [vmem:[#allocation12 + $0x48] sm:$0xff]  ;;  %v2561_v26 = vld [vmem:[#allocation12 + $0x58] sm:$0xff] }
  0x37   :  { %v254_v29 = vrot.slane %v253_v27, 1  ;;  %548 = vmatpush.msrb.mxu1 %v2467_v60  ;;  %528 = vmatpush.msrb.mxu0 %v2469_v61  ;;  %v498_v43 = vld [vmem:[%s3359_s17] sm:$0x7] }
  0x38   :  { %v263_v30 = vrot.slane %v262_v28, 1  ;;  %1846 = vmatmul.msk.f32.gmra.mxu0 %vm3368_vm0, %v2398_v7  ;;  %1850 = vmatmul.msk.f32.gmra.mxu1 %vm3368_vm0, %v2398_v7  ;;  %v2505_v7 = vld [vmem:[#allocation12 + $0xc8] sm:$0xff]  ;;  %v2657_v44 = vperm.slane %v498_v43, 1 }
  0x39   :  { %v255_v32 = vadd.f32 %v254_v29, %v253_v27  ;;  %549 = vmatpush.msrb.mxu1 %v2474_v62  ;;  %529 = vmatpush.msrb.mxu0 %v2476_v63  ;;  %v2567_v27 = vld [vmem:[#allocation12 + $0x38] sm:$0xff]  ;;  %v2573_v29 = vld [vmem:[#allocation12 + $0x40] sm:$0xff] }
  0x3a   :  { %v264_v33 = vadd.f32 %v263_v30, %v262_v28  ;;  %570 = vmatpush.msrb.mxu2 %v2481_v0  ;;  %v2569_v28 = vld [vmem:[#allocation12 + $0x30] sm:$0xff]  ;;  %v2576_v30 = vld [vmem:[#allocation12 + $0x20] sm:$0xff] }
  0x3b   :  { %v272_v34 = vmul.f32 %v271_v31, %v255_v32  ;;  %550 = vmatpush.msrb.mxu1 %v2487_v1  ;;  %530 = vmatpush.msrb.mxu0 %v2489_v2  ;;  %v2588_v32 = vld [vmem:[#allocation12 + $0x8] sm:$0xff] }
  0x3c   :  { %v273_v35 = vmul.f32 %v271_v31, %v264_v33  ;;  %571 = vmatpush.msrb.mxu2 %v2493_v3  ;;  %v2578_v31 = vld [vmem:[#allocation12 + $0x18] sm:$0xff]  ;;  %v2606_v33 = vld [vmem:[#allocation12] sm:$0xff] }
  0x3d   :  { %551 = vmatpush.msrb.mxu1 %v2496_v4  ;;  %531 = vmatpush.msrb.mxu0 %v2498_v5 }
  0x3e   :  { %v285_v36 = vsel %vm284_vm2, %v273_v35, %v272_v34  ;;  %572 = vmatpush.msrb.mxu2 %v2502_v6  ;;  %v452_v34 = vld [vmem:[#allocation12 + $0x10] sm:$0xff] }
  0x3f   :  { %1853 = vmatmul.msk.f32.vlgmr.msra.gmra.mxu2 %vm3368_vm0, %v285_v36  ;;  %552 = vmatpush.msrb.mxu1 %v2505_v7 }
  0x40   :  { %532 = vmatpush.msrb.mxu0 %v2507_v8  ;;  %1851 = vmatmul.msk.f32.gmra.mxu1 %vm3368_vm0, %v2403_v9 }
  0x41   :  { %1847 = vmatmul.msk.f32.gmra.mxu0 %vm3368_vm0, %v2403_v9  ;;  %553 = vmatpush.msrb.mxu1 %v2512_v11  ;;  %v2539_v9 = vld [vmem:[#allocation12 + $0x88] sm:$0xff] }
  0x42   :  { %533 = vmatpush.msrb.mxu0 %v2514_v12  ;;  %573 = vmatpush.msrb.mxu2 %v2518_v13 }
  0x43   :  { %554 = vmatpush.msrb.mxu1 %v2524_v14 }
  0x44   :  { %534 = vmatpush.msrb.mxu0 %v2526_v15  ;;  %574 = vmatpush.msrb.mxu2 %v2530_v16 }
  0x45   :  { %555 = vmatpush.msrb.mxu1 %v2533_v17 }
  0x46   :  { %535 = vmatpush.msrb.mxu0 %v2535_v18  ;;  %575 = vmatpush.msrb.mxu2 %v2539_v9 }
  0x47   :  { %556 = vmatpush.msrb.mxu1 %v2542_v19 }
  0x48   :  { %536 = vmatpush.msrb.mxu0 %v2544_v20  ;;  %576 = vmatpush.msrb.mxu2 %v2548_v21 }
  0x49   :  { %1848 = vmatmul.msk.f32.gmra.mxu0 %vm3368_vm0, %v2408_v10  ;;  %1852 = vmatmul.msk.f32.gmra.mxu1 %vm3368_vm0, %v2408_v10  ;;  %v2582_v10 = vld [vmem:[#allocation12 + $0x28] sm:$0xff] }
  0x4a   :  { %557 = vmatpush.msrb.mxu1 %v2555_v24  ;;  %537 = vmatpush.msrb.mxu0 %v2557_v25 }
  0x4b   :  { %577 = vmatpush.msrb.mxu2 %v2561_v26 }
  0x4c   :  { %558 = vmatpush.msrb.mxu1 %v2567_v27  ;;  %538 = vmatpush.msrb.mxu0 %v2569_v28 }
  0x4d   :  { %578 = vmatpush.msrb.mxu2 %v2573_v29 }
  0x4e   :  { %559 = vmatpush.msrb.mxu1 %v2576_v30  ;;  %539 = vmatpush.msrb.mxu0 %v2578_v31 }
  0x4f   :  { %579 = vmatpush.msrb.mxu2 %v2582_v10 }
  0x50   :  { %560 = vmatpush.msrb.mxu1 %v2588_v32  ;;  %540 = vmatpush.msrb.mxu0 %v2606_v33 }
  0x51   :  { %580 = vmatpush.msrb.mxu2 %v452_v34 }
  0x52   :  { %1004 = vmatpush.msra.mxu1 %v2434_v47  ;;  %984 = vmatpush.msra.mxu0 %v2439_v51 }
  0x54   :  { %1005 = vmatpush.msra.mxu1 %v2437_v50  ;;  %985 = vmatpush.msra.mxu0 %v2450_v54 }
  0x56   :  { %1006 = vmatpush.msra.mxu1 %v2444_v53  ;;  %986 = vmatpush.msra.mxu0 %v2458_v57 }
  0x58   :  { %1007 = vmatpush.msra.mxu1 %v2456_v56  ;;  %987 = vmatpush.msra.mxu0 %v2467_v60 }
  0x5a   :  { %1008 = vmatpush.msra.mxu1 %v2465_v59  ;;  %988 = vmatpush.msra.mxu0 %v2474_v62 }
  0x5c   :  { %1009 = vmatpush.msra.mxu1 %v2481_v0  ;;  %989 = vmatpush.msra.mxu0 %v2487_v1 }
  0x5e   :  { %1010 = vmatpush.msra.mxu1 %v2493_v3  ;;  %990 = vmatpush.msra.mxu0 %v2496_v4 }
  0x60   :  { %1011 = vmatpush.msra.mxu1 %v2502_v6  ;;  %991 = vmatpush.msra.mxu0 %v2505_v7 }
  0x62   :  { %1012 = vmatpush.msra.mxu1 %v2518_v13  ;;  %992 = vmatpush.msra.mxu0 %v2512_v11 }
  0x64   :  { %1013 = vmatpush.msra.mxu1 %v2530_v16  ;;  %993 = vmatpush.msra.mxu0 %v2524_v14 }
  0x66   :  { %1014 = vmatpush.msra.mxu1 %v2539_v9  ;;  %994 = vmatpush.msra.mxu0 %v2533_v17 }
  0x68   :  { %1015 = vmatpush.msra.mxu1 %v2548_v21  ;;  %995 = vmatpush.msra.mxu0 %v2542_v19 }
  0x6a   :  { %1016 = vmatpush.msra.mxu1 %v2561_v26  ;;  %996 = vmatpush.msra.mxu0 %v2555_v24 }
  0x6c   :  { %1017 = vmatpush.msra.mxu1 %v2573_v29  ;;  %997 = vmatpush.msra.mxu0 %v2567_v27 }
  0x6e   :  { %1018 = vmatpush.msra.mxu1 %v2582_v10  ;;  %998 = vmatpush.msra.mxu0 %v2576_v30 }
  0x70   :  { %1019 = vmatpush.msra.mxu1 %v452_v34  ;;  %999 = vmatpush.msra.mxu0 %v2588_v32 }
  0xc2   :  { %v305_v38 = vpop.f32.mrf.mxu2 }
  0xc3   :  { %v2423_v39 = vadd.f32 %v1938_v37, %v305_v38 }
  0xc5   :  { %500 = vrot.lane.b32.xlu0 %v2423_v39, %s2235_s22 }
  0xcd   :  { %508 = vrot.lane.b32.xlu0 %v2430_v40, %s2235_s22 }
 0x137   :  { %v501_v22 = vpop.permute.xlu0 %500 }
 0x138   :  { %v503_v23 = vsel %vm3368_vm0, %v2423_v39, %v501_v22  ;;  %v2646_v39 = vpop.f32.mrf.mxu1  ;;  %v309_v22 = vld [vmem:[%s3353_s11] sm:$0xff] }
 0x139   :  { %513 = vrot.lane.b32.xlu1 %v503_v23, %s2236_s10 }
 0x13f   :  { %v509_v35 = vpop.permute.xlu0 %508 }
 0x140   :  { %v511_v36 = vsel %vm3368_vm0, %v2430_v40, %v509_v35  ;;  %v2648_v40 = vpop.f32.mrf.mxu1 }
 0x148   :  { %v2650_v41 = vpop.f32.mrf.mxu1 }
 0x150   :  { %v2652_v42 = vpop.f32.mrf.mxu1 }
 0x1ab   :  { %v2626_v37 = vpop.permute.xlu1 %513 }
 0x1ac   :  { %v517_v38 = vsel %vm3367_vm3, %v511_v36, %v2626_v37 }
 0x1ad   :  { %541 = vmatmul.f32.vlgmr.msrb.gmra.mxu0 %v517_v38  ;;  %561 = vmatmul.f32.vlgmr.msrb.gmra.mxu1 %v517_v38 }
 0x1ae   :  { %581 = vmatmul.f32.vlgmr.msrb.gmra.mxu2 %v517_v38  ;;  %1501 = vmatpush.msrb.mxu0 %v2434_v47  ;;  %v2661_v47 = vperm.slane %v498_v43, 2 }
 0x1b0   :  { %1502 = vmatpush.msrb.mxu0 %v2437_v50  ;;  %v2665_v50 = vpop.f32.mrf.mxu0 }
 0x1b2   :  { %1503 = vmatpush.msrb.mxu0 %v2444_v53 }
 0x1b4   :  { %1504 = vmatpush.msrb.mxu0 %v2456_v56 }
 0x1b6   :  { %1505 = vmatpush.msrb.mxu0 %v2465_v59 }
 0x1b8   :  { %1506 = vmatpush.msrb.mxu0 %v2481_v0  ;;  %v2667_v53 = vpop.f32.mrf.mxu0  ;;  %v2673_v0 = vperm.slane %v498_v43, 0 }
 0x1ba   :  { %1507 = vmatpush.msrb.mxu0 %v2493_v3 }
 0x1bc   :  { %1508 = vmatpush.msrb.mxu0 %v2502_v6 }
 0x1be   :  { %1509 = vmatpush.msrb.mxu0 %v2518_v13 }
 0x1c0   :  { %1510 = vmatpush.msrb.mxu0 %v2530_v16  ;;  %v2669_v56 = vpop.f32.mrf.mxu0 }
 0x1c2   :  { %1511 = vmatpush.msrb.mxu0 %v2539_v9 }
 0x1c4   :  { %1512 = vmatpush.msrb.mxu0 %v2548_v21  ;;  %v310_v21 = vld [vmem:[%s3353_s11 + $0x8] sm:$0x1] }
 0x1c5   :  { %1854 = vmatpush.msk.msra.mxu3 %vm319_vm4, %v310_v21 }
 0x1c6   :  { %1513 = vmatpush.msrb.mxu0 %v2561_v26  ;;  %v308_v26 = vld [vmem:[%s3382_s9] sm:$0x3] }
 0x1c7   :  { %338 = vmatpush.msra.mxu3 %v309_v22 }
 0x1c8   :  { %1514 = vmatpush.msrb.mxu0 %v2573_v29  ;;  %v2671_v59 = vpop.f32.mrf.mxu0  ;;  %1855 = vmatmul.msk.f32.vlgmr.msra.gmra.mxu3 %vm315_vm5, %v308_v26 }
 0x1ca   :  { %1515 = vmatpush.msrb.mxu0 %v2582_v10 }
 0x1cc   :  { %1516 = vmatpush.msrb.mxu0 %v452_v34 }
 0x22a   :  { %v562_v45 = vpop.f32.mrf.mxu1  ;;  %v542_v3 = vpop.f32.mrf.mxu0 }
 0x22b   :  { %v563_v46 = vadd.f32 %v562_v45, %v2657_v44  ;;  %v543_v6 = vadd.f32 %v542_v3, %v2673_v0 }
 0x22d   :  { %586 = vrot.lane.b32.xlu1 %v563_v46, %s2236_s10 }
 0x231   :  { %v582_v48 = vpop.f32.mrf.mxu2 }
 0x232   :  { %v583_v49 = vadd.f32 %v582_v48, %v2661_v47 }
 0x234   :  { %610 = vrot.lane.b32.xlu2 %v583_v49, %s2236_s10 }
 0x28e   :  { %v611_v3 = vpop.permute.xlu2 %610 }
 0x28f   :  { %v613_v22 = vadd.f32 %v611_v3, %v543_v6 }
 0x29f   :  { %v587_v13 = vpop.permute.xlu1 %586 }
 0x2a0   :  { %v589_v16 = vadd.f32 %v587_v13, %v543_v6 }
 0x2a2   :  { %v1857_v9 = vmul.f32 -1.442695, %v589_v16 }
 0x2a4   :  { %1945 = vpow2.f32 %v1857_v9 }
 0x2aa   :  { %v1946_v23 = vpop.eup %1945 }
 0x2ab   :  { %v593_v29 = vadd.f32 1.0, %v1946_v23  ;;  %v1858_v23 = vmul.f32 -1.442695, %v613_v22  ;;  %v443_v22 = vld [vmem:[#allocation11 + $0x8] sm:$0xff] }
 0x2ad   :  { %1947 = vrcp.f32 %v593_v29  ;;  %v605_v36 = vand.u32 2147483648, %v593_v29  ;;  %v603_v43 = vand.u32 2147483647, %v593_v29  ;;  %vm599_vm7 = vweird.f32 %v593_v29 }
 0x2af   :  { %v606_v48 = vor.u32 1.1754944e-38, %v605_v36  ;;  %vm604_vm9 = vcmp.eq.f32.partialorder %v603_v43, 8.507059e+37  ;;  %v448_v43 = vld [vmem:[#allocation11 + $0x30] sm:$0xff] }
 0x2b3   :  { %v1948_v10 = vpop.eup %1947 }
 0x2b4   :  { %v595_v34 = vmul.f32 %v1948_v10, %v593_v29  ;;  %vm600_vm6 = vweird.f32 %v1948_v10  ;;  %v344_v29 = vld [vmem:[%s3355_s13] sm:$0xff] }
 0x2b5   :  { %vm601_vm8 = vmor %vm599_vm7, %vm600_vm6  ;;  %368 = vmatpush.msrb.mxu3 %v344_v29  ;;  %v442_v29 = vld [vmem:[#allocation11] sm:$0xff]  ;;  %vm740_vm7 = vcmask 130112  }
 0x2b6   :  { %v596_v35 = vsub.f32 1.0, %v595_v34 }
 0x2b8   :  { %v597_v38 = vmul.f32 %v1948_v10, %v596_v35  ;;  %v378_v35 = vlaneseq }
 0x2ba   :  { %v598_v45 = vadd.f32 %v1948_v10, %v597_v38 }
 0x2bc   :  { %v602_v49 = vsel %vm601_vm8, %v1948_v10, %v598_v45  ;;  %v449_v10 = vld [vmem:[#allocation11 + $0x38] sm:$0xff]  ;;  %v447_v45 = vld [vmem:[#allocation11 + $0x28] sm:$0xff]  ;;  %vm748_vm8 = vcmask 123904  }
 0x2bd   :  { %v607_v13 = vsel %vm604_vm9, %v606_v48, %v602_v49  ;;  %1096 = vmatpush.msra.mxu2 %v449_v10  ;;  %657 = vmatpush.msra.mxu3 %v449_v10  ;;  %v446_v49 = vld [vmem:[#allocation11 + $0x20] sm:$0xff] }
 0x2be   :  { %v633_v16 = vmul.f32 %v611_v3, %v607_v13  ;;  %1593 = vmatpush.msrb.mxu1 %v449_v10  ;;  %v445_v3 = vld [vmem:[#allocation11 + $0x18] sm:$0xff] }
 0x2bf   :  { %658 = vmatpush.msra.mxu3 %v448_v43  ;;  %1097 = vmatpush.msra.mxu2 %v448_v43 }
 0x2c0   :  { %v634_v9 = vadd.f32 %v633_v16, %v563_v46  ;;  %v2690_v46 = vshrl.u32 %v378_v35, 7  ;;  %1594 = vmatpush.msrb.mxu1 %v448_v43 }
 0x2c1   :  { %659 = vmatpush.msra.mxu3 %v447_v45  ;;  %1098 = vmatpush.msra.mxu2 %v447_v45 }
 0x2c2   :  { %1949 = vtanh.f32 %v634_v9  ;;  %1891 = vset.pattern.permute.xlu0 %v2690_v46  ;;  %1893 = vset.pattern.permute.xlu2 %v2690_v46  ;;  %v444_v9 = vld [vmem:[#allocation11 + $0x10] sm:$0xff] }
 0x2c3   :  { %1951 = vpow2.f32 %v1858_v23  ;;  %1595 = vmatpush.msrb.mxu1 %v447_v45  ;;  %660 = vmatpush.msra.mxu3 %v446_v49  ;;  %v2706_v45 = vld [vmem:[%s3383_s25] sm:$0x3] }
 0x2c4   :  { %1099 = vmatpush.msra.mxu2 %v446_v49 }
 0x2c5   :  { %1596 = vmatpush.msrb.mxu1 %v446_v49  ;;  %661 = vmatpush.msra.mxu3 %v445_v3  ;;  %v340_v49 = vpop.f32.mrf.mxu3 }
 0x2c6   :  { %1100 = vmatpush.msra.mxu2 %v445_v3 }
 0x2c7   :  { %1597 = vmatpush.msrb.mxu1 %v445_v3  ;;  %662 = vmatpush.msra.mxu3 %v444_v9 }
 0x2c8   :  { %v1950_v21 = vpop.eup %1949  ;;  %1101 = vmatpush.msra.mxu2 %v444_v9 }
 0x2c9   :  { %638 = vrot.lane.b32.xlu2 %v1950_v21, %s2236_s10  ;;  %v1952_v26 = vpop.eup %1951  ;;  %1598 = vmatpush.msrb.mxu1 %v444_v9 }
 0x2ca   :  { %v617_v34 = vadd.f32 1.0, %v1952_v26  ;;  %663 = vmatpush.msra.mxu3 %v443_v22  ;;  %1102 = vmatpush.msra.mxu2 %v443_v22 }
 0x2cb   :  { %1599 = vmatpush.msrb.mxu1 %v443_v22 }
 0x2cc   :  { %1953 = vrcp.f32 %v617_v34  ;;  %v629_v16 = vand.u32 2147483648, %v617_v34  ;;  %vm623_vm11 = vweird.f32 %v617_v34  ;;  %v627_v21 = vand.u32 2147483647, %v617_v34  ;;  %664 = vmatpush.msra.mxu3 %v442_v29  ;;  %1103 = vmatpush.msra.mxu2 %v442_v29 }
 0x2cd   :  { %1600 = vmatpush.msrb.mxu1 %v442_v29 }
 0x2ce   :  { %v630_v26 = vor.u32 1.1754944e-38, %v629_v16  ;;  %vm628_vm13 = vcmp.eq.f32.partialorder %v627_v21, 8.507059e+37  ;;  %1461 = vmatpush.msrb.mxu2 %v2441_v52  ;;  %v411_v16 = vld [vmem:[#allocation3 + $0x8] sm:$0xff] }
 0x2d0   :  { %1462 = vmatpush.msrb.mxu2 %v2452_v55 }
 0x2d2   :  { %v1954_v36 = vpop.eup %1953  ;;  %1463 = vmatpush.msrb.mxu2 %v2460_v58 }
 0x2d3   :  { %v619_v6 = vmul.f32 %v1954_v36, %v617_v34  ;;  %vm624_vm10 = vweird.f32 %v1954_v36 }
 0x2d4   :  { %vm625_vm12 = vmor %vm623_vm11, %vm624_vm10  ;;  %1464 = vmatpush.msrb.mxu2 %v2469_v61 }
 0x2d5   :  { %v620_v38 = vsub.f32 1.0, %v619_v6 }
 0x2d6   :  { %1465 = vmatpush.msrb.mxu2 %v2476_v63 }
 0x2d7   :  { %v621_v48 = vmul.f32 %v1954_v36, %v620_v38 }
 0x2d8   :  { %1466 = vmatpush.msrb.mxu2 %v2489_v2 }
 0x2d9   :  { %v622_v13 = vadd.f32 %v1954_v36, %v621_v48  ;;  %v1940_v48 = vld [vmem:[%s3354_s12] ss:$0 sm:$0xff]  ;;  %s1826_s12 = sshll.u32 %s2243_s27, 4  ;;  %s1827_s12 = int_to_ptr.vmem [resolvable:$true] %s1826_s12 }
 0x2da   :  { %1467 = vmatpush.msrb.mxu2 %v2498_v5  ;;  %v341_v3 = vadd.f32 %v1940_v48, %v340_v49  ;;  %v413_v48 = vld [vmem:[#allocation3 + $0x18] sm:$0xff] }
 0x2db   :  { %v626_v23 = vsel %vm625_vm12, %v1954_v36, %v622_v13 }
 0x2dc   :  { %v631_v10 = vsel %vm628_vm13, %v630_v26, %v626_v23  ;;  %1468 = vmatpush.msrb.mxu2 %v2507_v8  ;;  %v343_v13 = vmax.f32 %v341_v3, 0.0 }
 0x2dd   :  { %v636_v34 = vsub.f32 1.0, %v631_v10  ;;  %v642_v36 = vmul.f32 %v631_v10, %v2626_v37  ;;  %v380_v37 = vperm.slane %v2706_v45, 0 }
 0x2de   :  { %1469 = vmatpush.msrb.mxu2 %v2514_v12  ;;  %1856 = vmatmul.msk.f32.vlgmr.msrb.gmra.mxu3 %vm349_vm14, %v343_v13 }
 0x2df   :  { %964 = vmatpush.msrb.mxu3 %v2441_v52  ;;  %v393_v52 = vperm.slane %v2706_v45, 1 }
 0x2e0   :  { %1470 = vmatpush.msrb.mxu2 %v2526_v15 }
 0x2e1   :  { %965 = vmatpush.msrb.mxu3 %v2452_v55  ;;  %398 = vperm.xlu2 %1893, %v393_v52  }
 0x2e2   :  { %1471 = vmatpush.msrb.mxu2 %v2535_v18 }
 0x2e3   :  { %966 = vmatpush.msrb.mxu3 %v2460_v58  ;;  %v2747_v58 = vand.u32 127, %v378_v35 }
 0x2e4   :  { %1472 = vmatpush.msrb.mxu2 %v2544_v20 }
 0x2e5   :  { %967 = vmatpush.msrb.mxu3 %v2469_v61  ;;  %v410_v61 = vld [vmem:[#allocation3] sm:$0xff] }
 0x2e6   :  { %1473 = vmatpush.msrb.mxu2 %v2557_v25 }
 0x2e7   :  { %968 = vmatpush.msrb.mxu3 %v2476_v63 }
 0x2e8   :  { %1474 = vmatpush.msrb.mxu2 %v2569_v28 }
 0x2e9   :  { %969 = vmatpush.msrb.mxu3 %v2489_v2 }
 0x2ea   :  { %1475 = vmatpush.msrb.mxu2 %v2578_v31 }
 0x2eb   :  { %970 = vmatpush.msrb.mxu3 %v2498_v5 }
 0x2ec   :  { %1476 = vmatpush.msrb.mxu2 %v2606_v33 }
 0x2ed   :  { %971 = vmatpush.msrb.mxu3 %v2507_v8 }
 0x2ef   :  { %972 = vmatpush.msrb.mxu3 %v2514_v12 }
 0x2f1   :  { %973 = vmatpush.msrb.mxu3 %v2526_v15 }
 0x2f3   :  { %974 = vmatpush.msrb.mxu3 %v2535_v18 }
 0x2f5   :  { %975 = vmatpush.msrb.mxu3 %v2544_v20 }
 0x2f7   :  { %976 = vmatpush.msrb.mxu3 %v2557_v25 }
 0x2f9   :  { %977 = vmatpush.msrb.mxu3 %v2569_v28 }
 0x2fb   :  { %978 = vmatpush.msrb.mxu3 %v2578_v31 }
 0x2fd   :  { %979 = vmatpush.msrb.mxu3 %v2606_v33 }
 0x323   :  { %v639_v6 = vpop.permute.xlu2 %638 }
 0x324   :  { %v641_v38 = vmul.f32 %v639_v6, %v636_v34 }
 0x326   :  { %v2698_v43 = vadd.f32 %v642_v36, %v641_v38 }
 0x328   :  { %645 = vrot.lane.b32.xlu0 %v2698_v43, %s2236_s10 }
 0x330   :  { %385 = vperm.xlu0 %1891, %v380_v37  }
 0x39a   :  { %v646_v55 = vpop.permute.xlu0 %645 }
 0x39b   :  { %1859 = vmatmul.msk.f32.vlgmr.msra.gmra.mxu3 %vm3367_vm3, %v646_v55 }
 0x39c   :  { %1481 = vmatpush.msra.mxu3 %v2439_v51  ;;  %v2766_v51 = vadd.s32 8, %v2690_v46 }
 0x39e   :  { %1482 = vmatpush.msra.mxu3 %v2450_v54  ;;  %1892 = vset.pattern.permute.xlu1 %v2766_v51  ;;  %v370_v54 = vpop.f32.mrf.mxu3 }
 0x3a0   :  { %1483 = vmatpush.msra.mxu3 %v2458_v57 }
 0x3a2   :  { %v386_v63 = vpop.permute.xlu0 %385  ;;  %1484 = vmatpush.msra.mxu3 %v2467_v60 }
 0x3a3   :  { %vm406_vm1 = vcmp.eq.s32.totalorder %v2747_v58, %v386_v63 }
 0x3a4   :  { %v414_v2 = vsel %vm406_vm1, %v410_v61, 0.0  ;;  %1485 = vmatpush.msra.mxu3 %v2474_v62 }
 0x3a5   :  { %v419_v5 = vsel %vm418_vm15, %v414_v2, 0.0 }
 0x3a6   :  { %420 = vadd.xlane.f32.xlu2 %v419_v5  ;;  %1486 = vmatpush.msra.mxu3 %v2487_v1 }
 0x3a8   :  { %1487 = vmatpush.msra.mxu3 %v2496_v4  ;;  %v399_v4 = vpop.permute.xlu2 %398 }
 0x3a9   :  { %vm408_vm4 = vcmp.eq.s32.totalorder %v2747_v58, %v399_v4 }
 0x3aa   :  { %1488 = vmatpush.msra.mxu3 %v2505_v7  ;;  %v412_v7 = vld [vmem:[#allocation3 + $0x10] sm:$0xff] }
 0x3ab   :  { %v416_v8 = vsel %vm408_vm4, %v412_v7, 0.0 }
 0x3ac   :  { %1489 = vmatpush.msra.mxu3 %v2512_v11  ;;  %v425_v11 = vsel %vm418_vm15, %v416_v8, 0.0 }
 0x3ae   :  { %1490 = vmatpush.msra.mxu3 %v2524_v14  ;;  %v3369_v14 = vmov 0  }
 0x3af   :  { %1895 = vset.pattern.permute.xlu0 %v3369_v14  ;;  %1894 = vset.pattern.permute.xlu2 %v3369_v14 }
 0x3b0   :  { %1491 = vmatpush.msra.mxu3 %v2533_v17 }
 0x3b2   :  { %1492 = vmatpush.msra.mxu3 %v2542_v19 }
 0x3b4   :  { %1493 = vmatpush.msra.mxu3 %v2555_v24 }
 0x3b6   :  { %1494 = vmatpush.msra.mxu3 %v2567_v27  ;;  %v1941_v27 = vld [vmem:[%s3356_s14] ss:$0 sm:$0xff] }
 0x3b7   :  { %v371_v35 = vadd.f32 %v1941_v27, %v370_v54 }
 0x3b8   :  { %1495 = vmatpush.msra.mxu3 %v2576_v30 }
 0x3b9   :  { %v2792_v29 = vperm.slane %v371_v35, 0  ;;  %v374_v6 = vrot.slane %v371_v35, 1 }
 0x3ba   :  { %1496 = vmatpush.msra.mxu3 %v2588_v32 }
 0x3bb   :  { %v2798_v13 = vperm.slane %v374_v6, 0 }
 0x419   :  { %v2776_v12 = vpop.xlane.xlu2 %420 }
 0x41e   :  { %v666_v57 = vpop.f32.mrf.mxu3 }
 0x41f   :  { %v670_v60 = vrot.slane %v666_v57, 1  ;;  %v671_v62 = vperm.slane %v666_v57, 0 }
 0x421   :  { %v672_v1 = vperm.slane %v670_v60, 0  ;;  %679 = vrot.lane.b32.xlu1 %v671_v62, %s2236_s10  ;;  %v675_v18 = vadd.f32 %v671_v62, %v2665_v50  ;;  %v676_v19 = vadd.f32 %v671_v62, %v2667_v53  ;;  %v1942_v60 = vld [vmem:[#allocation2] ss:$0 sm:$0xff] }
 0x422   :  { %v377_v62 = vld [vmem:[%s3384_s29] sm:$0x3] }
 0x423   :  { %681 = vrot.lane.b32.xlu2 %v672_v1, %s2236_s10  ;;  %v678_v31 = vadd.f32 %v672_v1, %v2671_v59  ;;  %v677_v9 = vadd.f32 %v672_v1, %v2669_v56 }
 0x429   :  { %391 = vperm.xlu1 %1892, %v380_v37  }
 0x431   :  { %404 = vperm.xlu1 %1892, %v393_v52  }
 0x439   :  { %1896 = vset.pattern.permute.xlu1 %v2690_v46 }
 0x45b   :  { %426 = vadd.xlane.f32.xlu1 %v425_v11 }
 0x47d   :  { %v682_v15 = vpop.permute.xlu2 %681 }
 0x47e   :  { %v688_v25 = vmul.f32 %v682_v15, %v2652_v42  ;;  %v687_v32 = vmul.f32 %v682_v15, %v2650_v41 }
 0x480   :  { %v692_v33 = vadd.f32 %v688_v25, %v678_v31  ;;  %v691_v22 = vadd.f32 %v687_v32, %v677_v9  ;;  %v2825_v32 = vadd.s32 4294967288, %v2747_v58 }
 0x493   :  { %v680_v17 = vpop.permute.xlu1 %679 }
 0x494   :  { %v685_v20 = vmul.f32 %v680_v17, %v2646_v39  ;;  %v686_v24 = vmul.f32 %v680_v17, %v2648_v40 }
 0x496   :  { %v689_v28 = vadd.f32 %v685_v20, %v675_v18  ;;  %v690_v30 = vadd.f32 %v686_v24, %v676_v19 }
 0x498   :  { %1955 = vtanh.f32 %v689_v28 }
 0x499   :  { %1957 = vtanh.f32 %v690_v30 }
 0x49a   :  { %1959 = vtanh.f32 %v692_v33 }
 0x49b   :  { %v392_v21 = vpop.permute.xlu1 %391  ;;  %1961 = vtanh.f32 %v691_v22 }
 0x49c   :  { %vm407_vm5 = vcmp.eq.s32.totalorder %v2747_v58, %v392_v21 }
 0x49d   :  { %v415_v23 = vsel %vm407_vm5, %v411_v16, 0.0 }
 0x49e   :  { %v1956_v26 = vpop.eup %1955  ;;  %v422_v10 = vsel %vm418_vm15, %v415_v23, 0.0 }
 0x49f   :  { %v1958_v34 = vpop.eup %1957  ;;  %423 = vadd.xlane.f32.xlu0 %v422_v10  ;;  %v701_v37 = vmul.f32 %v1956_v26, %v2792_v29 }
 0x4a0   :  { %v702_v36 = vmul.f32 %v1958_v34, %v2792_v29  ;;  %v1960_v49 = vpop.eup %1959 }
 0x4a1   :  { %v705_v55 = vsel %vm3367_vm3, %v701_v37, 0.0  ;;  %v704_v63 = vmul.f32 %v1960_v49, %v2798_v13  ;;  %v1962_v2 = vpop.eup %1961 }
 0x4a2   :  { %v708_v38 = vsel %vm3367_vm3, %v702_v36, 0.0  ;;  %v703_v54 = vmul.f32 %v1962_v2, %v2798_v13 }
 0x4a3   :  { %709 = vadd.xlane.f32.xlu1 %v708_v38  ;;  %v405_v3 = vpop.permute.xlu1 %404  ;;  %v714_v5 = vsel %vm3367_vm3, %v704_v63, 0.0 }
 0x4a4   :  { %vm409_vm6 = vcmp.eq.s32.totalorder %v2747_v58, %v405_v3  ;;  %v711_v57 = vsel %vm3367_vm3, %v703_v54, 0.0 }
 0x4a5   :  { %v417_v52 = vsel %vm409_vm6, %v413_v48, 0.0  ;;  %v759_v48 = vld [vmem:[%s3348_s6] sm:$0x3] }
 0x4a6   :  { %v428_v61 = vsel %vm418_vm15, %v417_v52, 0.0 }
 0x4a7   :  { %706 = vadd.xlane.f32.xlu0 %v705_v55  ;;  %429 = vadd.xlane.f32.xlu2 %v428_v61 }
 0x4ab   :  { %715 = vadd.xlane.f32.xlu1 %v714_v5 }
 0x4af   :  { %712 = vadd.xlane.f32.xlu0 %v711_v57 }
 0x4bf   :  { %435 = vperm.xlu2 %1894, %v1942_v60  }
 0x4c3   :  { %730 = vperm.xlu0 %1895, %v377_v62  }
 0x4c7   :  { %1902 = vset.pattern.permute.xlu2 %v2766_v51 }
 0x4ce   :  { %v427_v4 = vpop.xlane.xlu1 %426 }
 0x512   :  { %v424_v1 = vpop.xlane.xlu0 %423 }
 0x516   :  { %v710_v11 = vpop.xlane.xlu1 %709 }
 0x51a   :  { %v707_v7 = vpop.xlane.xlu0 %706  ;;  %v430_v8 = vpop.xlane.xlu2 %429 }
 0x51e   :  { %v716_v25 = vpop.xlane.xlu1 %715 }
 0x522   :  { %v436_v15 = vpop.permute.xlu2 %435  ;;  %v713_v24 = vpop.xlane.xlu0 %712 }
 0x523   :  { %v2812_v17 = vmul.f32 %v436_v15, %v2776_v12  ;;  %v2814_v18 = vmul.f32 %v436_v15, %v424_v1  ;;  %v2816_v19 = vmul.f32 %v436_v15, %v427_v4  ;;  %v2818_v20 = vmul.f32 %v436_v15, %v430_v8 }
 0x525   :  { %v717_v27 = vadd.f32 %v707_v7, %v2812_v17  ;;  %v718_v28 = vadd.f32 %v710_v11, %v2814_v18  ;;  %v719_v30 = vadd.f32 %v713_v24, %v2816_v19  ;;  %v720_v31 = vadd.f32 %v716_v25, %v2818_v20 }
 0x527   :  { %1963 = vtanh.f32 %v717_v27 }
 0x528   :  { %1965 = vtanh.f32 %v718_v28 }
 0x529   :  { %1967 = vtanh.f32 %v719_v30 }
 0x52a   :  { %1969 = vtanh.f32 %v720_v31 }
 0x52d   :  { %v1964_v12 = vpop.eup %1963 }
 0x52e   :  { %v1966_v33 = vpop.eup %1965  ;;  %v725_v35 = vmul.f32 6.0, %v1964_v12 }
 0x52f   :  { %v1968_v16 = vpop.eup %1967  ;;  %v726_v9 = vmul.f32 6.0, %v1966_v33 }
 0x530   :  { %v1970_v21 = vpop.eup %1969  ;;  %v727_v22 = vmul.f32 6.0, %v1968_v16  ;;  %v737_v23 = vperm.slane %v725_v35, %v2747_v58 }
 0x531   :  { %v728_v26 = vmul.f32 6.0, %v1970_v21  ;;  %v739_v10 = vperm.slane %v726_v9, %v2825_v32 }
 0x532   :  { %v742_v34 = vperm.slane %v727_v22, %v2747_v58 }
 0x533   :  { %v741_v6 = vsel %vm740_vm7, %v739_v10, %v737_v23  ;;  %v743_v36 = vperm.slane %v728_v26, %v2825_v32 }
 0x535   :  { %v731_v38 = vpop.permute.xlu0 %730  ;;  %v744_v37 = vsel %vm740_vm7, %v743_v36, %v742_v34 }
 0x536   :  { %vm732_vm9 = vcmp.eq.s32.totalorder %v2747_v58, %v731_v38  ;;  %v745_v49 = vsel %vm284_vm2, %v744_v37, %v741_v6 }
 0x537   :  { %v2838_v3 = vsel %vm732_vm9, -1e+30, %v745_v49  ;;  %v376_v49 = vld [vmem:[%s3385_s18] sm:$0x3] }
 0x538   :  { %v749_v52 = vsel %vm748_vm8, %v2838_v3, -inf  ;;  %v760_v55 = vadd.f32 %v759_v48, %v2838_v3 }
 0x539   :  { %750 = vmax.xlane.f32.xlu1 %v749_v52 }
 0x53a   :  { %v761_v61 = vsel %vm748_vm8, %v760_v55, -inf }
 0x53b   :  { %762 = vmax.xlane.f32.xlu2 %v761_v61  ;;  %v2238_v61 = vmov 0.0  }
 0x5ac   :  { %v2844_v63 = vpop.xlane.xlu1 %750 }
 0x5ad   :  { %vm781_vm10 = vcmp.eq.f32.partialorder %v2838_v3, %v2844_v63  ;;  %v752_v62 = vsub.f32 %v2838_v3, %v2844_v63 }
 0x5ae   :  { %v763_v2 = vpop.xlane.xlu2 %762  ;;  %v782_v60 = vsel %vm781_vm10, %v2747_v58, 16 }
 0x5af   :  { %vm764_vm11 = vcmp.eq.f32.partialorder %v760_v55, %v763_v2  ;;  %v783_v4 = vsel %vm748_vm8, %v782_v60, 2147483647  ;;  %v753_v7 = vmul.f32 1.442695, %v752_v62 }
 0x5b0   :  { %v765_v5 = vsel %vm764_vm11, %v2747_v58, 16  ;;  %v785_v8 = vshra.s32 %v783_v4, 16  ;;  %v784_v31 = vand.u32 65535, %v783_v4 }
 0x5b1   :  { %v766_v54 = vsel %vm748_vm8, %v765_v5, 2147483647  ;;  %1971 = vpow2.f32 %v753_v7 }
 0x5b2   :  { %v768_v57 = vshra.s32 %v766_v54, 16  ;;  %v787_v11 = vcvt.s32.f32 %v785_v8  ;;  %v767_v25 = vand.u32 65535, %v766_v54  ;;  %v786_v33 = vcvt.s32.f32 %v784_v31 }
 0x5b4   :  { %v770_v1 = vcvt.s32.f32 %v768_v57  ;;  %v769_v28 = vcvt.s32.f32 %v767_v25 }
 0x5b6   :  { %771 = vmin.xlane.f32.xlu1 %v770_v1 }
 0x5b7   :  { %v1972_v15 = vpop.eup %1971 }
 0x5b8   :  { %v755_v24 = vsel %vm748_vm8, %v1972_v15, 0.0 }
 0x5be   :  { %788 = vmin.xlane.f32.xlu1 %v787_v11 }
 0x5c6   :  { %756 = vadd.xlane.f32.xlu1 %v755_v24 }
 0x629   :  { %v772_v27 = vpop.xlane.xlu1 %771 }
 0x62a   :  { %vm773_vm12 = vcmp.eq.f32.partialorder %v770_v1, %v772_v27  ;;  %v778_v22 = vcvt.f32.s32 %v772_v27  ;;  %v2880_v27 = vld [vmem:[%s3381_s19 + $0x18] sm:$0xff] }
 0x62b   :  { %v774_v30 = vsel %vm773_vm12, %v769_v28, inf }
 0x62c   :  { %775 = vmin.xlane.f32.xlu1 %v774_v30  ;;  %v779_v6 = vshll.u32 %v778_v22, 16  ;;  %v2886_v30 = vld [vmem:[%s3381_s19 + $0x8] sm:$0xff]  ;;  %v2898_v22 = vld [vmem:[%s3381_s19] sm:$0xff] }
 0x631   :  { %v789_v12 = vpop.xlane.xlu1 %788 }
 0x632   :  { %vm790_vm13 = vcmp.eq.f32.partialorder %v787_v11, %v789_v12  ;;  %v795_v23 = vcvt.f32.s32 %v789_v12 }
 0x633   :  { %v791_v35 = vsel %vm790_vm13, %v786_v33, inf }
 0x634   :  { %792 = vmin.xlane.f32.xlu0 %v791_v35  ;;  %v796_v36 = vshll.u32 %v795_v23, 16 }
 0x639   :  { %v2855_v16 = vpop.xlane.xlu1 %756 }
 0x63a   :  { %1973 = vrcp.f32 %v2855_v16 }
 0x640   :  { %v1974_v21 = vpop.eup %1973 }
 0x641   :  { %v798_v10 = vsub.f32 1.0, %v1974_v21 }
 0x643   :  { %vm799_vm14 = vcmp.lt.f32.partialorder %v798_v10, 1e-05 }
 0x69f   :  { %v776_v9 = vpop.xlane.xlu1 %775 }
 0x6a0   :  { %v777_v26 = vcvt.f32.s32 %v776_v9  ;;  %v2892_v9 = vld [vmem:[%s3381_s19 + $0x10] sm:$0xff] }
 0x6a2   :  { %v780_v37 = vadd.s32 %v779_v6, %v777_v26 }
 0x6a7   :  { %v793_v34 = vpop.xlane.xlu0 %792 }
 0x6a8   :  { %v794_v38 = vcvt.f32.s32 %v793_v34 }
 0x6aa   :  { %v797_v48 = vadd.s32 %v796_v36, %v794_v38 }
 0x6ac   :  { %v2861_v52 = vsel %vm799_vm14, %v797_v48, %v780_v37  ;;  %vm3366_vm14 = vcmp.eq.s32.totalorder %v2747_v58, 0 }
 0x6ad   :  { %vm2865_vm15 = vcmp.eq.s32.totalorder %v2747_v58, %v2861_v52 }
 0x6ae   :  { %v1860_v2 = vsel %vm2865_vm15, 1.0, %v2238_v61  ;;  %v908_v5 = vsel %vm2865_vm15, %v376_v49, 0 }
 0x6af   :  { %v831_v54 = vperm.slane %v1860_v2, 0  ;;  %v844_v57 = vperm.slane %v1860_v2, 1  ;;  %v909_v60 = vsel %vm748_vm8, %v908_v5, 0 }
 0x6b0   :  { %v911_v62 = vshrl.u32 %v909_v60, 16  ;;  %v910_v7 = vand.u32 65535, %v909_v60 }
 0x6b1   :  { %v1903_v1 = vpack.i.bf16 %v844_v57, %v831_v54 }
 0x6b2   :  { %v913_v4 = vcvt.s32.f32 %v911_v62  ;;  %v912_v8 = vcvt.s32.f32 %v910_v7 }
 0x6b3   :  { %1904 = vperm.xlu2 %1902, %v1903_v1   ;;  %1898 = vperm.xlu1 %1896, %v1903_v1  }
 0x6b4   :  { %916 = vadd.xlane.f32.xlu0 %v913_v4 }
 0x6bb   :  { %1908 = vset.pattern.permute.xlu1 %v3369_v14  ;;  %1909 = vset.pattern.permute.xlu2 %v3369_v14 }
 0x6bc   :  { %914 = vadd.xlane.f32.xlu0 %v912_v8 }
 0x70d   :  { %v1905_v11 = vpop.permute.xlu2 %1904 }
 0x70e   :  { %v1907_v15 = vunpack.i.h.bf16 %v1905_v11  ;;  %v1906_v24 = vunpack.i.l.bf16 %v1905_v11 }
 0x710   :  { %v860_v28 = vmul.f32 %v2880_v27, %v1907_v15  ;;  %v858_v31 = vmul.f32 %v2886_v30, %v1906_v24 }
 0x712   :  { %v871_v26 = vsel %vm3368_vm0, %v860_v28, 0.0  ;;  %v862_v10 = vsel %vm3368_vm0, %v858_v31, 0.0 }
 0x725   :  { %v1899_v25 = vpop.permute.xlu1 %1898 }
 0x726   :  { %v1901_v12 = vunpack.i.h.bf16 %v1899_v25  ;;  %v1900_v33 = vunpack.i.l.bf16 %v1899_v25 }
 0x727   :  { %v917_v35 = vpop.xlane.xlu0 %916 }
 0x728   :  { %v859_v21 = vmul.f32 %v2892_v9, %v1901_v12  ;;  %v857_v23 = vmul.f32 %v2898_v22, %v1900_v33  ;;  %v919_v37 = vcvt.f32.s32 %v917_v35 }
 0x72a   :  { %v870_v34 = vsel %vm3368_vm0, %v859_v21, 0.0  ;;  %v861_v6 = vsel %vm3368_vm0, %v857_v23, 0.0  ;;  %v920_v60 = vshll.u32 %v919_v37, 16 }
 0x72b   :  { %v872_v36 = vadd.f32 %v871_v26, %v870_v34  ;;  %v863_v38 = vadd.f32 %v862_v10, %v861_v6 }
 0x72d   :  { %v873_v48 = vrot.slane %v872_v36, 4  ;;  %v864_v2 = vrot.slane %v863_v38, 4 }
 0x72f   :  { %v874_v5 = vadd.f32 %v873_v48, %v872_v36  ;;  %v865_v54 = vadd.f32 %v864_v2, %v863_v38  ;;  %v915_v57 = vpop.xlane.xlu0 %914 }
 0x730   :  { %v918_v62 = vcvt.f32.s32 %v915_v57 }
 0x731   :  { %v866_v1 = vrot.slane %v865_v54, 2  ;;  %v875_v4 = vrot.slane %v874_v5, 2 }
 0x732   :  { %v921_v7 = vadd.s32 %v920_v60, %v918_v62 }
 0x733   :  { %v867_v8 = vadd.f32 %v866_v1, %v865_v54  ;;  %v876_v11 = vadd.f32 %v875_v4, %v874_v5 }
 0x734   :  { %v922_v15 = vsub.s32 %v376_v49, %v921_v7 }
 0x735   :  { %v868_v24 = vrot.slane %v867_v8, 1  ;;  %v877_v25 = vrot.slane %v876_v11, 1 }
 0x736   :  { %vm923_vm1 = vcmp.lt.s32.totalorder %v922_v15, 0  ;;  %v924_v28 = vadd.s32 16, %v922_v15 }
 0x737   :  { %v869_v31 = vadd.f32 %v868_v24, %v867_v8  ;;  %v878_v12 = vadd.f32 %v877_v25, %v876_v11 }
 0x738   :  { %v2905_v33 = vsel %vm923_vm1, %v924_v28, %v922_v15  ;;  %vm3371_vm1 = vcmp.eq.s32.totalorder %v2861_v52, 4294967295 }
 0x739   :  { %v881_v35 = vsel %vm284_vm2, %v878_v12, %v869_v31  ;;  %v926_v21 = vsel %vm2865_vm15, %v2905_v33, 0 }
 0x73a   :  { %883 = vrot.lane.b32.xlu1 %v881_v35, %s2235_s22  ;;  %v2913_v23 = vsel %vm748_vm8, %v926_v21, 0 }
 0x73b   :  { %v929_v49 = vshrl.u32 %v2913_v23, 16 }
 0x73d   :  { %v931_v26 = vcvt.s32.f32 %v929_v49 }
 0x73f   :  { %934 = vadd.xlane.f32.xlu0 %v931_v26 }
 0x7ac   :  { %v884_v10 = vpop.permute.xlu1 %883 }
 0x7ad   :  { %v886_v34 = vsel %vm3368_vm0, %v881_v35, %v884_v10 }
 0x7ae   :  { %v963_v6 = vsel %vm3367_vm3, %v886_v34, %v2698_v43 }
 0x7af   :  { %980 = vmatmul.f32.vlgmr.msrb.gmra.mxu3 %v963_v6  ;;  %1000 = vmatmul.f32.vlgmr.msra.gmra.mxu0 %v963_v6 }
 0x7b0   :  { %1020 = vmatmul.f32.vlgmr.msra.gmra.mxu1 %v963_v6 }
 0x82c   :  { %v1001_v36 = vpop.f32.mrf.mxu0 }
 0x82d   :  { %v1002_v38 = vadd.f32 %v1001_v36, %v2657_v44  ;;  %v1021_v37 = vpop.f32.mrf.mxu1 }
 0x82e   :  { %v1022_v48 = vadd.f32 %v1021_v37, %v2661_v47 }
 0x82f   :  { %1025 = vrot.lane.b32.xlu2 %v1002_v38, %s2236_s10 }
 0x830   :  { %1049 = vrot.lane.b32.xlu1 %v1022_v48, %s2236_s10 }
 0x832   :  { %v981_v2 = vpop.f32.mrf.mxu3 }
 0x833   :  { %v982_v5 = vadd.f32 %v981_v2, %v2673_v0 }
 0x889   :  { %v1026_v54 = vpop.permute.xlu2 %1025 }
 0x88a   :  { %v1028_v57 = vadd.f32 %v1026_v54, %v982_v5 }
 0x88c   :  { %v1861_v60 = vmul.f32 -1.442695, %v1028_v57 }
 0x88e   :  { %1975 = vpow2.f32 %v1861_v60 }
 0x894   :  { %v1976_v62 = vpop.eup %1975 }
 0x895   :  { %v1032_v1 = vadd.f32 1.0, %v1976_v62 }
 0x897   :  { %1977 = vrcp.f32 %v1032_v1  ;;  %v1044_v11 = vand.u32 2147483648, %v1032_v1  ;;  %v1042_v24 = vand.u32 2147483647, %v1032_v1  ;;  %vm1038_vm5 = vweird.f32 %v1032_v1 }
 0x899   :  { %v1045_v28 = vor.u32 1.1754944e-38, %v1044_v11  ;;  %vm1043_vm9 = vcmp.eq.f32.partialorder %v1042_v24, 8.507059e+37 }
 0x89d   :  { %v1978_v4 = vpop.eup %1977 }
 0x89e   :  { %v1034_v7 = vmul.f32 %v1978_v4, %v1032_v1  ;;  %vm1039_vm4 = vweird.f32 %v1978_v4 }
 0x89f   :  { %vm1040_vm6 = vmor %vm1038_vm5, %vm1039_vm4  ;;  %vm3373_vm4 = vmmov 1  }
 0x8a0   :  { %v1035_v8 = vsub.f32 1.0, %v1034_v7  ;;  %vm2968_vm5 = vmxor %vm3371_vm1, %vm3373_vm4 }
 0x8a2   :  { %v1036_v15 = vmul.f32 %v1978_v4, %v1035_v8  ;;  %v1050_v12 = vpop.permute.xlu1 %1049 }
 0x8a3   :  { %v1052_v10 = vadd.f32 %v1050_v12, %v982_v5 }
 0x8a4   :  { %v1037_v25 = vadd.f32 %v1978_v4, %v1036_v15 }
 0x8a5   :  { %v1862_v34 = vmul.f32 -1.442695, %v1052_v10 }
 0x8a6   :  { %v1041_v31 = vsel %vm1040_vm6, %v1978_v4, %v1037_v25 }
 0x8a7   :  { %v1046_v35 = vsel %vm1043_vm9, %v1045_v28, %v1041_v31 }
 0x8a8   :  { %v1072_v21 = vmul.f32 %v1050_v12, %v1046_v35 }
 0x8aa   :  { %v1073_v49 = vadd.f32 %v1072_v21, %v1002_v38 }
 0x8ac   :  { %1979 = vtanh.f32 %v1073_v49 }
 0x8ad   :  { %1981 = vpow2.f32 %v1862_v34  ;;  %v928_v34 = vand.u32 65535, %v2913_v23 }
 0x8b2   :  { %v1980_v26 = vpop.eup %1979 }
 0x8b3   :  { %1077 = vrot.lane.b32.xlu2 %v1980_v26, %s2236_s10  ;;  %v1982_v6 = vpop.eup %1981 }
 0x8b4   :  { %v1056_v36 = vadd.f32 1.0, %v1982_v6  ;;  %v930_v6 = vcvt.s32.f32 %v928_v34 }
 0x8b6   :  { %1983 = vrcp.f32 %v1056_v36  ;;  %v1068_v60 = vand.u32 2147483648, %v1056_v36  ;;  %vm1062_vm11 = vweird.f32 %v1056_v36  ;;  %v1066_v62 = vand.u32 2147483647, %v1056_v36 }
 0x8b8   :  { %v1069_v1 = vor.u32 1.1754944e-38, %v1068_v60  ;;  %vm1067_vm13 = vcmp.eq.f32.partialorder %v1066_v62, 8.507059e+37 }
 0x8bc   :  { %v1984_v37 = vpop.eup %1983 }
 0x8bd   :  { %v1058_v48 = vmul.f32 %v1984_v37, %v1056_v36  ;;  %vm1063_vm10 = vweird.f32 %v1984_v37  ;;  %v2942_v36 = vsel %vm3366_vm14, %v2861_v52, 0 }
 0x8be   :  { %vm1064_vm12 = vmor %vm1062_vm11, %vm1063_vm10  ;;  %vm941_vm11 = vcmp.gt.s32.totalorder %v2905_v33, 14 }
 0x8bf   :  { %v1059_v2 = vsub.f32 1.0, %v1058_v48 }
 0x8c1   :  { %v1060_v54 = vmul.f32 %v1984_v37, %v1059_v2 }
 0x8c3   :  { %v1061_v57 = vadd.f32 %v1984_v37, %v1060_v54 }
 0x8c5   :  { %v1065_v38 = vsel %vm1064_vm12, %v1984_v37, %v1061_v57  ;;  %vm943_vm12 = vmand %vm2865_vm15, %vm3371_vm1 }
 0x8c6   :  { %v1070_v4 = vsel %vm1067_vm13, %v1069_v1, %v1065_v38 }
 0x8c7   :  { %v1075_v5 = vsub.f32 1.0, %v1070_v4  ;;  %v1081_v8 = vmul.f32 %v1070_v4, %v2698_v43  ;;  %v811_v43 = vsel %vm2865_vm15, %v2706_v45, 0 }
 0x8c8   :  { %v812_v35 = vsel %vm748_vm8, %v811_v43, 0 }
 0x8c9   :  { %v814_v21 = vshrl.u32 %v812_v35, 16  ;;  %v813_v49 = vand.u32 65535, %v812_v35 }
 0x8cb   :  { %v816_v26 = vcvt.s32.f32 %v814_v21  ;;  %v815_v10 = vcvt.s32.f32 %v813_v49 }
 0x90d   :  { %v1078_v7 = vpop.permute.xlu2 %1077 }
 0x90e   :  { %v1080_v11 = vmul.f32 %v1078_v7, %v1075_v5 }
 0x910   :  { %v2926_v15 = vadd.f32 %v1081_v8, %v1080_v11 }
 0x912   :  { %1084 = vrot.lane.b32.xlu1 %v2926_v15, %s2236_s10 }
 0x984   :  { %v1085_v24 = vpop.permute.xlu1 %1084 }
 0x985   :  { %1863 = vmatmul.msk.f32.vlgmr.msra.gmra.mxu2 %vm3367_vm3, %v1085_v24 }
 0xa08   :  { %v1105_v25 = vpop.f32.mrf.mxu2 }
 0xa09   :  { %v1109_v28 = vrot.slane %v1105_v25, 1  ;;  %v1110_v31 = vperm.slane %v1105_v25, 0 }
 0xa0b   :  { %v1111_v12 = vperm.slane %v1109_v28, 0  ;;  %1118 = vrot.lane.b32.xlu2 %v1110_v31, %s2236_s10  ;;  %v1114_v37 = vadd.f32 %v1110_v31, %v2665_v50  ;;  %v1115_v2 = vadd.f32 %v1110_v31, %v2667_v53 }
 0xa0d   :  { %1120 = vrot.lane.b32.xlu1 %v1111_v12, %s2236_s10  ;;  %v1116_v8 = vadd.f32 %v1111_v12, %v2669_v56  ;;  %v1117_v25 = vadd.f32 %v1111_v12, %v2671_v59 }
 0xa34   :  { %819 = vadd.xlane.f32.xlu2 %v816_v26 }
 0xa37   :  { %817 = vadd.xlane.f32.xlu1 %v815_v10 }
 0xa3c   :  { %932 = vadd.xlane.f32.xlu2 %v930_v6 }
 0xa50   :  { %955 = vperm.xlu1 %1908, %v2942_v36  }
 0xa58   :  { %1916 = vset.pattern.permute.xlu1 %v2766_v51 }
 0xa65   :  { %v1119_v45 = vpop.permute.xlu2 %1118 }
 0xa66   :  { %v1124_v48 = vmul.f32 %v1119_v45, %v2646_v39  ;;  %v1125_v23 = vmul.f32 %v1119_v45, %v2648_v40 }
 0xa68   :  { %v1128_v54 = vadd.f32 %v1124_v48, %v1114_v37  ;;  %v1129_v57 = vadd.f32 %v1125_v23, %v1115_v2 }
 0xa6a   :  { %1985 = vtanh.f32 %v1128_v54  ;;  %v935_v54 = vpop.xlane.xlu0 %934 }
 0xa6b   :  { %1987 = vtanh.f32 %v1129_v57 }
 0xa70   :  { %v1986_v60 = vpop.eup %1985 }
 0xa71   :  { %v1136_v62 = vmul.f32 %v1986_v60, %v2792_v29  ;;  %v1988_v1 = vpop.eup %1987 }
 0xa72   :  { %v1137_v4 = vmul.f32 %v1988_v1, %v2792_v29 }
 0xa73   :  { %v1140_v38 = vsel %vm3367_vm3, %v1136_v62, 0.0 }
 0xa74   :  { %1141 = vadd.xlane.f32.xlu0 %v1140_v38  ;;  %v1143_v5 = vsel %vm3367_vm3, %v1137_v4, 0.0 }
 0xa7c   :  { %1144 = vadd.xlane.f32.xlu0 %v1143_v5 }
 0xa7f   :  { %v1121_v7 = vpop.permute.xlu1 %1120 }
 0xa80   :  { %v1126_v11 = vmul.f32 %v1121_v7, %v2650_v41  ;;  %v1127_v24 = vmul.f32 %v1121_v7, %v2652_v42 }
 0xa82   :  { %v1130_v28 = vadd.f32 %v1126_v11, %v1116_v8  ;;  %v1131_v31 = vadd.f32 %v1127_v24, %v1117_v25  ;;  %v937_v8 = vcvt.f32.s32 %v935_v54 }
 0xa84   :  { %1989 = vtanh.f32 %v1130_v28  ;;  %v938_v25 = vshll.u32 %v937_v8, 16 }
 0xa85   :  { %1991 = vtanh.f32 %v1131_v31 }
 0xa8a   :  { %v1990_v43 = vpop.eup %1989 }
 0xa8b   :  { %v1138_v35 = vmul.f32 %v1990_v43, %v2798_v13  ;;  %v1992_v49 = vpop.eup %1991 }
 0xa8c   :  { %v1139_v26 = vmul.f32 %v1992_v49, %v2798_v13 }
 0xa8d   :  { %v1146_v21 = vsel %vm3367_vm3, %v1138_v35, 0.0 }
 0xa8e   :  { %1147 = vadd.xlane.f32.xlu0 %v1146_v21  ;;  %v1149_v10 = vsel %vm3367_vm3, %v1139_v26, 0.0 }
 0xa96   :  { %1150 = vadd.xlane.f32.xlu0 %v1149_v10 }
 0xaa7   :  { %v820_v34 = vpop.xlane.xlu2 %819 }
 0xaa8   :  { %v822_v6 = vcvt.f32.s32 %v820_v34 }
 0xaaa   :  { %v823_v45 = vshll.u32 %v822_v6, 16  ;;  %v818_v12 = vpop.xlane.xlu1 %817 }
 0xaab   :  { %v821_v37 = vcvt.f32.s32 %v818_v12 }
 0xaad   :  { %v2963_v48 = vadd.s32 %v823_v45, %v821_v37 }
 0xaaf   :  { %vm947_vm6 = vcmp.eq.s32.totalorder %v2963_v48, %v2942_v36  ;;  %v933_v5 = vpop.xlane.xlu2 %932 }
 0xab0   :  { %vm948_vm9 = vmand %vm2968_vm5, %vm947_vm6  ;;  %v936_v24 = vcvt.f32.s32 %v933_v5 }
 0xab1   :  { %v949_v2 = vsel %vm948_vm9, 1, %v3369_v14  ;;  %vm944_vm6 = vmxor %vm943_vm12, %vm3373_vm4 }
 0xab2   :  { %951 = vperm.xlu0 %1895, %v949_v2   ;;  %v939_v28 = vadd.s32 %v938_v25, %v936_v24 }
 0xab4   :  { %vm940_vm10 = vcmp.le.s32.totalorder %v2905_v33, %v939_v28 }
 0xab5   :  { %vm2988_vm13 = vmor %vm940_vm10, %vm941_vm11 }
 0xab6   :  { %vm945_vm14 = vmand %vm2988_vm13, %vm944_vm6 }
 0xaba   :  { %1910 = vset.pattern.permute.xlu0 %v2690_v46 }
 0xac2   :  { %v956_v34 = vpop.permute.xlu1 %955 }
 0xac3   :  { %vm957_vm9 = vcmp.eq.s32.totalorder %v2747_v58, %v956_v34 }
 0xae7   :  { %v1142_v57 = vpop.xlane.xlu0 %1141 }
 0xae8   :  { %v1152_v11 = vadd.f32 %v1142_v57, %v2812_v17 }
 0xaef   :  { %v1145_v60 = vpop.xlane.xlu0 %1144 }
 0xaf0   :  { %v1153_v4 = vadd.f32 %v1145_v60, %v2814_v18 }
 0xb01   :  { %v1148_v62 = vpop.xlane.xlu0 %1147 }
 0xb02   :  { %v1154_v7 = vadd.f32 %v1148_v62, %v2816_v19 }
 0xb09   :  { %v1151_v38 = vpop.xlane.xlu0 %1150 }
 0xb0a   :  { %v1155_v1 = vadd.f32 %v1151_v38, %v2818_v20 }
 0xb0c   :  { %1993 = vtanh.f32 %v1155_v1 }
 0xb0d   :  { %1995 = vtanh.f32 %v1153_v4 }
 0xb0e   :  { %1997 = vtanh.f32 %v1154_v7  ;;  %v1864_v7 = vld [vmem:[%s3348_s6 + $0x2] sm:$0x3] }
 0xb0f   :  { %1999 = vtanh.f32 %v1152_v11 }
 0xb12   :  { %v1994_v31 = vpop.eup %1993 }
 0xb13   :  { %v1996_v43 = vpop.eup %1995  ;;  %v1163_v21 = vmul.f32 6.0, %v1994_v31 }
 0xb14   :  { %v1998_v35 = vpop.eup %1997  ;;  %v1161_v26 = vmul.f32 6.0, %v1996_v43 }
 0xb15   :  { %v2000_v49 = vpop.eup %1999  ;;  %v1162_v10 = vmul.f32 6.0, %v1998_v35  ;;  %v1173_v12 = vperm.slane %v1163_v21, %v2825_v32 }
 0xb16   :  { %v1160_v45 = vmul.f32 6.0, %v2000_v49  ;;  %v1170_v2 = vperm.slane %v1161_v26, %v2825_v32 }
 0xb17   :  { %v1172_v54 = vperm.slane %v1162_v10, %v2747_v58 }
 0xb18   :  { %v1169_v57 = vperm.slane %v1160_v45, %v2747_v58 }
 0xb19   :  { %v1174_v60 = vsel %vm740_vm7, %v1173_v12, %v1172_v54 }
 0xb1a   :  { %v1171_v62 = vsel %vm740_vm7, %v1170_v2, %v1169_v57 }
 0xb1b   :  { %v1175_v1 = vsel %vm284_vm2, %v1174_v60, %v1171_v62 }
 0xb24   :  { %v952_v37 = vpop.permute.xlu0 %951 }
 0xb25   :  { %vm953_vm3 = vcmp.gt.s32.totalorder %v952_v37, 0 }
 0xb26   :  { %vm958_vm10 = vmand %vm957_vm9, %vm953_vm3 }
 0xb27   :  { %vm959_vm11 = vmxor %vm958_vm10, %vm3373_vm4 }
 0xb28   :  { %vm960_vm0 = vmand %vm945_vm14, %vm959_vm11 }
 0xb29   :  { %v961_v38 = vsel %vm960_vm0, 1, %v3369_v14 }
 0xb2a   :  { %vm1164_vm12 = vcmp.gt.s32.totalorder %v961_v38, 0 }
 0xb2b   :  { %v3005_v4 = vsel %vm1164_vm12, -1e+30, %v1175_v1  ;;  %vm3394_vm12 = vcmask 261120  }
 0xb2c   :  { %v1178_v5 = vsel %vm748_vm8, %v3005_v4, -inf  ;;  %v1190_v8 = vadd.f32 %v1864_v7, %v3005_v4 }
 0xb2d   :  { %1179 = vmax.xlane.f32.xlu2 %v1178_v5 }
 0xb2e   :  { %v1191_v11 = vsel %vm748_vm8, %v1190_v8, -inf }
 0xb35   :  { %1192 = vmax.xlane.f32.xlu2 %v1191_v11 }
 0xba0   :  { %v3014_v24 = vpop.xlane.xlu2 %1179 }
 0xba1   :  { %v1181_v25 = vsub.f32 %v3005_v4, %v3014_v24  ;;  %vm1211_vm0 = vcmp.eq.f32.partialorder %v3005_v4, %v3014_v24 }
 0xba2   :  { %v1212_v28 = vsel %vm1211_vm0, %v2747_v58, 16  ;;  %vm3395_vm0 = vmmov %vm3394_vm12 }
 0xba3   :  { %v1182_v31 = vmul.f32 1.442695, %v1181_v25  ;;  %v1213_v43 = vsel %vm748_vm8, %v1212_v28, 2147483647 }
 0xba4   :  { %v1215_v35 = vshra.s32 %v1213_v43, 16  ;;  %v1214_v62 = vand.u32 65535, %v1213_v43  ;;  %v3031_v43 = vsel %vm3371_vm1, 4294967295, %v2963_v48 }
 0xba5   :  { %2001 = vpow2.f32 %v1182_v31  ;;  %vm1318_vm9 = vcmp.lt.s32.totalorder %v3031_v43, 0 }
 0xba6   :  { %v1217_v21 = vcvt.s32.f32 %v1215_v35  ;;  %v1216_v38 = vcvt.s32.f32 %v1214_v62 }
 0xba8   :  { %1218 = vmin.xlane.f32.xlu2 %v1217_v21  ;;  %v1193_v49 = vpop.xlane.xlu2 %1192 }
 0xba9   :  { %vm1194_vm3 = vcmp.eq.f32.partialorder %v1190_v8, %v1193_v49 }
 0xbaa   :  { %v1195_v26 = vsel %vm1194_vm3, %v2747_v58, 16  ;;  %vm3396_vm3 = vmmov %vm3395_vm0 }
 0xbab   :  { %v2002_v10 = vpop.eup %2001  ;;  %v1196_v34 = vsel %vm748_vm8, %v1195_v26, 2147483647 }
 0xbac   :  { %v1184_v6 = vsel %vm748_vm8, %v2002_v10, 0.0  ;;  %v1198_v45 = vshra.s32 %v1196_v34, 16  ;;  %v1197_v37 = vand.u32 65535, %v1196_v34 }
 0xbad   :  { %1185 = vadd.xlane.f32.xlu1 %v1184_v6  ;;  %v1319_v6 = vadd.s32 16, %v3031_v43 }
 0xbae   :  { %v1200_v12 = vcvt.s32.f32 %v1198_v45  ;;  %v1199_v54 = vcvt.s32.f32 %v1197_v37 }
 0xbaf   :  { %v1320_v37 = vsel %vm1318_vm9, %v1319_v6, %v3031_v43  ;;  %vm3400_vm9 = vmmov %vm3395_vm0 }
 0xbb0   :  { %1201 = vmin.xlane.f32.xlu0 %v1200_v12  ;;  %vm1321_vm10 = vcmp.eq.s32.totalorder %v2747_v58, %v1320_v37 }
 0xc1b   :  { %v1219_v60 = vpop.xlane.xlu2 %1218 }
 0xc1c   :  { %vm1220_vm13 = vcmp.eq.f32.partialorder %v1217_v21, %v1219_v60  ;;  %v1225_v11 = vcvt.f32.s32 %v1219_v60 }
 0xc1d   :  { %v1221_v1 = vsel %vm1220_vm13, %v1216_v38, inf  ;;  %vm3398_vm13 = vmmov %vm3395_vm0 }
 0xc1e   :  { %v1226_v49 = vshll.u32 %v1225_v11, 16 }
 0xc20   :  { %v3025_v5 = vpop.xlane.xlu1 %1185 }
 0xc21   :  { %2003 = vrcp.f32 %v3025_v5 }
 0xc23   :  { %v1202_v2 = vpop.xlane.xlu0 %1201 }
 0xc24   :  { %vm1203_vm14 = vcmp.eq.f32.partialorder %v1200_v12, %v1202_v2  ;;  %v1208_v25 = vcvt.f32.s32 %v1202_v2  ;;  %v1866_v2 = vsel %vm1321_vm10, 1.0, %v2238_v61  ;;  %vm3401_vm10 = vmmov %vm3395_vm0 }
 0xc25   :  { %v1204_v57 = vsel %vm1203_vm14, %v1199_v54, inf  ;;  %v1324_v54 = vperm.slane %v1866_v2, 0  ;;  %vm3397_vm14 = vmmov %vm3395_vm0 }
 0xc26   :  { %1205 = vmin.xlane.f32.xlu2 %v1204_v57  ;;  %v1209_v26 = vshll.u32 %v1208_v25, 16  ;;  %v1337_v57 = vperm.slane %v1866_v2, 1 }
 0xc27   :  { %v2004_v8 = vpop.eup %2003 }
 0xc28   :  { %v1228_v31 = vsub.f32 1.0, %v2004_v8  ;;  %v1923_v60 = vpack.i.bf16 %v1337_v57, %v1324_v54 }
 0xc2a   :  { %vm1229_vm6 = vcmp.lt.f32.partialorder %v1228_v31, 1e-05 }
 0xc2e   :  { %1222 = vmin.xlane.f32.xlu2 %v1221_v1 }
 0xc99   :  { %v1206_v7 = vpop.xlane.xlu2 %1205 }
 0xc9a   :  { %v1207_v28 = vcvt.f32.s32 %v1206_v7 }
 0xc9c   :  { %v1210_v21 = vadd.s32 %v1209_v26, %v1207_v28 }
 0xca1   :  { %v1223_v35 = vpop.xlane.xlu2 %1222 }
 0xca2   :  { %v1224_v10 = vcvt.f32.s32 %v1223_v35 }
 0xca4   :  { %v1227_v34 = vadd.s32 %v1226_v49, %v1224_v10 }
 0xca6   :  { %v1230_v45 = vsel %vm1229_vm6, %v1227_v34, %v1210_v21  ;;  %vm3399_vm6 = vmmov %vm3395_vm0 }
 0xca7   :  { %v3038_v12 = vsel %vm3371_vm1, %v2942_v36, %v1230_v45 }
 0xca8   :  { %1233 = vperm.xlu2 %1909, %v3038_v12  }
 0xcb0   :  { %1922 = vset.pattern.permute.xlu2 %v2690_v46 }
 0xcb8   :  { %1924 = vperm.xlu2 %1922, %v1923_v60  }
 0xcc0   :  { %1928 = vset.pattern.permute.xlu2 %v2766_v51 }
 0xcc8   :  { %1930 = vperm.xlu2 %1928, %v1923_v60  }
 0xcd0   :  { %1936 = vset.pattern.permute.xlu2 %v3369_v14 }
 0xd02   :  { %v3047_v62 = vpop.permute.xlu2 %1233 }
 0xd03   :  { %vm3051_vm11 = vcmp.eq.s32.totalorder %v2747_v58, %v3047_v62 }
 0xd04   :  { %v1865_v46 = vsel %vm3051_vm11, 1.0, %v2238_v61 }
 0xd05   :  { %v1270_v1 = vperm.slane %v1865_v46, 0  ;;  %v1283_v7 = vperm.slane %v1865_v46, 1 }
 0xd07   :  { %v1917_v8 = vpack.i.bf16 %v1283_v7, %v1270_v1 }
 0xd09   :  { %1918 = vperm.xlu1 %1916, %v1917_v8   ;;  %1912 = vperm.xlu0 %1910, %v1917_v8  }
 0xd11   :  { %1935 = vset.pattern.permute.xlu0 %v3369_v14  ;;  %1934 = vset.pattern.permute.xlu1 %v3369_v14 }
 0xd12   :  { %v1925_v51 = vpop.permute.xlu2 %1924 }
 0xd13   :  { %v1927_v31 = vunpack.i.h.bf16 %v1925_v51  ;;  %v1926_v35 = vunpack.i.l.bf16 %v1925_v51 }
 0xd15   :  { %v1352_v61 = vmul.f32 %v2892_v9, %v1927_v31  ;;  %v1350_v10 = vmul.f32 %v2898_v22, %v1926_v35 }
 0xd17   :  { %v1363_v6 = vsel %vm3396_vm3, %v1352_v61, 0.0  ;;  %v1354_v45 = vsel %vm3397_vm14, %v1350_v10, 0.0 }
 0xd22   :  { %v1931_v11 = vpop.permute.xlu2 %1930 }
 0xd23   :  { %v1933_v25 = vunpack.i.h.bf16 %v1931_v11  ;;  %v1932_v28 = vunpack.i.l.bf16 %v1931_v11 }
 0xd25   :  { %v1353_v49 = vmul.f32 %v2880_v27, %v1933_v25  ;;  %v1351_v26 = vmul.f32 %v2886_v30, %v1932_v28 }
 0xd27   :  { %v1364_v21 = vsel %vm3394_vm12, %v1353_v49, 0.0  ;;  %v1355_v34 = vsel %vm3395_vm0, %v1351_v26, 0.0  ;;  %vm3402_vm12 = vmmov %vm3395_vm0  ;;  %vm3403_vm0 = vcmask 523264  }
 0xd28   :  { %v1356_v37 = vadd.f32 %v1355_v34, %v1354_v45  ;;  %v1365_v2 = vadd.f32 %v1364_v21, %v1363_v6 }
 0xd2a   :  { %v1357_v54 = vrot.slane %v1356_v37, 4  ;;  %v1366_v57 = vrot.slane %v1365_v2, 4 }
 0xd2c   :  { %v1358_v60 = vadd.f32 %v1357_v54, %v1356_v37  ;;  %v1367_v46 = vadd.f32 %v1366_v57, %v1365_v2 }
 0xd2e   :  { %v1359_v26 = vrot.slane %v1358_v60, 2  ;;  %v1368_v61 = vrot.slane %v1367_v46, 2 }
 0xd30   :  { %v1360_v54 = vadd.f32 %v1359_v26, %v1358_v60 }
 0xd7b   :  { %v1919_v1 = vpop.permute.xlu1 %1918  ;;  %v1913_v7 = vpop.permute.xlu0 %1912 }
 0xd7c   :  { %v1921_v8 = vunpack.i.h.bf16 %v1919_v1  ;;  %v1920_v51 = vunpack.i.l.bf16 %v1919_v1  ;;  %v1915_v11 = vunpack.i.h.bf16 %v1913_v7  ;;  %v1914_v25 = vunpack.i.l.bf16 %v1913_v7 }
 0xd7d   :  { %v1361_v7 = vrot.slane %v1360_v54, 1 }
 0xd7e   :  { %v1299_v28 = vmul.f32 %v2880_v27, %v1921_v8  ;;  %v1297_v31 = vmul.f32 %v2886_v30, %v1920_v51  ;;  %v1298_v35 = vmul.f32 %v2892_v9, %v1915_v11  ;;  %v1296_v49 = vmul.f32 %v2898_v22, %v1914_v25 }
 0xd7f   :  { %v1369_v30 = vadd.f32 %v1368_v61, %v1367_v46 }
 0xd80   :  { %v1310_v10 = vsel %vm3398_vm13, %v1299_v28, 0.0  ;;  %v1301_v21 = vsel %vm3399_vm6, %v1297_v31, 0.0  ;;  %v1309_v34 = vsel %vm3400_vm9, %v1298_v35, 0.0  ;;  %v1300_v6 = vsel %vm3401_vm10, %v1296_v49, 0.0 }
 0xd81   :  { %v1311_v45 = vadd.f32 %v1310_v10, %v1309_v34  ;;  %v1302_v37 = vadd.f32 %v1301_v21, %v1300_v6  ;;  %v1370_v8 = vrot.slane %v1369_v30, 1  ;;  %v1362_v31 = vadd.f32 %v1361_v7, %v1360_v54 }
 0xd83   :  { %v1312_v2 = vrot.slane %v1311_v45, 4  ;;  %v1303_v27 = vrot.slane %v1302_v37, 4  ;;  %v1371_v35 = vadd.f32 %v1370_v8, %v1369_v30 }
 0xd85   :  { %v1313_v57 = vadd.f32 %v1312_v2, %v1311_v45  ;;  %v1304_v9 = vadd.f32 %v1303_v27, %v1302_v37  ;;  %v1378_v21 = vsel %vm284_vm2, %v1371_v35, %v1362_v31  ;;  %v3091_v37 = vld [vmem:[%s3383_s25] sm:$0x3] }
 0xd86   :  { %v1246_v2 = vsel %vm3051_vm11, %v3091_v37, 0 }
 0xd87   :  { %v1314_v1 = vrot.slane %v1313_v57, 2  ;;  %v1305_v22 = vrot.slane %v1304_v9, 2  ;;  %v3097_v27 = vsel %vm748_vm8, %v1246_v2, 0 }
 0xd89   :  { %v1306_v51 = vadd.f32 %v1305_v22, %v1304_v9  ;;  %v1315_v11 = vadd.f32 %v1314_v1, %v1313_v57 }
 0xd8b   :  { %v1307_v25 = vrot.slane %v1306_v51, 1  ;;  %v1316_v28 = vrot.slane %v1315_v11, 1 }
 0xd8d   :  { %v1308_v14 = vadd.f32 %v1307_v25, %v1306_v51  ;;  %v1317_v49 = vadd.f32 %v1316_v28, %v1315_v11 }
 0xd8f   :  { %v1374_v10 = vsel %vm284_vm2, %v1317_v49, %v1308_v14 }
 0xd90   :  { %v1380_v60 = vsel %vm3371_vm1, %v1374_v10, %v1378_v21 }
 0xd91   :  { %1382 = vrot.lane.b32.xlu2 %v1380_v60, %s2235_s22 }
 0xdeb   :  { %v1383_v46 = vpop.permute.xlu2 %1382 }
 0xdec   :  { %v1385_v26 = vsel %vm3402_vm12, %v1374_v10, %v1383_v46 }
 0xded   :  { %v1460_v61 = vsel %vm3403_vm0, %v1385_v26, %v2926_v15 }
 0xdee   :  { %1477 = vmatmul.f32.vlgmr.msrb.gmra.mxu2 %v1460_v61  ;;  %1497 = vmatmul.f32.vlgmr.msra.gmra.mxu3 %v1460_v61 }
 0xdef   :  { %1517 = vmatmul.f32.vlgmr.msrb.gmra.mxu0 %v1460_v61 }
 0xe6c   :  { %v1518_v34 = vpop.f32.mrf.mxu0 }
 0xe6d   :  { %v1519_v6 = vadd.f32 %v1518_v34, %v2661_v47  ;;  %v1248_v47 = vand.u32 65535, %v3097_v27 }
 0xe6f   :  { %1546 = vrot.lane.b32.xlu2 %v1519_v6, %s2236_s10  ;;  %v1250_v54 = vcvt.s32.f32 %v1248_v47 }
 0xe71   :  { %v1498_v14 = vpop.f32.mrf.mxu3  ;;  %v1478_v1 = vpop.f32.mrf.mxu2 }
 0xe72   :  { %v1499_v45 = vadd.f32 %v1498_v14, %v2657_v44  ;;  %v1425_v44 = vsel %vm3051_vm11, %v2905_v33, 0  ;;  %v1479_v22 = vadd.f32 %v1478_v1, %v2673_v0 }
 0xe73   :  { %v3104_v30 = vsel %vm748_vm8, %v1425_v44, 0 }
 0xe74   :  { %1522 = vrot.lane.b32.xlu1 %v1499_v45, %s2236_s10  ;;  %v1427_v57 = vand.u32 65535, %v3104_v30 }
 0xe76   :  { %v1429_v9 = vcvt.s32.f32 %v1427_v57 }
 0xe98   :  { %1252 = vadd.xlane.f32.xlu2 %v1250_v54 }
 0xea0   :  { %1431 = vadd.xlane.f32.xlu2 %v1429_v9 }
 0xec9   :  { %v1547_v0 = vpop.permute.xlu2 %1546 }
 0xeca   :  { %v1549_v2 = vadd.f32 %v1547_v0, %v1479_v22 }
 0xecc   :  { %v1868_v47 = vmul.f32 -1.442695, %v1549_v2 }
 0xee6   :  { %v1523_v7 = vpop.permute.xlu1 %1522 }
 0xee7   :  { %v1525_v8 = vadd.f32 %v1523_v7, %v1479_v22 }
 0xee9   :  { %v1867_v51 = vmul.f32 -1.442695, %v1525_v8 }
 0xeeb   :  { %2005 = vpow2.f32 %v1867_v51 }
 0xef1   :  { %v2006_v11 = vpop.eup %2005 }
 0xef2   :  { %v1529_v25 = vadd.f32 1.0, %v2006_v11 }
 0xef4   :  { %2007 = vrcp.f32 %v1529_v25  ;;  %v1541_v49 = vand.u32 2147483648, %v1529_v25  ;;  %v1539_v21 = vand.u32 2147483647, %v1529_v25  ;;  %vm1535_vm14 = vweird.f32 %v1529_v25 }
 0xef6   :  { %v1542_v46 = vor.u32 1.1754944e-38, %v1541_v49  ;;  %vm1540_vm6 = vcmp.eq.f32.partialorder %v1539_v21, 8.507059e+37  ;;  %v1249_v21 = vshrl.u32 %v3097_v27, 16 }
 0xefa   :  { %v2008_v28 = vpop.eup %2007 }
 0xefb   :  { %v1531_v31 = vmul.f32 %v2008_v28, %v1529_v25  ;;  %vm1536_vm3 = vweird.f32 %v2008_v28 }
 0xefc   :  { %vm1537_vm13 = vmor %vm1535_vm14, %vm1536_vm3  ;;  %vm3404_vm3 = vcmask 523264  }
 0xefd   :  { %v1532_v35 = vsub.f32 1.0, %v1531_v31  ;;  %vm3405_vm14 = vmmov %vm3404_vm3 }
 0xeff   :  { %v1533_v10 = vmul.f32 %v2008_v28, %v1532_v35 }
 0xf01   :  { %v1534_v60 = vadd.f32 %v2008_v28, %v1533_v10 }
 0xf03   :  { %v1538_v26 = vsel %vm1537_vm13, %v2008_v28, %v1534_v60  ;;  %v1251_v60 = vcvt.s32.f32 %v1249_v21  ;;  %vm3406_vm13 = vmmov %vm3404_vm3 }
 0xf04   :  { %v1543_v61 = vsel %vm1540_vm6, %v1542_v46, %v1538_v26  ;;  %v1428_v46 = vshrl.u32 %v3104_v30, 16  ;;  %vm1386_vm6 = vcmp.eq.s32.totalorder %v3038_v12, %v3031_v43 }
 0xf05   :  { %v1569_v34 = vmul.f32 %v1547_v0, %v1543_v61 }
 0xf06   :  { %v1430_v26 = vcvt.s32.f32 %v1428_v46 }
 0xf07   :  { %v1570_v6 = vadd.f32 %v1569_v34, %v1499_v45 }
 0xf09   :  { %2009 = vtanh.f32 %v1570_v6 }
 0xf0a   :  { %2011 = vpow2.f32 %v1868_v47 }
 0xf0f   :  { %v2010_v14 = vpop.eup %2009 }
 0xf10   :  { %1574 = vrot.lane.b32.xlu1 %v2010_v14, %s2236_s10  ;;  %v2012_v44 = vpop.eup %2011 }
 0xf11   :  { %v1553_v54 = vadd.f32 1.0, %v2012_v44 }
 0xf13   :  { %2013 = vrcp.f32 %v1553_v54  ;;  %v1565_v51 = vand.u32 2147483648, %v1553_v54  ;;  %vm1559_vm10 = vweird.f32 %v1553_v54  ;;  %v1563_v11 = vand.u32 2147483647, %v1553_v54 }
 0xf15   :  { %v1566_v25 = vor.u32 1.1754944e-38, %v1565_v51  ;;  %vm1564_vm0 = vcmp.eq.f32.partialorder %v1563_v11, 8.507059e+37 }
 0xf19   :  { %v2014_v57 = vpop.eup %2013 }
 0xf1a   :  { %v1555_v9 = vmul.f32 %v2014_v57, %v1553_v54  ;;  %vm1560_vm9 = vweird.f32 %v2014_v57 }
 0xf1b   :  { %vm1561_vm12 = vmor %vm1559_vm10, %vm1560_vm9  ;;  %vm3372_vm9 = vcmp.eq.s32.totalorder %v2747_v58, 1 }
 0xf1c   :  { %v1556_v1 = vsub.f32 1.0, %v1555_v9  ;;  %vm3137_vm10 = vmor %vm3371_vm1, %vm1386_vm6  ;;  %v3145_v43 = vsel %vm3372_vm9, %v3047_v62, %v2942_v36 }
 0xf1e   :  { %v1557_v7 = vmul.f32 %v2014_v57, %v1556_v1 }
 0xf20   :  { %v1558_v8 = vadd.f32 %v2014_v57, %v1557_v7 }
 0xf22   :  { %v1562_v45 = vsel %vm1561_vm12, %v2014_v57, %v1558_v8 }
 0xf23   :  { %v1567_v28 = vsel %vm1564_vm0, %v1566_v25, %v1562_v45  ;;  %vm1443_vm0 = vmxor %vm3137_vm10, %vm3373_vm4 }
 0xf24   :  { %v1572_v22 = vsub.f32 1.0, %v1567_v28  ;;  %v1578_v35 = vmul.f32 %v1567_v28, %v2926_v15  ;;  %v1253_v15 = vpop.xlane.xlu2 %1252 }
 0xf2c   :  { %v3116_v2 = vpop.xlane.xlu2 %1431 }
 0xf82   :  { %v1575_v31 = vpop.permute.xlu1 %1574 }
 0xf83   :  { %v1577_v49 = vmul.f32 %v1575_v31, %v1572_v22 }
 0xf85   :  { %v1579_v10 = vadd.f32 %v1578_v35, %v1577_v49 }
 0xf87   :  { %1581 = vrot.lane.b32.xlu0 %v1579_v10, %s2236_s10 }
 0xfb1   :  { %1254 = vadd.xlane.f32.xlu0 %v1251_v60 }
 0xfb9   :  { %1433 = vadd.xlane.f32.xlu0 %v1430_v26 }
 0xff9   :  { %v1582_v0 = vpop.permute.xlu0 %1581 }
 0xffa   :  { %1869 = vmatmul.msk.f32.vlgmr.msrb.gmra.mxu1 %vm3404_vm3, %v1582_v0 }
0x1024   :  { %v1255_v11 = vpop.xlane.xlu0 %1254 }
0x1077   :  { %v1602_v61 = vpop.f32.mrf.mxu1 }
0x1078   :  { %v1606_v34 = vrot.slane %v1602_v61, 1  ;;  %v1607_v6 = vperm.slane %v1602_v61, 0 }
0x107a   :  { %v1608_v14 = vperm.slane %v1606_v34, 0  ;;  %1615 = vrot.lane.b32.xlu2 %v1607_v6, %s2236_s10  ;;  %v1611_v47 = vadd.f32 %v1607_v6, %v2665_v50  ;;  %v1612_v30 = vadd.f32 %v1607_v6, %v2667_v53  ;;  %v1434_v34 = vpop.xlane.xlu0 %1433 }
0x107c   :  { %1617 = vrot.lane.b32.xlu1 %v1608_v14, %s2236_s10  ;;  %v1614_v22 = vadd.f32 %v1608_v14, %v2671_v59 }
0x10d4   :  { %v1616_v27 = vpop.permute.xlu2 %1615 }
0x10d5   :  { %v1621_v44 = vmul.f32 %v1616_v27, %v2646_v39  ;;  %v1622_v54 = vmul.f32 %v1616_v27, %v2648_v40  ;;  %v1257_v39 = vcvt.f32.s32 %v1255_v11  ;;  %v1256_v40 = vcvt.f32.s32 %v1253_v15 }
0x10d7   :  { %v1625_v57 = vadd.f32 %v1621_v44, %v1611_v47  ;;  %v1626_v9 = vadd.f32 %v1622_v54, %v1612_v30  ;;  %v1258_v53 = vshll.u32 %v1257_v39, 16  ;;  %v1436_v44 = vcvt.f32.s32 %v1434_v34 }
0x10d9   :  { %2015 = vtanh.f32 %v1625_v57  ;;  %v3128_v25 = vadd.s32 %v1258_v53, %v1256_v40 }
0x10da   :  { %2017 = vtanh.f32 %v1626_v9 }
0x10db   :  { %vm1444_vm12 = vcmp.eq.s32.totalorder %v3128_v25, %v3145_v43 }
0x10dc   :  { %vm1445_vm3 = vmand %vm1443_vm0, %vm1444_vm12 }
0x10df   :  { %v2016_v1 = vpop.eup %2015 }
0x10e0   :  { %v2018_v7 = vpop.eup %2017  ;;  %v1633_v8 = vmul.f32 %v2016_v1, %v2792_v29 }
0x10e1   :  { %v1634_v51 = vmul.f32 %v2018_v7, %v2792_v29  ;;  %v1613_v29 = vadd.f32 %v1608_v14, %v2669_v56 }
0x10e2   :  { %v1637_v45 = vsel %vm3405_vm14, %v1633_v8, 0.0  ;;  %vm3410_vm14 = vmmov %vm3406_vm13 }
0x10e3   :  { %v1640_v50 = vsel %vm3406_vm13, %v1634_v51, 0.0  ;;  %1638 = vadd.xlane.f32.xlu1 %v1637_v45  ;;  %v1437_v51 = vshll.u32 %v1436_v44, 16 }
0x10e4   :  { %1641 = vadd.xlane.f32.xlu0 %v1640_v50 }
0x10ee   :  { %v1618_v28 = vpop.permute.xlu1 %1617 }
0x10ef   :  { %v1623_v31 = vmul.f32 %v1618_v28, %v2650_v41  ;;  %v1624_v35 = vmul.f32 %v1618_v28, %v2652_v42  ;;  %v3409_v41 = vmov 0  }
0x10f0   :  { %v1446_v42 = vsel %vm1445_vm3, 1, %v3409_v41  ;;  %v1388_v0 = vsel %vm3137_vm10, 1, %v3409_v41 }
0x10f1   :  { %v1627_v12 = vadd.f32 %v1623_v31, %v1613_v29  ;;  %v1628_v56 = vadd.f32 %v1624_v35, %v1614_v22 }
0x10f3   :  { %2019 = vtanh.f32 %v1627_v12 }
0x10f4   :  { %2021 = vtanh.f32 %v1628_v56 }
0x10f8   :  { %1448 = vperm.xlu0 %1935, %v1446_v42  }
0x10f9   :  { %v2020_v59 = vpop.eup %2019 }
0x10fa   :  { %v2022_v10 = vpop.eup %2021  ;;  %v1635_v21 = vmul.f32 %v2020_v59, %v2798_v13 }
0x10fb   :  { %v1636_v60 = vmul.f32 %v2022_v10, %v2798_v13 }
0x10fc   :  { %v1643_v46 = vsel %vm3410_vm14, %v1635_v21, 0.0 }
0x10fd   :  { %v1646_v26 = vsel %vm3406_vm13, %v1636_v60, 0.0  ;;  %1644 = vadd.xlane.f32.xlu2 %v1643_v46 }
0x10fe   :  { %1647 = vadd.xlane.f32.xlu1 %v1646_v26 }
0x1115   :  { %1452 = vperm.xlu2 %1936, %v3145_v43  }
0x1117   :  { %1419 = vperm.xlu1 %1934, %v1388_v0  }
0x1156   :  { %v1639_v61 = vpop.xlane.xlu1 %1638 }
0x1157   :  { %v1642_v15 = vpop.xlane.xlu0 %1641  ;;  %v1649_v47 = vadd.f32 %v1639_v61, %v2812_v17  ;;  %v1435_v17 = vcvt.f32.s32 %v3116_v2 }
0x1158   :  { %v1650_v30 = vadd.f32 %v1642_v15, %v2814_v18 }
0x1159   :  { %v1438_v45 = vadd.s32 %v1437_v51, %v1435_v17 }
0x116a   :  { %v1449_v7 = vpop.permute.xlu0 %1448 }
0x116b   :  { %vm1450_vm12 = vcmp.gt.s32.totalorder %v1449_v7, 0 }
0x1170   :  { %v1645_v6 = vpop.xlane.xlu2 %1644 }
0x1171   :  { %v1648_v14 = vpop.xlane.xlu1 %1647  ;;  %v1651_v13 = vadd.f32 %v1645_v6, %v2816_v19 }
0x1172   :  { %v1652_v27 = vadd.f32 %v1648_v14, %v2818_v20 }
0x1173   :  { %2023 = vtanh.f32 %v1651_v13 }
0x1174   :  { %2025 = vtanh.f32 %v1652_v27 }
0x1175   :  { %2027 = vtanh.f32 %v1649_v47 }
0x1176   :  { %2029 = vtanh.f32 %v1650_v30 }
0x1178   :  { %v1453_v57 = vpop.permute.xlu2 %1452 }
0x1179   :  { %v2024_v54 = vpop.eup %2023  ;;  %vm1454_vm6 = vcmp.eq.s32.totalorder %v2747_v58, %v1453_v57 }
0x117a   :  { %v2026_v9 = vpop.eup %2025  ;;  %v1659_v20 = vmul.f32 6.0, %v2024_v54  ;;  %vm1455_vm0 = vmand %vm1454_vm6, %vm1450_vm12  ;;  %vm1439_vm6 = vcmp.le.s32.totalorder %v2905_v33, %v1438_v45 }
0x117b   :  { %v2028_v1 = vpop.eup %2027  ;;  %v1660_v19 = vmul.f32 6.0, %v2026_v9  ;;  %vm1456_vm14 = vmxor %vm1455_vm0, %vm3373_vm4 }
0x117c   :  { %v2030_v8 = vpop.eup %2029  ;;  %v1657_v18 = vmul.f32 6.0, %v2028_v1  ;;  %v1669_v53 = vperm.slane %v1659_v20, %v2747_v58 }
0x117d   :  { %v1658_v11 = vmul.f32 6.0, %v2030_v8  ;;  %v1670_v39 = vperm.slane %v1660_v19, %v2825_v32 }
0x117e   :  { %v1666_v40 = vperm.slane %v1657_v18, %v2747_v58 }
0x117f   :  { %v1667_v28 = vperm.slane %v1658_v11, %v2825_v32  ;;  %v1671_v2 = vsel %vm740_vm7, %v1670_v39, %v1669_v53  ;;  %v1870_v32 = vld [vmem:[%s3348_s6 + $0x4] sm:$0x3]  ;;  %s2241_s6 = smov 3  }
0x1181   :  { %v1668_v29 = vsel %vm740_vm7, %v1667_v28, %v1666_v40 }
0x1182   :  { %v1672_v31 = vsel %vm284_vm2, %v1671_v2, %v1668_v29  ;;  %vm889_vm2 = vcmp.eq.s32.totalorder %v2747_v58, 3 }
0x1189   :  { %v3167_v50 = vpop.permute.xlu1 %1419 }
0x118a   :  { %vm1421_vm3 = vcmp.gt.s32.totalorder %v3167_v50, 0 }
0x118b   :  { %vm1440_vm13 = vmand %vm3051_vm11, %vm1421_vm3 }
0x118c   :  { %vm1441_vm12 = vmxor %vm1440_vm13, %vm3373_vm4 }
0x118d   :  { %vm1442_vm1 = vmand %vm1439_vm6, %vm1441_vm12 }
0x118e   :  { %vm1457_vm9 = vmand %vm1442_vm1, %vm1456_vm14  ;;  %vm891_vm14 = vcmask 25600  }
0x118f   :  { %v1458_v22 = vsel %vm1457_vm9, 1, %v3409_v41  ;;  %vm3411_vm9 = vcmp.eq.s32.totalorder %v2747_v58, 1 }
0x1190   :  { %vm1661_vm0 = vcmp.gt.s32.totalorder %v1458_v22, 0  ;;  %v3207_v26 = vsel %vm3411_vm9, %v2963_v48, %v2942_v36 }
0x1191   :  { %v3188_v35 = vsel %vm1661_vm0, -1e+30, %v1672_v31  ;;  %v890_v15 = vsel %vm889_vm2, %v3207_v26, 0  ;;  %vm3412_vm0 = vcmp.eq.s32.totalorder %v2861_v52, 4294967295 }
0x1192   :  { %v1675_v33 = vsel %vm748_vm8, %v3188_v35, -inf  ;;  %v1687_v12 = vadd.f32 %v1870_v32, %v3188_v35  ;;  %v892_v27 = vsel %vm891_vm14, %v890_v15, 0  ;;  %vm3414_vm9 = vmmov %vm3412_vm0 }
0x1193   :  { %1676 = vmax.xlane.f32.xlu1 %v1675_v33  ;;  %v893_v47 = vand.u32 65535, %v892_v27  ;;  %v894_v19 = vshrl.u32 %v892_v27, 16 }
0x1194   :  { %v1688_v56 = vsel %vm748_vm8, %v1687_v12, -inf }
0x1195   :  { %1689 = vmax.xlane.f32.xlu2 %v1688_v56  ;;  %v895_v30 = vcvt.s32.f32 %v893_v47  ;;  %v896_v20 = vcvt.s32.f32 %v894_v19 }
0x1206   :  { %v3194_v42 = vpop.xlane.xlu1 %1676 }
0x1207   :  { %v1678_v59 = vsub.f32 %v3188_v35, %v3194_v42  ;;  %vm1708_vm7 = vcmp.eq.f32.partialorder %v3188_v35, %v3194_v42 }
0x1208   :  { %v1690_v10 = vpop.xlane.xlu2 %1689  ;;  %v1709_v21 = vsel %vm1708_vm7, %v2747_v58, 16  ;;  %vm3413_vm7 = vcmp.eq.s32.totalorder %v2747_v58, 0 }
0x1209   :  { %v1679_v60 = vmul.f32 1.442695, %v1678_v59  ;;  %vm1691_vm1 = vcmp.eq.f32.partialorder %v1687_v12, %v1690_v10  ;;  %v1710_v46 = vsel %vm748_vm8, %v1709_v21, 2147483647  ;;  %vm3416_vm4 = vmmov %vm3413_vm7 }
0x120a   :  { %v1692_v0 = vsel %vm1691_vm1, %v2747_v58, 16  ;;  %v1712_v61 = vshra.s32 %v1710_v46, 16  ;;  %v1711_v44 = vand.u32 65535, %v1710_v46  ;;  %vm906_vm1 = vmand %vm3413_vm7, %vm3412_vm0 }
0x120b   :  { %2031 = vpow2.f32 %v1679_v60  ;;  %v1693_v34 = vsel %vm748_vm8, %v1692_v0, 2147483647  ;;  %vm3417_vm0 = vmmov %vm3416_vm4 }
0x120c   :  { %v1714_v6 = vcvt.s32.f32 %v1712_v61  ;;  %v1695_v14 = vshra.s32 %v1693_v34, 16  ;;  %v1694_v54 = vand.u32 65535, %v1693_v34  ;;  %v1713_v9 = vcvt.s32.f32 %v1711_v44  ;;  %vm1264_vm7 = vmand %vm3417_vm0, %vm2968_vm5 }
0x120d   :  { %vm1404_vm5 = vcmask 17408  }
0x120e   :  { %1715 = vmin.xlane.f32.xlu2 %v1714_v6  ;;  %v1697_v13 = vcvt.s32.f32 %v1695_v14  ;;  %v1696_v8 = vcvt.s32.f32 %v1694_v54 }
0x1210   :  { %1698 = vmin.xlane.f32.xlu0 %v1697_v13 }
0x1211   :  { %v2032_v36 = vpop.eup %2031 }
0x1212   :  { %v1681_v48 = vsel %vm748_vm8, %v2032_v36, 0.0 }
0x1213   :  { %1682 = vadd.xlane.f32.xlu1 %v1681_v48  ;;  %v1265_v48 = vsel %vm1264_vm7, %v3047_v62, 0 }
0x1218   :  { %897 = vadd.xlane.f32.xlu0 %v895_v30 }
0x1281   :  { %v1716_v57 = vpop.xlane.xlu2 %1715 }
0x1282   :  { %vm1717_vm13 = vcmp.eq.f32.partialorder %v1714_v6, %v1716_v57  ;;  %v1722_v11 = vcvt.f32.s32 %v1716_v57 }
0x1283   :  { %v1699_v1 = vpop.xlane.xlu0 %1698  ;;  %v1718_v7 = vsel %vm1717_vm13, %v1713_v9, inf  ;;  %vm3415_vm13 = vcmp.eq.s32.totalorder %v2747_v58, 1 }
0x1284   :  { %1719 = vmin.xlane.f32.xlu1 %v1718_v7  ;;  %vm1700_vm6 = vcmp.eq.f32.partialorder %v1697_v13, %v1699_v1  ;;  %v1705_v45 = vcvt.f32.s32 %v1699_v1  ;;  %v1723_v2 = vshll.u32 %v1722_v11, 16 }
0x1285   :  { %v1701_v51 = vsel %vm1700_vm6, %v1696_v8, inf  ;;  %vm1261_vm6 = vmand %vm3415_vm13, %vm3414_vm9 }
0x1286   :  { %1702 = vmin.xlane.f32.xlu2 %v1701_v51  ;;  %v3216_v17 = vpop.xlane.xlu1 %1682  ;;  %v1706_v29 = vshll.u32 %v1705_v45, 16 }
0x1287   :  { %2033 = vrcp.f32 %v3216_v17 }
0x1288   :  { %2035 = vlog2.f32 %v3025_v5 }
0x1289   :  { %2037 = vlog2.f32 %v3216_v17 }
0x128a   :  { %2039 = vlog2.f32 %v2855_v16 }
0x128b   :  { %v898_v56 = vpop.xlane.xlu0 %897 }
0x128c   :  { %v901_v21 = vcvt.f32.s32 %v898_v56 }
0x128d   :  { %v2034_v18 = vpop.eup %2033 }
0x128e   :  { %899 = vadd.xlane.f32.xlu2 %v896_v20  ;;  %v1725_v40 = vsub.f32 1.0, %v2034_v18 }
0x1290   :  { %vm1726_vm12 = vcmp.lt.f32.partialorder %v1725_v40, 1e-05 }
0x12f7   :  { %v1720_v39 = vpop.xlane.xlu1 %1719 }
0x12f8   :  { %v1721_v53 = vcvt.f32.s32 %v1720_v39 }
0x12f9   :  { %v1703_v28 = vpop.xlane.xlu2 %1702 }
0x12fa   :  { %v1704_v22 = vcvt.f32.s32 %v1703_v28  ;;  %v1724_v32 = vadd.s32 %v1723_v2, %v1721_v53 }
0x12fc   :  { %v1707_v31 = vadd.s32 %v1706_v29, %v1704_v22 }
0x12fe   :  { %v1727_v33 = vsel %vm1726_vm12, %v1724_v32, %v1707_v31  ;;  %vm1266_vm12 = vcmp.eq.s32.totalorder %v2747_v58, 2 }
0x12ff   :  { %v1729_v12 = vsel %vm3137_vm10, %v3145_v43, %v1727_v33  ;;  %vm1759_vm7 = vmand %vm1266_vm12, %vm1421_vm3 }
0x1300   :  { %1731 = vperm.xlu1 %1934, %v1729_v12  }
0x1301   :  { %v900_v59 = vpop.xlane.xlu2 %899 }
0x1302   :  { %v902_v10 = vcvt.f32.s32 %v900_v59 }
0x1304   :  { %v903_v60 = vshll.u32 %v902_v10, 16 }
0x1306   :  { %v904_v46 = vadd.s32 %v903_v60, %v901_v21 }
0x1308   :  { %v907_v0 = vsel %vm906_vm1, %v904_v46, %v3207_v26 }
0x1309   :  { %v1262_v61 = vsel %vm1261_vm6, %v3047_v62, %v907_v0  ;;  %vm3419_vm6 = vcmp.eq.s32.totalorder %v2747_v58, 1 }
0x130a   :  { %v1267_v34 = vsel %vm1266_vm12, %v3128_v25, %v1262_v61 }
0x130b   :  { %v1389_v6 = vsel %vm3416_vm4, %v1267_v34, 0  ;;  %vm3418_vm4 = vmmov %vm3417_vm0 }
0x130c   :  { %v1390_v14 = vsel %vm891_vm14, %v1389_v6, 0  ;;  %v1403_v23 = vsel %vm3418_vm4, %v1265_v48, 0  ;;  %vm3266_vm0 = vmand %vm3419_vm6, %vm1421_vm3 }
0x130d   :  { %v1392_v15 = vshrl.u32 %v1390_v14, 16  ;;  %v1391_v26 = vand.u32 65535, %v1390_v14  ;;  %v1405_v1 = vsel %vm1404_vm5, %v1403_v23, 0  ;;  %vm3422_vm4 = vmmov %vm3419_vm6  ;;  %v1236_v23 = vsel %vm3051_vm11, %v3005_v4, 0.0 }
0x130e   :  { %v1407_v62 = vshrl.u32 %v1405_v1, 16  ;;  %v1406_v7 = vand.u32 65535, %v1405_v1  ;;  %v2240_v1 = vmov 3  }
0x130f   :  { %v1394_v13 = vcvt.s32.f32 %v1392_v15  ;;  %v1393_v27 = vcvt.s32.f32 %v1391_v26 }
0x1310   :  { %v1409_v8 = vcvt.s32.f32 %v1407_v62  ;;  %v1408_v51 = vcvt.s32.f32 %v1406_v7 }
0x1311   :  { %1397 = vadd.xlane.f32.xlu2 %v1394_v13  ;;  %1395 = vadd.xlane.f32.xlu0 %v1393_v27 }
0x1372   :  { %v3243_v36 = vpop.permute.xlu1 %1731 }
0x1373   :  { %vm1733_vm1 = vcmp.eq.s32.totalorder %v2747_v58, %v3243_v36  ;;  %v1758_v49 = vsel %vm1266_vm12, %v3243_v36, %v3145_v43 }
0x1374   :  { %v1744_v47 = vsel %vm1733_vm1, %v3091_v37, 0  ;;  %v1459_v37 = vsel %vm3137_vm10, 4294967295, %v3128_v25  ;;  %v1734_v50 = vsel %vm1733_vm1, %v3188_v35, 0.0  ;;  %v802_v35 = vsel %vm2865_vm15, %v2838_v3, 0.0 }
0x1375   :  { %v1745_v30 = vsel %vm748_vm8, %v1744_v47, 0  ;;  %vm1765_vm9 = vcmp.eq.s32.totalorder %v1729_v12, %v1459_v37  ;;  %vm1819_vm15 = vcmask 1024  }
0x1376   :  { %v1747_v44 = vshrl.u32 %v1745_v30, 16  ;;  %v1746_v54 = vand.u32 65535, %v1745_v30  ;;  %vm1766_vm13 = vmor %vm3137_vm10, %vm1765_vm9  ;;  %vm3423_vm9 = vmmov 1   ;;  %v1735_v30 = vsel %vm748_vm8, %v1734_v50, 0.0 }
0x1377   :  { %v1767_v19 = vsel %vm1766_vm13, 1, %v3409_v41  ;;  %vm1761_vm13 = vmxor %vm1421_vm3, %vm3423_vm9 }
0x1378   :  { %v1749_v57 = vcvt.s32.f32 %v1747_v44  ;;  %v1748_v9 = vcvt.s32.f32 %v1746_v54 }
0x137a   :  { %1752 = vadd.xlane.f32.xlu2 %v1749_v57  ;;  %1750 = vadd.xlane.f32.xlu0 %v1748_v9  ;;  %v1237_v57 = vsel %vm748_vm8, %v1236_v23, 0.0  ;;  %v803_v9 = vsel %vm748_vm8, %v802_v35, 0.0  ;;  %vm3428_vm8 = vcmp.eq.s32.totalorder %v2861_v52, 4294967295 }
0x1382   :  { %1412 = vadd.xlane.f32.xlu2 %v1409_v8  ;;  %1410 = vadd.xlane.f32.xlu0 %v1408_v51 }
0x1384   :  { %v1398_v20 = vpop.xlane.xlu2 %1397  ;;  %v1396_v11 = vpop.xlane.xlu0 %1395 }
0x1385   :  { %v1400_v18 = vcvt.f32.s32 %v1398_v20  ;;  %v1399_v39 = vcvt.f32.s32 %v1396_v11 }
0x1387   :  { %v1401_v45 = vshll.u32 %v1400_v18, 16 }
0x1389   :  { %v1402_v53 = vadd.s32 %v1401_v45, %v1399_v39 }
0x138b   :  { %v1423_v41 = vsel %vm3266_vm0, %v1402_v53, %v1267_v34 }
0x138c   :  { %v1760_v31 = vsel %vm1759_vm7, %v3243_v36, %v1423_v41  ;;  %vm1817_vm7 = vcmask 66560  }
0x1396   :  { %1797 = vperm.xlu0 %1935, %v1767_v19  }
0x139e   :  { %1937 = vset.pattern.permute.xlu0 %v2240_v1 }
0x13ed   :  { %v1753_v40 = vpop.xlane.xlu2 %1752  ;;  %v1751_v28 = vpop.xlane.xlu0 %1750 }
0x13ee   :  { %v1755_v2 = vcvt.f32.s32 %v1753_v40  ;;  %v1754_v22 = vcvt.f32.s32 %v1751_v28  ;;  %v2036_v28 = vpop.eup %2035 }
0x13ef   :  { %v2038_v41 = vpop.eup %2037 }
0x13f0   :  { %v1756_v29 = vshll.u32 %v1755_v2, 16 }
0x13f2   :  { %v1757_v32 = vadd.s32 %v1756_v29, %v1754_v22  ;;  %v2040_v29 = vpop.eup %2039  ;;  %v1242_v22 = vmul.f32 0.6931472, %v2036_v28 }
0x13f4   :  { %v1764_v33 = vsel %vm889_vm2, %v1757_v32, %v1760_v31  ;;  %vm3424_vm2 = vmmov %vm3422_vm4  ;;  %v1740_v31 = vmul.f32 0.6931472, %v2038_v41 }
0x13f5   :  { %v1413_v12 = vpop.xlane.xlu2 %1412  ;;  %v1411_v56 = vpop.xlane.xlu0 %1410  ;;  %v1768_v59 = vsel %vm3422_vm4, %v1764_v33, 0  ;;  %vm1762_vm6 = vmand %vm3424_vm2, %vm1761_vm13 }
0x13f6   :  { %v1415_v10 = vcvt.f32.s32 %v1413_v12  ;;  %v1769_v21 = vsel %vm891_vm14, %v1768_v59, 0  ;;  %v1414_v61 = vcvt.f32.s32 %v1411_v56  ;;  %vm3425_vm14 = vmmov %vm3424_vm2  ;;  %v808_v12 = vmul.f32 0.6931472, %v2040_v29 }
0x13f7   :  { %v1771_v60 = vshrl.u32 %v1769_v21, 16  ;;  %v1770_v46 = vand.u32 65535, %v1769_v21 }
0x13f8   :  { %v1416_v0 = vshll.u32 %v1415_v10, 16 }
0x13f9   :  { %v1773_v34 = vcvt.s32.f32 %v1771_v60  ;;  %v1772_v6 = vcvt.s32.f32 %v1770_v46 }
0x13fa   :  { %v1417_v14 = vadd.s32 %v1416_v0, %v1414_v61 }
0x13fb   :  { %1776 = vadd.xlane.f32.xlu1 %v1773_v34  ;;  %1774 = vadd.xlane.f32.xlu2 %v1772_v6 }
0x13fc   :  { %v1424_v15 = vsel %vm3266_vm0, %v1417_v14, %v1265_v48  ;;  %vm1813_vm0 = vcmask 23552  }
0x13fd   :  { %v3290_v26 = vsel %vm1762_vm6, %v3243_v36, %v1424_v15 }
0x13fe   :  { %v1782_v13 = vsel %vm3425_vm14, %v3290_v26, 0 }
0x13ff   :  { %v1783_v27 = vsel %vm1404_vm5, %v1782_v13, 0 }
0x1400   :  { %v1785_v47 = vshrl.u32 %v1783_v27, 16  ;;  %v1784_v48 = vand.u32 65535, %v1783_v27 }
0x1402   :  { %v1787_v44 = vcvt.s32.f32 %v1785_v47  ;;  %v1786_v54 = vcvt.s32.f32 %v1784_v48 }
0x1403   :  { %1736 = vadd.xlane.f32.xlu1 %v1735_v30 }
0x1404   :  { %1790 = vadd.xlane.f32.xlu2 %v1787_v44 }
0x1408   :  { %v1798_v62 = vpop.permute.xlu0 %1797 }
0x1409   :  { %vm1799_vm3 = vcmp.gt.s32.totalorder %v1798_v62, 0  ;;  %vm1803_vm1 = vcmp.eq.s32.totalorder %v1798_v62, 0 }
0x140a   :  { %vm3311_vm11 = vmand %vm1266_vm12, %vm1799_vm3 }
0x140b   :  { %vm1804_vm5 = vmand %vm1803_vm1, %vm1266_vm12 }
0x140c   :  { %1788 = vadd.xlane.f32.xlu2 %v1786_v54 }
0x1414   :  { %1238 = vadd.xlane.f32.xlu2 %v1237_v57 }
0x141c   :  { %804 = vadd.xlane.f32.xlu2 %v803_v9 }
0x146e   :  { %v1777_v7 = vpop.xlane.xlu1 %1776  ;;  %v1775_v8 = vpop.xlane.xlu2 %1774 }
0x146f   :  { %v1779_v51 = vcvt.f32.s32 %v1777_v7  ;;  %v1778_v38 = vcvt.f32.s32 %v1775_v8 }
0x1471   :  { %v1780_v37 = vshll.u32 %v1779_v51, 16 }
0x1473   :  { %v1781_v4 = vadd.s32 %v1780_v37, %v1778_v38 }
0x1475   :  { %v1801_v3 = vsel %vm3311_vm11, %v1781_v4, %v1764_v33 }
0x1476   :  { %1806 = vperm.xlu0 %1937, %v1801_v3   ;;  %v1737_v2 = vpop.xlane.xlu1 %1736 }
0x1477   :  { %v1791_v55 = vpop.xlane.xlu2 %1790  ;;  %v1738_v32 = vsub.f32 %v1737_v2, %v3194_v42 }
0x1478   :  { %v1793_v20 = vcvt.f32.s32 %v1791_v55 }
0x1479   :  { %v1741_v59 = vsub.f32 %v1738_v32, %v1740_v31 }
0x147a   :  { %v1794_v11 = vshll.u32 %v1793_v20, 16 }
0x147e   :  { %1809 = vrot.lane.b32.xlu0 %v1801_v3, %s2241_s6 }
0x147f   :  { %v1789_v18 = vpop.xlane.xlu2 %1788 }
0x1480   :  { %v1792_v45 = vcvt.f32.s32 %v1789_v18 }
0x1482   :  { %v1795_v39 = vadd.s32 %v1794_v11, %v1792_v45 }
0x1484   :  { %v1802_v53 = vsel %vm3311_vm11, %v1795_v39, %v3290_v26 }
0x1487   :  { %v1239_v40 = vpop.xlane.xlu2 %1238 }
0x1488   :  { %v1240_v25 = vsub.f32 %v1239_v40, %v3014_v24  ;;  %v1742_v24 = vsel %vm3137_vm10, 0.0, %v1741_v59  ;;  %vm1815_vm10 = vcmask 48128  }
0x148a   :  { %v1243_v5 = vsub.f32 %v1240_v25, %v1242_v22 }
0x148c   :  { %v1244_v16 = vsel %vm3428_vm8, 0.0, %v1243_v5 }
0x148f   :  { %v805_v33 = vpop.xlane.xlu2 %804 }
0x1490   :  { %v806_v56 = vsub.f32 %v805_v33, %v2844_v63 }
0x1492   :  { %v809_v17 = vsub.f32 %v806_v56, %v808_v12 }
0x1494   :  { %v1245_v10 = vadd.f32 %v1244_v16, %v809_v17 }
0x1496   :  { %v1743_v21 = vadd.f32 %v1742_v24, %v1245_v10 }
0x1498   :  { %1820 = vst.msk [vmem:[%s3363_s21] sm:$0x3] %vm1819_vm15, %v1743_v21 }
0x14e8   :  { %v1807_v63 = vpop.permute.xlu0 %1806 }
0x14e9   :  { %v1808_v42 = vsel %vm1804_vm5, %v1807_v63, %v1802_v53 }
0x14ea   :  { %1811 = vrot.lane.b32.xlu2 %v1808_v42, %s2242_s26 }
0x14f0   :  { %v1810_v52 = vpop.permute.xlu0 %1809 }
0x14f1   :  { %v1814_v60 = vsel %vm1813_vm0, %v1758_v49, %v1810_v52 }
0x1544   :  { %v1812_v46 = vpop.permute.xlu2 %1811 }
0x1545   :  { %v1816_v0 = vsel %vm1815_vm10, %v1814_v60, %v1812_v46 }
0x1546   :  { %1818 = vst.msk [vmem:[#allocation14] sm:$0x3] %vm1817_vm7, %v1816_v0 }
0x1547   :  { %1831 = dma.vmem_to_hbm [thread:$0]  %s1827_s12, 32, %s1829_s3, [#allocation5]  }
0x1548   :  { %2222 = dma.done.wait [#allocation5], 32  }
0x1549   :  { %2223 = vsyncadd [#allocation5], 4294967264 }
0x154a   :  { %1840 = vsyncpa [#allocation4], 1 }
0x154b   :  { %1841 = vsyncpa [#allocation7], 1 }
0x154c   :  { %1842 = vsyncpa [#allocation10], 1 }
0x154d   :  { %1843 = vsyncpa [#allocation13], 1 }
0x154e   :  { %1844 = vsyncpa [#allocation5], 1 }

</bundles_post_ra>
